<compile_context>
chip_gen: v7x
topology: tpu7x:2x2x1
jax: 0.10.0
libtpu: 0.0.40
codegen_flags: <defaults>
</compile_context>

<pallas_src>
import functools

import numpy as np
import jax
import jax.numpy as jnp
from jax import lax
from jax.experimental import pallas as pl
from jax.experimental.pallas import tpu as pltpu


ACTS = ("relu", "relu", "relu", "relu6", "relu", "relu", "relu", "sigmoid")


def _enc_specs(channels):
    return [(channels, 32), (32, 32), (32, 16), (16, 8)]


def _dec_specs(channels):
    return [(8, 16), (16, 32), (32, 32), (32, channels)]


# ----------------------------- activations (also used in-kernel) -------------------------
def _apply_act(y, act):
    if act == "relu":
        return jnp.maximum(y, 0.0)
    if act == "relu6":
        return jnp.minimum(jnp.maximum(y, 0.0), 6.0)
    if act == "sigmoid":
        # stable sigmoid: exp only on the non-positive side
        e = jnp.exp(-jnp.abs(y))
        s = e / (1.0 + e)
        return jnp.where(y >= 0.0, 1.0 - s, s)
    raise ValueError(act)


# --------------------- host-side 0/1 spatial selection matrices --------------------------
def _enc_select(H, W, ky, kx):
    """S with (x @ S)[c, oy*Wo+ox] == x[c, (2oy+ky-1)*W + (2ox+kx-1)]  (0 where padded)."""
    Ho, Wo = H // 2, W // 2
    S = np.zeros((H * W, Ho * Wo), np.float32)
    for oy in range(Ho):
        iy = 2 * oy + ky - 1
        if iy < 0 or iy >= H:
            continue
        for ox in range(Wo):
            ix = 2 * ox + kx - 1
            if 0 <= ix < W:
                S[iy * W + ix, oy * Wo + ox] = 1.0
    return S


def _dec_select(H, W, ky, kx):
    """T with (x @ T)[c, oy*Wo+ox] = x[c, iy*W+ix] where oy=2iy+ky-1, ox=2ix+kx-1 (else 0)."""
    Ho, Wo = 2 * H, 2 * W
    T = np.zeros((H * W, Ho * Wo), np.float32)
    for iy in range(H):
        oy = 2 * iy + ky - 1
        if oy < 0 or oy >= Ho:
            continue
        for ix in range(W):
            ox = 2 * ix + kx - 1
            if 0 <= ox < Wo:
                T[iy * W + ix, oy * Wo + ox] = 1.0
    return T


# -------------------------------------- parameters ---------------------------------------
def init_raw_params(channels, key):
    """Raw parameters in PyTorch layout: enc (Cout,Cin,3,3), dec (Cin,Cout,3,3)."""
    params = {"enc": [], "dec": []}
    keys = jax.random.split(key, 16)
    ki = 0
    for cin, cout in _enc_specs(channels):
        bound = 1.0 / np.sqrt(cin * 9)
        w = jax.random.uniform(keys[ki], (cout, cin, 3, 3), jnp.float32, -bound, bound); ki += 1
        b = jax.random.uniform(keys[ki], (cout,), jnp.float32, -bound, bound); ki += 1
        params["enc"].append((w, b))
    for cin, cout in _dec_specs(channels):
        bound = 1.0 / np.sqrt(cin * 9)
        wt = jax.random.uniform(keys[ki], (cin, cout, 3, 3), jnp.float32, -bound, bound); ki += 1
        b = jax.random.uniform(keys[ki], (cout,), jnp.float32, -bound, bound); ki += 1
        params["dec"].append((wt, b))
    return params


def pack_params(raw, channels, H, W):
    """Pack weights/selection matrices for the fused kernel.

    Per layer:  wcatT (9*Cout, Cin)  -- row block t holds W_t^T,
                S     (9, HWin, HWout) 0/1 selection (transposed to (9,1,HWin) if HWout==1),
                b     (Cout, 1).
    meta per layer: (Cout, HWin, HWout).
    """
    packed, meta = [], []
    h, w = H, W
    for (w_raw, b), (cin, cout) in zip(raw["enc"], _enc_specs(channels)):
        ho, wo = h // 2, w // 2
        w_np = np.asarray(w_raw)                                        # (Cout,Cin,3,3)
        wcatT = np.transpose(w_np, (2, 3, 0, 1)).reshape(9 * cout, cin)  # rows: (ky,kx,co)
        S = np.stack([_enc_select(h, w, ky, kx) for ky in range(3) for kx in range(3)], 0)
        if ho * wo == 1:
            S = np.ascontiguousarray(np.transpose(S, (0, 2, 1)))        # (9, 1, HWin)
        packed.append((jnp.asarray(wcatT), jnp.asarray(S),
                       jnp.asarray(np.asarray(b).reshape(cout, 1))))
        meta.append((cout, h * w, ho * wo))
        h, w = ho, wo
    for (wt_raw, b), (cin, cout) in zip(raw["dec"], _dec_specs(channels)):
        ho, wo = 2 * h, 2 * w
        wt_np = np.asarray(wt_raw)                                       # (Cin,Cout,3,3)
        wcatT = np.transpose(wt_np, (2, 3, 1, 0)).reshape(9 * cout, cin)
        S = np.stack([_dec_select(h, w, ky, kx) for ky in range(3) for kx in range(3)], 0)
        if ho * wo == 1:
            S = np.ascontiguousarray(np.transpose(S, (0, 2, 1)))
        packed.append((jnp.asarray(wcatT), jnp.asarray(S),
                       jnp.asarray(np.asarray(b).reshape(cout, 1))))
        meta.append((cout, h * w, ho * wo))
        h, w = ho, wo
    return packed, tuple(meta)


# ------------------------------------ fused Pallas kernel --------------------------------
def _fused_kernel(*refs, meta, acts):
    # refs: x_ref, then 8 x (w_ref, s_ref, b_ref), then o_ref.
    x_ref = refs[0]
    o_ref = refs[-1]
    params = refs[1:-1]

    x = x_ref[...].astype(jnp.float32)                       # (Cin, HWin)
    for li, ((cout, hw_in, hw_out), act) in enumerate(zip(meta, acts)):
        w_ref = params[3 * li + 0]                           # (9*cout, cin)
        s_ref = params[3 * li + 1]                           # (9, hw_in, hw_out) [or (9,1,hw_in)]
        b_ref = params[3 * li + 2]                           # (cout, 1)
        w_all = w_ref[...]
        b = b_ref[...]

        if hw_in == 1:
            # Single input pixel: apply selection by broadcast multiply, then per-tap
            # weight matmuls (Cout,Cin)@(Cin,HWout) -> no degenerate matmul dims.
            acc = jnp.zeros((cout, hw_out), jnp.float32)
            for t in range(9):
                xt = x * s_ref[t]                            # (cin,1)*(1,hw_out)->(cin,hw_out)
                acc = acc + jnp.dot(w_all[t * cout:(t + 1) * cout, :], xt,
                                    preferred_element_type=jnp.float32)
        elif hw_out == 1:
            # Single output pixel: selection packed transposed -> lane reduction, no N=1 dot.
            z = jnp.dot(w_all, x, preferred_element_type=jnp.float32)   # (9*cout, hw_in)
            acc = jnp.zeros((cout, 1), jnp.float32)
            for t in range(9):
                zt = z[t * cout:(t + 1) * cout, :]                       # (cout, hw_in)
                acc = acc + jnp.sum(zt * s_ref[t], axis=1, keepdims=True)
        else:
            # One big weight matmul, then 9 chained-accumulated selection matmuls.
            z = jnp.dot(w_all, x, preferred_element_type=jnp.float32)   # (9*cout, hw_in)
            acc = jnp.zeros((cout, hw_out), jnp.float32)
            for t in range(9):
                acc = acc + jnp.dot(z[t * cout:(t + 1) * cout, :], s_ref[t],
                                    preferred_element_type=jnp.float32)

        x = _apply_act(acc + b, act)                         # (cout, hw_out)

    o_ref[...] = x.astype(o_ref.dtype)


def _full_block_index_map(ndim):
    if ndim == 2:
        return lambda n: (0, 0)
    if ndim == 3:
        return lambda n: (0, 0, 0)
    raise ValueError(ndim)


# ------------------------------------- forward pass --------------------------------------
def conv_obs_qbnet_forward(packed, x_nchw, *, meta, acts):
    N, C, H, W = x_nchw.shape
    x = x_nchw.reshape(N, C, H * W)                          # NCHW -> (N, C, HW), metadata only

    flat_inputs = [x]
    in_specs = [pl.BlockSpec((None, C, H * W), lambda n: (n, 0, 0))]
    for (wcatT, S, b) in packed:
        for arr in (wcatT, S, b):
            flat_inputs.append(arr)
            in_specs.append(pl.BlockSpec(arr.shape, _full_block_index_map(arr.ndim)))

    cout_last = meta[-1][0]
    hw_last = meta[-1][2]
    kernel = functools.partial(_fused_kernel, meta=meta, acts=acts)

    y = pl.pallas_call(
        kernel,
        out_shape=jax.ShapeDtypeStruct((N, cout_last, hw_last), jnp.float32),
        grid=(N,),
        in_specs=in_specs,
        out_specs=pl.BlockSpec((None, cout_last, hw_last), lambda n: (n, 0, 0)),
        compiler_params=pltpu.CompilerParams(
            dimension_semantics=("parallel",),
            vmem_limit_bytes=32 * 1024 * 1024,
        ),
    )(*flat_inputs)

    return y.reshape(N, cout_last, H, W)                     # (N, C, HW) -> NCHW


# ----------------------------- pure-JAX reference (for check) ----------------------------
def reference_forward(raw, x_nchw):
    x = jnp.transpose(x_nchw, (0, 2, 3, 1))                  # NCHW -> NHWC
    dn = ("NHWC", "HWIO", "NHWC")
    li = 0
    for (w, b) in raw["enc"]:
        w_hwio = jnp.transpose(w, (2, 3, 1, 0))
        y = lax.conv_general_dilated(x, w_hwio, (2, 2), ((1, 1), (1, 1)),
                                     dimension_numbers=dn)
        x = _apply_act(y + b, ACTS[li]); li += 1
    for (wt, b) in raw["dec"]:
        w_hwio = jnp.transpose(jnp.flip(wt, axis=(2, 3)), (2, 3, 0, 1))
        y = lax.conv_general_dilated(x, w_hwio, (1, 1), ((1, 2), (1, 2)),
                                     lhs_dilation=(2, 2), dimension_numbers=dn)
        x = _apply_act(y + b, ACTS[li]); li += 1
    return jnp.transpose(x, (0, 3, 1, 2))                    # NHWC -> NCHW


# ------------------------------------------------------------------------------------------
if __name__ == "__main__":
    channels = 4
    H = W = 16
    key = jax.random.PRNGKey(0)
    k_x, k_p = jax.random.split(key)

    x = jax.random.uniform(k_x, (2, channels, H, W), jnp.float32)   # NCHW like PyTorch
    raw = init_raw_params(channels, k_p)
    packed, meta = pack_params(raw, channels, H, W)

    fwd = jax.jit(functools.partial(conv_obs_qbnet_forward, meta=meta, acts=ACTS))
    y = jax.block_until_ready(fwd(packed, x))
    assert y.shape == (2, channels, H, W), y.shape

    y_ref = jax.block_until_ready(reference_forward(raw, x))
    max_err = float(np.max(np.abs(np.asarray(y) - np.asarray(y_ref))))
    assert np.allclose(np.asarray(y), np.asarray(y_ref), atol=1e-4, rtol=1e-4), max_err

    print("KERNEL_OK")
</pallas_src>

<mosaic_0001>
module attributes {stable_mosaic.version = 11 : i64} {
  func.func @_fused_kernel(%arg0: i32, %arg1: memref<1x4x256xf32, #tpu.memory_space<vmem>>, %arg2: memref<288x4xf32, #tpu.memory_space<vmem>>, %arg3: memref<9x256x64xf32, #tpu.memory_space<vmem>>, %arg4: memref<32x1xf32, #tpu.memory_space<vmem>>, %arg5: memref<288x32xf32, #tpu.memory_space<vmem>>, %arg6: memref<9x64x16xf32, #tpu.memory_space<vmem>>, %arg7: memref<32x1xf32, #tpu.memory_space<vmem>>, %arg8: memref<144x32xf32, #tpu.memory_space<vmem>>, %arg9: memref<9x16x4xf32, #tpu.memory_space<vmem>>, %arg10: memref<16x1xf32, #tpu.memory_space<vmem>>, %arg11: memref<72x16xf32, #tpu.memory_space<vmem>>, %arg12: memref<9x1x4xf32, #tpu.memory_space<vmem>>, %arg13: memref<8x1xf32, #tpu.memory_space<vmem>>, %arg14: memref<144x8xf32, #tpu.memory_space<vmem>>, %arg15: memref<9x1x4xf32, #tpu.memory_space<vmem>>, %arg16: memref<16x1xf32, #tpu.memory_space<vmem>>, %arg17: memref<288x16xf32, #tpu.memory_space<vmem>>, %arg18: memref<9x4x16xf32, #tpu.memory_space<vmem>>, %arg19: memref<32x1xf32, #tpu.memory_space<vmem>>, %arg20: memref<288x32xf32, #tpu.memory_space<vmem>>, %arg21: memref<9x16x64xf32, #tpu.memory_space<vmem>>, %arg22: memref<32x1xf32, #tpu.memory_space<vmem>>, %arg23: memref<36x32xf32, #tpu.memory_space<vmem>>, %arg24: memref<9x64x256xf32, #tpu.memory_space<vmem>>, %arg25: memref<4x1xf32, #tpu.memory_space<vmem>>, %arg26: memref<1x4x256xf32, #tpu.memory_space<vmem>>) attributes {dimension_semantics = [#tpu.dimension_semantics<parallel>], iteration_bounds = array<i64: 2>, scalar_prefetch = 0 : i64, scratch_operands = 0 : i64, tpu.core_type = #tpu.core_type<tc>, window_params = [{transform_indices = @transform_0, window_bounds = array<i64: 1, 4, 256>}, {pipeline_mode = #tpu.pipeline_mode<synchronous>, transform_indices = @transform_1, window_bounds = array<i64: 288, 4>}, {pipeline_mode = #tpu.pipeline_mode<synchronous>, transform_indices = @transform_2, window_bounds = array<i64: 9, 256, 64>}, {pipeline_mode = #tpu.pipeline_mode<synchronous>, transform_indices = @transform_3, window_bounds = array<i64: 32, 1>}, {pipeline_mode = #tpu.pipeline_mode<synchronous>, transform_indices = @transform_4, window_bounds = array<i64: 288, 32>}, {pipeline_mode = #tpu.pipeline_mode<synchronous>, transform_indices = @transform_5, window_bounds = array<i64: 9, 64, 16>}, {pipeline_mode = #tpu.pipeline_mode<synchronous>, transform_indices = @transform_6, window_bounds = array<i64: 32, 1>}, {pipeline_mode = #tpu.pipeline_mode<synchronous>, transform_indices = @transform_7, window_bounds = array<i64: 144, 32>}, {pipeline_mode = #tpu.pipeline_mode<synchronous>, transform_indices = @transform_8, window_bounds = array<i64: 9, 16, 4>}, {pipeline_mode = #tpu.pipeline_mode<synchronous>, transform_indices = @transform_9, window_bounds = array<i64: 16, 1>}, {pipeline_mode = #tpu.pipeline_mode<synchronous>, transform_indices = @transform_10, window_bounds = array<i64: 72, 16>}, {pipeline_mode = #tpu.pipeline_mode<synchronous>, transform_indices = @transform_11, window_bounds = array<i64: 9, 1, 4>}, {pipeline_mode = #tpu.pipeline_mode<synchronous>, transform_indices = @transform_12, window_bounds = array<i64: 8, 1>}, {pipeline_mode = #tpu.pipeline_mode<synchronous>, transform_indices = @transform_13, window_bounds = array<i64: 144, 8>}, {pipeline_mode = #tpu.pipeline_mode<synchronous>, transform_indices = @transform_14, window_bounds = array<i64: 9, 1, 4>}, {pipeline_mode = #tpu.pipeline_mode<synchronous>, transform_indices = @transform_15, window_bounds = array<i64: 16, 1>}, {pipeline_mode = #tpu.pipeline_mode<synchronous>, transform_indices = @transform_16, window_bounds = array<i64: 288, 16>}, {pipeline_mode = #tpu.pipeline_mode<synchronous>, transform_indices = @transform_17, window_bounds = array<i64: 9, 4, 16>}, {pipeline_mode = #tpu.pipeline_mode<synchronous>, transform_indices = @transform_18, window_bounds = array<i64: 32, 1>}, {pipeline_mode = #tpu.pipeline_mode<synchronous>, transform_indices = @transform_19, window_bounds = array<i64: 288, 32>}, {pipeline_mode = #tpu.pipeline_mode<synchronous>, transform_indices = @transform_20, window_bounds = array<i64: 9, 16, 64>}, {pipeline_mode = #tpu.pipeline_mode<synchronous>, transform_indices = @transform_21, window_bounds = array<i64: 32, 1>}, {pipeline_mode = #tpu.pipeline_mode<synchronous>, transform_indices = @transform_22, window_bounds = array<i64: 36, 32>}, {pipeline_mode = #tpu.pipeline_mode<synchronous>, transform_indices = @transform_23, window_bounds = array<i64: 9, 64, 256>}, {pipeline_mode = #tpu.pipeline_mode<synchronous>, transform_indices = @transform_24, window_bounds = array<i64: 4, 1>}, {transform_indices = @transform_25, window_bounds = array<i64: 1, 4, 256>}]} {
    %c0 = arith.constant 0 : index
    %c0_0 = arith.constant 0 : index
    %c0_1 = arith.constant 0 : index
    %0 = vector.load %arg1[%c0, %c0_0, %c0_1] : memref<1x4x256xf32, #tpu.memory_space<vmem>>, vector<1x4x256xf32>
    %1 = vector.shape_cast %0 : vector<1x4x256xf32> to vector<4x256xf32>
    %c0_2 = arith.constant 0 : index
    %c0_3 = arith.constant 0 : index
    %2 = vector.load %arg2[%c0_2, %c0_3] : memref<288x4xf32, #tpu.memory_space<vmem>>, vector<288x4xf32>
    %c0_4 = arith.constant 0 : index
    %c0_5 = arith.constant 0 : index
    %3 = vector.load %arg4[%c0_4, %c0_5] : memref<32x1xf32, #tpu.memory_space<vmem>>, vector<32x1xf32>
    %cst = arith.constant dense<0.000000e+00> : vector<288x256xf32>
    %4 = tpu.matmul %2, %1, %cst {dimension_numbers = #tpu.dot_dimension_numbers<[1], [0], [0], [1], [0, 0, 1, 1], [], []>} : vector<288x4xf32>, vector<4x256xf32>, vector<288x256xf32> -> vector<288x256xf32>
    %cst_6 = arith.constant 0.000000e+00 : f32
    %5 = vector.broadcast %cst_6 : f32 to vector<32x64xf32>
    %6 = vector.extract_strided_slice %4 {offsets = [0, 0], sizes = [32, 256], strides = [1, 1]} : vector<288x256xf32> to vector<32x256xf32>
    %c0_7 = arith.constant 0 : index
    %c0_8 = arith.constant 0 : index
    %c0_9 = arith.constant 0 : index
    %7 = vector.load %arg3[%c0_7, %c0_8, %c0_9] : memref<9x256x64xf32, #tpu.memory_space<vmem>>, vector<1x256x64xf32>
    %8 = vector.shape_cast %7 : vector<1x256x64xf32> to vector<256x64xf32>
    %cst_10 = arith.constant dense<0.000000e+00> : vector<32x64xf32>
    %9 = tpu.matmul %6, %8, %cst_10 {dimension_numbers = #tpu.dot_dimension_numbers<[1], [0], [0], [1], [0, 0, 1, 1], [], []>} : vector<32x256xf32>, vector<256x64xf32>, vector<32x64xf32> -> vector<32x64xf32>
    %10 = arith.addf %5, %9 : vector<32x64xf32>
    %11 = vector.extract_strided_slice %4 {offsets = [32, 0], sizes = [32, 256], strides = [1, 1]} : vector<288x256xf32> to vector<32x256xf32>
    %c1 = arith.constant 1 : index
    %c0_11 = arith.constant 0 : index
    %c0_12 = arith.constant 0 : index
    %12 = vector.load %arg3[%c1, %c0_11, %c0_12] : memref<9x256x64xf32, #tpu.memory_space<vmem>>, vector<1x256x64xf32>
    %13 = vector.shape_cast %12 : vector<1x256x64xf32> to vector<256x64xf32>
    %cst_13 = arith.constant dense<0.000000e+00> : vector<32x64xf32>
    %14 = tpu.matmul %11, %13, %cst_13 {dimension_numbers = #tpu.dot_dimension_numbers<[1], [0], [0], [1], [0, 0, 1, 1], [], []>} : vector<32x256xf32>, vector<256x64xf32>, vector<32x64xf32> -> vector<32x64xf32>
    %15 = arith.addf %10, %14 : vector<32x64xf32>
    %16 = vector.extract_strided_slice %4 {offsets = [64, 0], sizes = [32, 256], strides = [1, 1]} : vector<288x256xf32> to vector<32x256xf32>
    %c2 = arith.constant 2 : index
    %c0_14 = arith.constant 0 : index
    %c0_15 = arith.constant 0 : index
    %17 = vector.load %arg3[%c2, %c0_14, %c0_15] : memref<9x256x64xf32, #tpu.memory_space<vmem>>, vector<1x256x64xf32>
    %18 = vector.shape_cast %17 : vector<1x256x64xf32> to vector<256x64xf32>
    %cst_16 = arith.constant dense<0.000000e+00> : vector<32x64xf32>
    %19 = tpu.matmul %16, %18, %cst_16 {dimension_numbers = #tpu.dot_dimension_numbers<[1], [0], [0], [1], [0, 0, 1, 1], [], []>} : vector<32x256xf32>, vector<256x64xf32>, vector<32x64xf32> -> vector<32x64xf32>
    %20 = arith.addf %15, %19 : vector<32x64xf32>
    %21 = vector.extract_strided_slice %4 {offsets = [96, 0], sizes = [32, 256], strides = [1, 1]} : vector<288x256xf32> to vector<32x256xf32>
    %c3 = arith.constant 3 : index
    %c0_17 = arith.constant 0 : index
    %c0_18 = arith.constant 0 : index
    %22 = vector.load %arg3[%c3, %c0_17, %c0_18] : memref<9x256x64xf32, #tpu.memory_space<vmem>>, vector<1x256x64xf32>
    %23 = vector.shape_cast %22 : vector<1x256x64xf32> to vector<256x64xf32>
    %cst_19 = arith.constant dense<0.000000e+00> : vector<32x64xf32>
    %24 = tpu.matmul %21, %23, %cst_19 {dimension_numbers = #tpu.dot_dimension_numbers<[1], [0], [0], [1], [0, 0, 1, 1], [], []>} : vector<32x256xf32>, vector<256x64xf32>, vector<32x64xf32> -> vector<32x64xf32>
    %25 = arith.addf %20, %24 : vector<32x64xf32>
    %26 = vector.extract_strided_slice %4 {offsets = [128, 0], sizes = [32, 256], strides = [1, 1]} : vector<288x256xf32> to vector<32x256xf32>
    %c4 = arith.constant 4 : index
    %c0_20 = arith.constant 0 : index
    %c0_21 = arith.constant 0 : index
    %27 = vector.load %arg3[%c4, %c0_20, %c0_21] : memref<9x256x64xf32, #tpu.memory_space<vmem>>, vector<1x256x64xf32>
    %28 = vector.shape_cast %27 : vector<1x256x64xf32> to vector<256x64xf32>
    %cst_22 = arith.constant dense<0.000000e+00> : vector<32x64xf32>
    %29 = tpu.matmul %26, %28, %cst_22 {dimension_numbers = #tpu.dot_dimension_numbers<[1], [0], [0], [1], [0, 0, 1, 1], [], []>} : vector<32x256xf32>, vector<256x64xf32>, vector<32x64xf32> -> vector<32x64xf32>
    %30 = arith.addf %25, %29 : vector<32x64xf32>
    %31 = vector.extract_strided_slice %4 {offsets = [160, 0], sizes = [32, 256], strides = [1, 1]} : vector<288x256xf32> to vector<32x256xf32>
    %c5 = arith.constant 5 : index
    %c0_23 = arith.constant 0 : index
    %c0_24 = arith.constant 0 : index
    %32 = vector.load %arg3[%c5, %c0_23, %c0_24] : memref<9x256x64xf32, #tpu.memory_space<vmem>>, vector<1x256x64xf32>
    %33 = vector.shape_cast %32 : vector<1x256x64xf32> to vector<256x64xf32>
    %cst_25 = arith.constant dense<0.000000e+00> : vector<32x64xf32>
    %34 = tpu.matmul %31, %33, %cst_25 {dimension_numbers = #tpu.dot_dimension_numbers<[1], [0], [0], [1], [0, 0, 1, 1], [], []>} : vector<32x256xf32>, vector<256x64xf32>, vector<32x64xf32> -> vector<32x64xf32>
    %35 = arith.addf %30, %34 : vector<32x64xf32>
    %36 = vector.extract_strided_slice %4 {offsets = [192, 0], sizes = [32, 256], strides = [1, 1]} : vector<288x256xf32> to vector<32x256xf32>
    %c6 = arith.constant 6 : index
    %c0_26 = arith.constant 0 : index
    %c0_27 = arith.constant 0 : index
    %37 = vector.load %arg3[%c6, %c0_26, %c0_27] : memref<9x256x64xf32, #tpu.memory_space<vmem>>, vector<1x256x64xf32>
    %38 = vector.shape_cast %37 : vector<1x256x64xf32> to vector<256x64xf32>
    %cst_28 = arith.constant dense<0.000000e+00> : vector<32x64xf32>
    %39 = tpu.matmul %36, %38, %cst_28 {dimension_numbers = #tpu.dot_dimension_numbers<[1], [0], [0], [1], [0, 0, 1, 1], [], []>} : vector<32x256xf32>, vector<256x64xf32>, vector<32x64xf32> -> vector<32x64xf32>
    %40 = arith.addf %35, %39 : vector<32x64xf32>
    %41 = vector.extract_strided_slice %4 {offsets = [224, 0], sizes = [32, 256], strides = [1, 1]} : vector<288x256xf32> to vector<32x256xf32>
    %c7 = arith.constant 7 : index
    %c0_29 = arith.constant 0 : index
    %c0_30 = arith.constant 0 : index
    %42 = vector.load %arg3[%c7, %c0_29, %c0_30] : memref<9x256x64xf32, #tpu.memory_space<vmem>>, vector<1x256x64xf32>
    %43 = vector.shape_cast %42 : vector<1x256x64xf32> to vector<256x64xf32>
    %cst_31 = arith.constant dense<0.000000e+00> : vector<32x64xf32>
    %44 = tpu.matmul %41, %43, %cst_31 {dimension_numbers = #tpu.dot_dimension_numbers<[1], [0], [0], [1], [0, 0, 1, 1], [], []>} : vector<32x256xf32>, vector<256x64xf32>, vector<32x64xf32> -> vector<32x64xf32>
    %45 = arith.addf %40, %44 : vector<32x64xf32>
    %46 = vector.extract_strided_slice %4 {offsets = [256, 0], sizes = [32, 256], strides = [1, 1]} : vector<288x256xf32> to vector<32x256xf32>
    %c8 = arith.constant 8 : index
    %c0_32 = arith.constant 0 : index
    %c0_33 = arith.constant 0 : index
    %47 = vector.load %arg3[%c8, %c0_32, %c0_33] : memref<9x256x64xf32, #tpu.memory_space<vmem>>, vector<1x256x64xf32>
    %48 = vector.shape_cast %47 : vector<1x256x64xf32> to vector<256x64xf32>
    %cst_34 = arith.constant dense<0.000000e+00> : vector<32x64xf32>
    %49 = tpu.matmul %46, %48, %cst_34 {dimension_numbers = #tpu.dot_dimension_numbers<[1], [0], [0], [1], [0, 0, 1, 1], [], []>} : vector<32x256xf32>, vector<256x64xf32>, vector<32x64xf32> -> vector<32x64xf32>
    %50 = arith.addf %45, %49 : vector<32x64xf32>
    %51 = vector.broadcast %3 : vector<32x1xf32> to vector<32x64xf32>
    %52 = arith.addf %50, %51 : vector<32x64xf32>
    %cst_35 = arith.constant 0.000000e+00 : f32
    %53 = vector.broadcast %cst_35 : f32 to vector<32x64xf32>
    %54 = arith.maximumf %52, %53 : vector<32x64xf32>
    %c0_36 = arith.constant 0 : index
    %c0_37 = arith.constant 0 : index
    %55 = vector.load %arg5[%c0_36, %c0_37] : memref<288x32xf32, #tpu.memory_space<vmem>>, vector<288x32xf32>
    %c0_38 = arith.constant 0 : index
    %c0_39 = arith.constant 0 : index
    %56 = vector.load %arg7[%c0_38, %c0_39] : memref<32x1xf32, #tpu.memory_space<vmem>>, vector<32x1xf32>
    %cst_40 = arith.constant dense<0.000000e+00> : vector<288x64xf32>
    %57 = tpu.matmul %55, %54, %cst_40 {dimension_numbers = #tpu.dot_dimension_numbers<[1], [0], [0], [1], [0, 0, 1, 1], [], []>} : vector<288x32xf32>, vector<32x64xf32>, vector<288x64xf32> -> vector<288x64xf32>
    %cst_41 = arith.constant 0.000000e+00 : f32
    %58 = vector.broadcast %cst_41 : f32 to vector<32x16xf32>
    %59 = vector.extract_strided_slice %57 {offsets = [0, 0], sizes = [32, 64], strides = [1, 1]} : vector<288x64xf32> to vector<32x64xf32>
    %c0_42 = arith.constant 0 : index
    %c0_43 = arith.constant 0 : index
    %c0_44 = arith.constant 0 : index
    %60 = vector.load %arg6[%c0_42, %c0_43, %c0_44] : memref<9x64x16xf32, #tpu.memory_space<vmem>>, vector<1x64x16xf32>
    %61 = vector.shape_cast %60 : vector<1x64x16xf32> to vector<64x16xf32>
    %cst_45 = arith.constant dense<0.000000e+00> : vector<32x16xf32>
    %62 = tpu.matmul %59, %61, %cst_45 {dimension_numbers = #tpu.dot_dimension_numbers<[1], [0], [0], [1], [0, 0, 1, 1], [], []>} : vector<32x64xf32>, vector<64x16xf32>, vector<32x16xf32> -> vector<32x16xf32>
    %63 = arith.addf %58, %62 : vector<32x16xf32>
    %64 = vector.extract_strided_slice %57 {offsets = [32, 0], sizes = [32, 64], strides = [1, 1]} : vector<288x64xf32> to vector<32x64xf32>
    %c1_46 = arith.constant 1 : index
    %c0_47 = arith.constant 0 : index
    %c0_48 = arith.constant 0 : index
    %65 = vector.load %arg6[%c1_46, %c0_47, %c0_48] : memref<9x64x16xf32, #tpu.memory_space<vmem>>, vector<1x64x16xf32>
    %66 = vector.shape_cast %65 : vector<1x64x16xf32> to vector<64x16xf32>
    %cst_49 = arith.constant dense<0.000000e+00> : vector<32x16xf32>
    %67 = tpu.matmul %64, %66, %cst_49 {dimension_numbers = #tpu.dot_dimension_numbers<[1], [0], [0], [1], [0, 0, 1, 1], [], []>} : vector<32x64xf32>, vector<64x16xf32>, vector<32x16xf32> -> vector<32x16xf32>
    %68 = arith.addf %63, %67 : vector<32x16xf32>
    %69 = vector.extract_strided_slice %57 {offsets = [64, 0], sizes = [32, 64], strides = [1, 1]} : vector<288x64xf32> to vector<32x64xf32>
    %c2_50 = arith.constant 2 : index
    %c0_51 = arith.constant 0 : index
    %c0_52 = arith.constant 0 : index
    %70 = vector.load %arg6[%c2_50, %c0_51, %c0_52] : memref<9x64x16xf32, #tpu.memory_space<vmem>>, vector<1x64x16xf32>
    %71 = vector.shape_cast %70 : vector<1x64x16xf32> to vector<64x16xf32>
    %cst_53 = arith.constant dense<0.000000e+00> : vector<32x16xf32>
    %72 = tpu.matmul %69, %71, %cst_53 {dimension_numbers = #tpu.dot_dimension_numbers<[1], [0], [0], [1], [0, 0, 1, 1], [], []>} : vector<32x64xf32>, vector<64x16xf32>, vector<32x16xf32> -> vector<32x16xf32>
    %73 = arith.addf %68, %72 : vector<32x16xf32>
    %74 = vector.extract_strided_slice %57 {offsets = [96, 0], sizes = [32, 64], strides = [1, 1]} : vector<288x64xf32> to vector<32x64xf32>
    %c3_54 = arith.constant 3 : index
    %c0_55 = arith.constant 0 : index
    %c0_56 = arith.constant 0 : index
    %75 = vector.load %arg6[%c3_54, %c0_55, %c0_56] : memref<9x64x16xf32, #tpu.memory_space<vmem>>, vector<1x64x16xf32>
    %76 = vector.shape_cast %75 : vector<1x64x16xf32> to vector<64x16xf32>
    %cst_57 = arith.constant dense<0.000000e+00> : vector<32x16xf32>
    %77 = tpu.matmul %74, %76, %cst_57 {dimension_numbers = #tpu.dot_dimension_numbers<[1], [0], [0], [1], [0, 0, 1, 1], [], []>} : vector<32x64xf32>, vector<64x16xf32>, vector<32x16xf32> -> vector<32x16xf32>
    %78 = arith.addf %73, %77 : vector<32x16xf32>
    %79 = vector.extract_strided_slice %57 {offsets = [128, 0], sizes = [32, 64], strides = [1, 1]} : vector<288x64xf32> to vector<32x64xf32>
    %c4_58 = arith.constant 4 : index
    %c0_59 = arith.constant 0 : index
    %c0_60 = arith.constant 0 : index
    %80 = vector.load %arg6[%c4_58, %c0_59, %c0_60] : memref<9x64x16xf32, #tpu.memory_space<vmem>>, vector<1x64x16xf32>
    %81 = vector.shape_cast %80 : vector<1x64x16xf32> to vector<64x16xf32>
    %cst_61 = arith.constant dense<0.000000e+00> : vector<32x16xf32>
    %82 = tpu.matmul %79, %81, %cst_61 {dimension_numbers = #tpu.dot_dimension_numbers<[1], [0], [0], [1], [0, 0, 1, 1], [], []>} : vector<32x64xf32>, vector<64x16xf32>, vector<32x16xf32> -> vector<32x16xf32>
    %83 = arith.addf %78, %82 : vector<32x16xf32>
    %84 = vector.extract_strided_slice %57 {offsets = [160, 0], sizes = [32, 64], strides = [1, 1]} : vector<288x64xf32> to vector<32x64xf32>
    %c5_62 = arith.constant 5 : index
    %c0_63 = arith.constant 0 : index
    %c0_64 = arith.constant 0 : index
    %85 = vector.load %arg6[%c5_62, %c0_63, %c0_64] : memref<9x64x16xf32, #tpu.memory_space<vmem>>, vector<1x64x16xf32>
    %86 = vector.shape_cast %85 : vector<1x64x16xf32> to vector<64x16xf32>
    %cst_65 = arith.constant dense<0.000000e+00> : vector<32x16xf32>
    %87 = tpu.matmul %84, %86, %cst_65 {dimension_numbers = #tpu.dot_dimension_numbers<[1], [0], [0], [1], [0, 0, 1, 1], [], []>} : vector<32x64xf32>, vector<64x16xf32>, vector<32x16xf32> -> vector<32x16xf32>
    %88 = arith.addf %83, %87 : vector<32x16xf32>
    %89 = vector.extract_strided_slice %57 {offsets = [192, 0], sizes = [32, 64], strides = [1, 1]} : vector<288x64xf32> to vector<32x64xf32>
    %c6_66 = arith.constant 6 : index
    %c0_67 = arith.constant 0 : index
    %c0_68 = arith.constant 0 : index
    %90 = vector.load %arg6[%c6_66, %c0_67, %c0_68] : memref<9x64x16xf32, #tpu.memory_space<vmem>>, vector<1x64x16xf32>
    %91 = vector.shape_cast %90 : vector<1x64x16xf32> to vector<64x16xf32>
    %cst_69 = arith.constant dense<0.000000e+00> : vector<32x16xf32>
    %92 = tpu.matmul %89, %91, %cst_69 {dimension_numbers = #tpu.dot_dimension_numbers<[1], [0], [0], [1], [0, 0, 1, 1], [], []>} : vector<32x64xf32>, vector<64x16xf32>, vector<32x16xf32> -> vector<32x16xf32>
    %93 = arith.addf %88, %92 : vector<32x16xf32>
    %94 = vector.extract_strided_slice %57 {offsets = [224, 0], sizes = [32, 64], strides = [1, 1]} : vector<288x64xf32> to vector<32x64xf32>
    %c7_70 = arith.constant 7 : index
    %c0_71 = arith.constant 0 : index
    %c0_72 = arith.constant 0 : index
    %95 = vector.load %arg6[%c7_70, %c0_71, %c0_72] : memref<9x64x16xf32, #tpu.memory_space<vmem>>, vector<1x64x16xf32>
    %96 = vector.shape_cast %95 : vector<1x64x16xf32> to vector<64x16xf32>
    %cst_73 = arith.constant dense<0.000000e+00> : vector<32x16xf32>
    %97 = tpu.matmul %94, %96, %cst_73 {dimension_numbers = #tpu.dot_dimension_numbers<[1], [0], [0], [1], [0, 0, 1, 1], [], []>} : vector<32x64xf32>, vector<64x16xf32>, vector<32x16xf32> -> vector<32x16xf32>
    %98 = arith.addf %93, %97 : vector<32x16xf32>
    %99 = vector.extract_strided_slice %57 {offsets = [256, 0], sizes = [32, 64], strides = [1, 1]} : vector<288x64xf32> to vector<32x64xf32>
    %c8_74 = arith.constant 8 : index
    %c0_75 = arith.constant 0 : index
    %c0_76 = arith.constant 0 : index
    %100 = vector.load %arg6[%c8_74, %c0_75, %c0_76] : memref<9x64x16xf32, #tpu.memory_space<vmem>>, vector<1x64x16xf32>
    %101 = vector.shape_cast %100 : vector<1x64x16xf32> to vector<64x16xf32>
    %cst_77 = arith.constant dense<0.000000e+00> : vector<32x16xf32>
    %102 = tpu.matmul %99, %101, %cst_77 {dimension_numbers = #tpu.dot_dimension_numbers<[1], [0], [0], [1], [0, 0, 1, 1], [], []>} : vector<32x64xf32>, vector<64x16xf32>, vector<32x16xf32> -> vector<32x16xf32>
    %103 = arith.addf %98, %102 : vector<32x16xf32>
    %104 = vector.broadcast %56 : vector<32x1xf32> to vector<32x16xf32>
    %105 = arith.addf %103, %104 : vector<32x16xf32>
    %cst_78 = arith.constant 0.000000e+00 : f32
    %106 = vector.broadcast %cst_78 : f32 to vector<32x16xf32>
    %107 = arith.maximumf %105, %106 : vector<32x16xf32>
    %c0_79 = arith.constant 0 : index
    %c0_80 = arith.constant 0 : index
    %108 = vector.load %arg8[%c0_79, %c0_80] : memref<144x32xf32, #tpu.memory_space<vmem>>, vector<144x32xf32>
    %c0_81 = arith.constant 0 : index
    %c0_82 = arith.constant 0 : index
    %109 = vector.load %arg10[%c0_81, %c0_82] : memref<16x1xf32, #tpu.memory_space<vmem>>, vector<16x1xf32>
    %cst_83 = arith.constant dense<0.000000e+00> : vector<144x16xf32>
    %110 = tpu.matmul %108, %107, %cst_83 {dimension_numbers = #tpu.dot_dimension_numbers<[1], [0], [0], [1], [0, 0, 1, 1], [], []>} : vector<144x32xf32>, vector<32x16xf32>, vector<144x16xf32> -> vector<144x16xf32>
    %cst_84 = arith.constant 0.000000e+00 : f32
    %111 = vector.broadcast %cst_84 : f32 to vector<16x4xf32>
    %112 = vector.extract_strided_slice %110 {offsets = [0, 0], sizes = [16, 16], strides = [1, 1]} : vector<144x16xf32> to vector<16x16xf32>
    %c0_85 = arith.constant 0 : index
    %c0_86 = arith.constant 0 : index
    %c0_87 = arith.constant 0 : index
    %113 = vector.load %arg9[%c0_85, %c0_86, %c0_87] : memref<9x16x4xf32, #tpu.memory_space<vmem>>, vector<1x16x4xf32>
    %114 = vector.shape_cast %113 : vector<1x16x4xf32> to vector<16x4xf32>
    %cst_88 = arith.constant dense<0.000000e+00> : vector<16x4xf32>
    %115 = tpu.matmul %112, %114, %cst_88 {dimension_numbers = #tpu.dot_dimension_numbers<[1], [0], [0], [1], [0, 0, 1, 1], [], []>} : vector<16x16xf32>, vector<16x4xf32>, vector<16x4xf32> -> vector<16x4xf32>
    %116 = arith.addf %111, %115 : vector<16x4xf32>
    %117 = vector.extract_strided_slice %110 {offsets = [16, 0], sizes = [16, 16], strides = [1, 1]} : vector<144x16xf32> to vector<16x16xf32>
    %c1_89 = arith.constant 1 : index
    %c0_90 = arith.constant 0 : index
    %c0_91 = arith.constant 0 : index
    %118 = vector.load %arg9[%c1_89, %c0_90, %c0_91] : memref<9x16x4xf32, #tpu.memory_space<vmem>>, vector<1x16x4xf32>
    %119 = vector.shape_cast %118 : vector<1x16x4xf32> to vector<16x4xf32>
    %cst_92 = arith.constant dense<0.000000e+00> : vector<16x4xf32>
    %120 = tpu.matmul %117, %119, %cst_92 {dimension_numbers = #tpu.dot_dimension_numbers<[1], [0], [0], [1], [0, 0, 1, 1], [], []>} : vector<16x16xf32>, vector<16x4xf32>, vector<16x4xf32> -> vector<16x4xf32>
    %121 = arith.addf %116, %120 : vector<16x4xf32>
    %122 = vector.extract_strided_slice %110 {offsets = [32, 0], sizes = [16, 16], strides = [1, 1]} : vector<144x16xf32> to vector<16x16xf32>
    %c2_93 = arith.constant 2 : index
    %c0_94 = arith.constant 0 : index
    %c0_95 = arith.constant 0 : index
    %123 = vector.load %arg9[%c2_93, %c0_94, %c0_95] : memref<9x16x4xf32, #tpu.memory_space<vmem>>, vector<1x16x4xf32>
    %124 = vector.shape_cast %123 : vector<1x16x4xf32> to vector<16x4xf32>
    %cst_96 = arith.constant dense<0.000000e+00> : vector<16x4xf32>
    %125 = tpu.matmul %122, %124, %cst_96 {dimension_numbers = #tpu.dot_dimension_numbers<[1], [0], [0], [1], [0, 0, 1, 1], [], []>} : vector<16x16xf32>, vector<16x4xf32>, vector<16x4xf32> -> vector<16x4xf32>
    %126 = arith.addf %121, %125 : vector<16x4xf32>
    %127 = vector.extract_strided_slice %110 {offsets = [48, 0], sizes = [16, 16], strides = [1, 1]} : vector<144x16xf32> to vector<16x16xf32>
    %c3_97 = arith.constant 3 : index
    %c0_98 = arith.constant 0 : index
    %c0_99 = arith.constant 0 : index
    %128 = vector.load %arg9[%c3_97, %c0_98, %c0_99] : memref<9x16x4xf32, #tpu.memory_space<vmem>>, vector<1x16x4xf32>
    %129 = vector.shape_cast %128 : vector<1x16x4xf32> to vector<16x4xf32>
    %cst_100 = arith.constant dense<0.000000e+00> : vector<16x4xf32>
    %130 = tpu.matmul %127, %129, %cst_100 {dimension_numbers = #tpu.dot_dimension_numbers<[1], [0], [0], [1], [0, 0, 1, 1], [], []>} : vector<16x16xf32>, vector<16x4xf32>, vector<16x4xf32> -> vector<16x4xf32>
    %131 = arith.addf %126, %130 : vector<16x4xf32>
    %132 = vector.extract_strided_slice %110 {offsets = [64, 0], sizes = [16, 16], strides = [1, 1]} : vector<144x16xf32> to vector<16x16xf32>
    %c4_101 = arith.constant 4 : index
    %c0_102 = arith.constant 0 : index
    %c0_103 = arith.constant 0 : index
    %133 = vector.load %arg9[%c4_101, %c0_102, %c0_103] : memref<9x16x4xf32, #tpu.memory_space<vmem>>, vector<1x16x4xf32>
    %134 = vector.shape_cast %133 : vector<1x16x4xf32> to vector<16x4xf32>
    %cst_104 = arith.constant dense<0.000000e+00> : vector<16x4xf32>
    %135 = tpu.matmul %132, %134, %cst_104 {dimension_numbers = #tpu.dot_dimension_numbers<[1], [0], [0], [1], [0, 0, 1, 1], [], []>} : vector<16x16xf32>, vector<16x4xf32>, vector<16x4xf32> -> vector<16x4xf32>
    %136 = arith.addf %131, %135 : vector<16x4xf32>
    %137 = vector.extract_strided_slice %110 {offsets = [80, 0], sizes = [16, 16], strides = [1, 1]} : vector<144x16xf32> to vector<16x16xf32>
    %c5_105 = arith.constant 5 : index
    %c0_106 = arith.constant 0 : index
    %c0_107 = arith.constant 0 : index
    %138 = vector.load %arg9[%c5_105, %c0_106, %c0_107] : memref<9x16x4xf32, #tpu.memory_space<vmem>>, vector<1x16x4xf32>
    %139 = vector.shape_cast %138 : vector<1x16x4xf32> to vector<16x4xf32>
    %cst_108 = arith.constant dense<0.000000e+00> : vector<16x4xf32>
    %140 = tpu.matmul %137, %139, %cst_108 {dimension_numbers = #tpu.dot_dimension_numbers<[1], [0], [0], [1], [0, 0, 1, 1], [], []>} : vector<16x16xf32>, vector<16x4xf32>, vector<16x4xf32> -> vector<16x4xf32>
    %141 = arith.addf %136, %140 : vector<16x4xf32>
    %142 = vector.extract_strided_slice %110 {offsets = [96, 0], sizes = [16, 16], strides = [1, 1]} : vector<144x16xf32> to vector<16x16xf32>
    %c6_109 = arith.constant 6 : index
    %c0_110 = arith.constant 0 : index
    %c0_111 = arith.constant 0 : index
    %143 = vector.load %arg9[%c6_109, %c0_110, %c0_111] : memref<9x16x4xf32, #tpu.memory_space<vmem>>, vector<1x16x4xf32>
    %144 = vector.shape_cast %143 : vector<1x16x4xf32> to vector<16x4xf32>
    %cst_112 = arith.constant dense<0.000000e+00> : vector<16x4xf32>
    %145 = tpu.matmul %142, %144, %cst_112 {dimension_numbers = #tpu.dot_dimension_numbers<[1], [0], [0], [1], [0, 0, 1, 1], [], []>} : vector<16x16xf32>, vector<16x4xf32>, vector<16x4xf32> -> vector<16x4xf32>
    %146 = arith.addf %141, %145 : vector<16x4xf32>
    %147 = vector.extract_strided_slice %110 {offsets = [112, 0], sizes = [16, 16], strides = [1, 1]} : vector<144x16xf32> to vector<16x16xf32>
    %c7_113 = arith.constant 7 : index
    %c0_114 = arith.constant 0 : index
    %c0_115 = arith.constant 0 : index
    %148 = vector.load %arg9[%c7_113, %c0_114, %c0_115] : memref<9x16x4xf32, #tpu.memory_space<vmem>>, vector<1x16x4xf32>
    %149 = vector.shape_cast %148 : vector<1x16x4xf32> to vector<16x4xf32>
    %cst_116 = arith.constant dense<0.000000e+00> : vector<16x4xf32>
    %150 = tpu.matmul %147, %149, %cst_116 {dimension_numbers = #tpu.dot_dimension_numbers<[1], [0], [0], [1], [0, 0, 1, 1], [], []>} : vector<16x16xf32>, vector<16x4xf32>, vector<16x4xf32> -> vector<16x4xf32>
    %151 = arith.addf %146, %150 : vector<16x4xf32>
    %152 = vector.extract_strided_slice %110 {offsets = [128, 0], sizes = [16, 16], strides = [1, 1]} : vector<144x16xf32> to vector<16x16xf32>
    %c8_117 = arith.constant 8 : index
    %c0_118 = arith.constant 0 : index
    %c0_119 = arith.constant 0 : index
    %153 = vector.load %arg9[%c8_117, %c0_118, %c0_119] : memref<9x16x4xf32, #tpu.memory_space<vmem>>, vector<1x16x4xf32>
    %154 = vector.shape_cast %153 : vector<1x16x4xf32> to vector<16x4xf32>
    %cst_120 = arith.constant dense<0.000000e+00> : vector<16x4xf32>
    %155 = tpu.matmul %152, %154, %cst_120 {dimension_numbers = #tpu.dot_dimension_numbers<[1], [0], [0], [1], [0, 0, 1, 1], [], []>} : vector<16x16xf32>, vector<16x4xf32>, vector<16x4xf32> -> vector<16x4xf32>
    %156 = arith.addf %151, %155 : vector<16x4xf32>
    %157 = vector.broadcast %109 : vector<16x1xf32> to vector<16x4xf32>
    %158 = arith.addf %156, %157 : vector<16x4xf32>
    %cst_121 = arith.constant 0.000000e+00 : f32
    %159 = vector.broadcast %cst_121 : f32 to vector<16x4xf32>
    %160 = arith.maximumf %158, %159 : vector<16x4xf32>
    %c0_122 = arith.constant 0 : index
    %c0_123 = arith.constant 0 : index
    %161 = vector.load %arg11[%c0_122, %c0_123] : memref<72x16xf32, #tpu.memory_space<vmem>>, vector<72x16xf32>
    %c0_124 = arith.constant 0 : index
    %c0_125 = arith.constant 0 : index
    %162 = vector.load %arg13[%c0_124, %c0_125] : memref<8x1xf32, #tpu.memory_space<vmem>>, vector<8x1xf32>
    %cst_126 = arith.constant dense<0.000000e+00> : vector<72x4xf32>
    %163 = tpu.matmul %161, %160, %cst_126 {dimension_numbers = #tpu.dot_dimension_numbers<[1], [0], [0], [1], [0, 0, 1, 1], [], []>} : vector<72x16xf32>, vector<16x4xf32>, vector<72x4xf32> -> vector<72x4xf32>
    %cst_127 = arith.constant 0.000000e+00 : f32
    %164 = vector.broadcast %cst_127 : f32 to vector<8x1xf32>
    %165 = vector.extract_strided_slice %163 {offsets = [0, 0], sizes = [8, 4], strides = [1, 1]} : vector<72x4xf32> to vector<8x4xf32>
    %c0_128 = arith.constant 0 : index
    %c0_129 = arith.constant 0 : index
    %c0_130 = arith.constant 0 : index
    %166 = vector.load %arg12[%c0_128, %c0_129, %c0_130] : memref<9x1x4xf32, #tpu.memory_space<vmem>>, vector<1x1x4xf32>
    %167 = vector.shape_cast %166 : vector<1x1x4xf32> to vector<1x4xf32>
    %168 = vector.broadcast %167 : vector<1x4xf32> to vector<8x4xf32>
    %169 = arith.mulf %165, %168 : vector<8x4xf32>
    %cst_131 = arith.constant dense<0.000000e+00> : vector<8xf32>
    %170 = vector.multi_reduction <add>, %169, %cst_131 [1] : vector<8x4xf32> to vector<8xf32>
    %171 = vector.shape_cast %170 : vector<8xf32> to vector<8x1xf32>
    %172 = arith.addf %164, %171 : vector<8x1xf32>
    %173 = vector.extract_strided_slice %163 {offsets = [8, 0], sizes = [8, 4], strides = [1, 1]} : vector<72x4xf32> to vector<8x4xf32>
    %c1_132 = arith.constant 1 : index
    %c0_133 = arith.constant 0 : index
    %c0_134 = arith.constant 0 : index
    %174 = vector.load %arg12[%c1_132, %c0_133, %c0_134] : memref<9x1x4xf32, #tpu.memory_space<vmem>>, vector<1x1x4xf32>
    %175 = vector.shape_cast %174 : vector<1x1x4xf32> to vector<1x4xf32>
    %176 = vector.broadcast %175 : vector<1x4xf32> to vector<8x4xf32>
    %177 = arith.mulf %173, %176 : vector<8x4xf32>
    %cst_135 = arith.constant dense<0.000000e+00> : vector<8xf32>
    %178 = vector.multi_reduction <add>, %177, %cst_135 [1] : vector<8x4xf32> to vector<8xf32>
    %179 = vector.shape_cast %178 : vector<8xf32> to vector<8x1xf32>
    %180 = arith.addf %172, %179 : vector<8x1xf32>
    %181 = vector.extract_strided_slice %163 {offsets = [16, 0], sizes = [8, 4], strides = [1, 1]} : vector<72x4xf32> to vector<8x4xf32>
    %c2_136 = arith.constant 2 : index
    %c0_137 = arith.constant 0 : index
    %c0_138 = arith.constant 0 : index
    %182 = vector.load %arg12[%c2_136, %c0_137, %c0_138] : memref<9x1x4xf32, #tpu.memory_space<vmem>>, vector<1x1x4xf32>
    %183 = vector.shape_cast %182 : vector<1x1x4xf32> to vector<1x4xf32>
    %184 = vector.broadcast %183 : vector<1x4xf32> to vector<8x4xf32>
    %185 = arith.mulf %181, %184 : vector<8x4xf32>
    %cst_139 = arith.constant dense<0.000000e+00> : vector<8xf32>
    %186 = vector.multi_reduction <add>, %185, %cst_139 [1] : vector<8x4xf32> to vector<8xf32>
    %187 = vector.shape_cast %186 : vector<8xf32> to vector<8x1xf32>
    %188 = arith.addf %180, %187 : vector<8x1xf32>
    %189 = vector.extract_strided_slice %163 {offsets = [24, 0], sizes = [8, 4], strides = [1, 1]} : vector<72x4xf32> to vector<8x4xf32>
    %c3_140 = arith.constant 3 : index
    %c0_141 = arith.constant 0 : index
    %c0_142 = arith.constant 0 : index
    %190 = vector.load %arg12[%c3_140, %c0_141, %c0_142] : memref<9x1x4xf32, #tpu.memory_space<vmem>>, vector<1x1x4xf32>
    %191 = vector.shape_cast %190 : vector<1x1x4xf32> to vector<1x4xf32>
    %192 = vector.broadcast %191 : vector<1x4xf32> to vector<8x4xf32>
    %193 = arith.mulf %189, %192 : vector<8x4xf32>
    %cst_143 = arith.constant dense<0.000000e+00> : vector<8xf32>
    %194 = vector.multi_reduction <add>, %193, %cst_143 [1] : vector<8x4xf32> to vector<8xf32>
    %195 = vector.shape_cast %194 : vector<8xf32> to vector<8x1xf32>
    %196 = arith.addf %188, %195 : vector<8x1xf32>
    %197 = vector.extract_strided_slice %163 {offsets = [32, 0], sizes = [8, 4], strides = [1, 1]} : vector<72x4xf32> to vector<8x4xf32>
    %c4_144 = arith.constant 4 : index
    %c0_145 = arith.constant 0 : index
    %c0_146 = arith.constant 0 : index
    %198 = vector.load %arg12[%c4_144, %c0_145, %c0_146] : memref<9x1x4xf32, #tpu.memory_space<vmem>>, vector<1x1x4xf32>
    %199 = vector.shape_cast %198 : vector<1x1x4xf32> to vector<1x4xf32>
    %200 = vector.broadcast %199 : vector<1x4xf32> to vector<8x4xf32>
    %201 = arith.mulf %197, %200 : vector<8x4xf32>
    %cst_147 = arith.constant dense<0.000000e+00> : vector<8xf32>
    %202 = vector.multi_reduction <add>, %201, %cst_147 [1] : vector<8x4xf32> to vector<8xf32>
    %203 = vector.shape_cast %202 : vector<8xf32> to vector<8x1xf32>
    %204 = arith.addf %196, %203 : vector<8x1xf32>
    %205 = vector.extract_strided_slice %163 {offsets = [40, 0], sizes = [8, 4], strides = [1, 1]} : vector<72x4xf32> to vector<8x4xf32>
    %c5_148 = arith.constant 5 : index
    %c0_149 = arith.constant 0 : index
    %c0_150 = arith.constant 0 : index
    %206 = vector.load %arg12[%c5_148, %c0_149, %c0_150] : memref<9x1x4xf32, #tpu.memory_space<vmem>>, vector<1x1x4xf32>
    %207 = vector.shape_cast %206 : vector<1x1x4xf32> to vector<1x4xf32>
    %208 = vector.broadcast %207 : vector<1x4xf32> to vector<8x4xf32>
    %209 = arith.mulf %205, %208 : vector<8x4xf32>
    %cst_151 = arith.constant dense<0.000000e+00> : vector<8xf32>
    %210 = vector.multi_reduction <add>, %209, %cst_151 [1] : vector<8x4xf32> to vector<8xf32>
    %211 = vector.shape_cast %210 : vector<8xf32> to vector<8x1xf32>
    %212 = arith.addf %204, %211 : vector<8x1xf32>
    %213 = vector.extract_strided_slice %163 {offsets = [48, 0], sizes = [8, 4], strides = [1, 1]} : vector<72x4xf32> to vector<8x4xf32>
    %c6_152 = arith.constant 6 : index
    %c0_153 = arith.constant 0 : index
    %c0_154 = arith.constant 0 : index
    %214 = vector.load %arg12[%c6_152, %c0_153, %c0_154] : memref<9x1x4xf32, #tpu.memory_space<vmem>>, vector<1x1x4xf32>
    %215 = vector.shape_cast %214 : vector<1x1x4xf32> to vector<1x4xf32>
    %216 = vector.broadcast %215 : vector<1x4xf32> to vector<8x4xf32>
    %217 = arith.mulf %213, %216 : vector<8x4xf32>
    %cst_155 = arith.constant dense<0.000000e+00> : vector<8xf32>
    %218 = vector.multi_reduction <add>, %217, %cst_155 [1] : vector<8x4xf32> to vector<8xf32>
    %219 = vector.shape_cast %218 : vector<8xf32> to vector<8x1xf32>
    %220 = arith.addf %212, %219 : vector<8x1xf32>
    %221 = vector.extract_strided_slice %163 {offsets = [56, 0], sizes = [8, 4], strides = [1, 1]} : vector<72x4xf32> to vector<8x4xf32>
    %c7_156 = arith.constant 7 : index
    %c0_157 = arith.constant 0 : index
    %c0_158 = arith.constant 0 : index
    %222 = vector.load %arg12[%c7_156, %c0_157, %c0_158] : memref<9x1x4xf32, #tpu.memory_space<vmem>>, vector<1x1x4xf32>
    %223 = vector.shape_cast %222 : vector<1x1x4xf32> to vector<1x4xf32>
    %224 = vector.broadcast %223 : vector<1x4xf32> to vector<8x4xf32>
    %225 = arith.mulf %221, %224 : vector<8x4xf32>
    %cst_159 = arith.constant dense<0.000000e+00> : vector<8xf32>
    %226 = vector.multi_reduction <add>, %225, %cst_159 [1] : vector<8x4xf32> to vector<8xf32>
    %227 = vector.shape_cast %226 : vector<8xf32> to vector<8x1xf32>
    %228 = arith.addf %220, %227 : vector<8x1xf32>
    %229 = vector.extract_strided_slice %163 {offsets = [64, 0], sizes = [8, 4], strides = [1, 1]} : vector<72x4xf32> to vector<8x4xf32>
    %c8_160 = arith.constant 8 : index
    %c0_161 = arith.constant 0 : index
    %c0_162 = arith.constant 0 : index
    %230 = vector.load %arg12[%c8_160, %c0_161, %c0_162] : memref<9x1x4xf32, #tpu.memory_space<vmem>>, vector<1x1x4xf32>
    %231 = vector.shape_cast %230 : vector<1x1x4xf32> to vector<1x4xf32>
    %232 = vector.broadcast %231 : vector<1x4xf32> to vector<8x4xf32>
    %233 = arith.mulf %229, %232 : vector<8x4xf32>
    %cst_163 = arith.constant dense<0.000000e+00> : vector<8xf32>
    %234 = vector.multi_reduction <add>, %233, %cst_163 [1] : vector<8x4xf32> to vector<8xf32>
    %235 = vector.shape_cast %234 : vector<8xf32> to vector<8x1xf32>
    %236 = arith.addf %228, %235 : vector<8x1xf32>
    %237 = arith.addf %236, %162 : vector<8x1xf32>
    %cst_164 = arith.constant 0.000000e+00 : f32
    %238 = vector.broadcast %cst_164 : f32 to vector<8x1xf32>
    %239 = arith.maximumf %237, %238 : vector<8x1xf32>
    %cst_165 = arith.constant 6.000000e+00 : f32
    %240 = vector.broadcast %cst_165 : f32 to vector<8x1xf32>
    %241 = arith.minimumf %239, %240 : vector<8x1xf32>
    %c0_166 = arith.constant 0 : index
    %c0_167 = arith.constant 0 : index
    %242 = vector.load %arg14[%c0_166, %c0_167] : memref<144x8xf32, #tpu.memory_space<vmem>>, vector<144x8xf32>
    %c0_168 = arith.constant 0 : index
    %c0_169 = arith.constant 0 : index
    %243 = vector.load %arg16[%c0_168, %c0_169] : memref<16x1xf32, #tpu.memory_space<vmem>>, vector<16x1xf32>
    %cst_170 = arith.constant 0.000000e+00 : f32
    %244 = vector.broadcast %cst_170 : f32 to vector<16x4xf32>
    %c0_171 = arith.constant 0 : index
    %c0_172 = arith.constant 0 : index
    %c0_173 = arith.constant 0 : index
    %245 = vector.load %arg15[%c0_171, %c0_172, %c0_173] : memref<9x1x4xf32, #tpu.memory_space<vmem>>, vector<1x1x4xf32>
    %246 = vector.shape_cast %245 : vector<1x1x4xf32> to vector<1x4xf32>
    %247 = vector.broadcast %241 : vector<8x1xf32> to vector<8x4xf32>
    %248 = vector.broadcast %246 : vector<1x4xf32> to vector<8x4xf32>
    %249 = arith.mulf %247, %248 : vector<8x4xf32>
    %250 = vector.extract_strided_slice %242 {offsets = [0, 0], sizes = [16, 8], strides = [1, 1]} : vector<144x8xf32> to vector<16x8xf32>
    %cst_174 = arith.constant dense<0.000000e+00> : vector<16x4xf32>
    %251 = tpu.matmul %250, %249, %cst_174 {dimension_numbers = #tpu.dot_dimension_numbers<[1], [0], [0], [1], [0, 0, 1, 1], [], []>} : vector<16x8xf32>, vector<8x4xf32>, vector<16x4xf32> -> vector<16x4xf32>
    %252 = arith.addf %244, %251 : vector<16x4xf32>
    %c1_175 = arith.constant 1 : index
    %c0_176 = arith.constant 0 : index
    %c0_177 = arith.constant 0 : index
    %253 = vector.load %arg15[%c1_175, %c0_176, %c0_177] : memref<9x1x4xf32, #tpu.memory_space<vmem>>, vector<1x1x4xf32>
    %254 = vector.shape_cast %253 : vector<1x1x4xf32> to vector<1x4xf32>
    %255 = vector.broadcast %241 : vector<8x1xf32> to vector<8x4xf32>
    %256 = vector.broadcast %254 : vector<1x4xf32> to vector<8x4xf32>
    %257 = arith.mulf %255, %256 : vector<8x4xf32>
    %258 = vector.extract_strided_slice %242 {offsets = [16, 0], sizes = [16, 8], strides = [1, 1]} : vector<144x8xf32> to vector<16x8xf32>
    %cst_178 = arith.constant dense<0.000000e+00> : vector<16x4xf32>
    %259 = tpu.matmul %258, %257, %cst_178 {dimension_numbers = #tpu.dot_dimension_numbers<[1], [0], [0], [1], [0, 0, 1, 1], [], []>} : vector<16x8xf32>, vector<8x4xf32>, vector<16x4xf32> -> vector<16x4xf32>
    %260 = arith.addf %252, %259 : vector<16x4xf32>
    %c2_179 = arith.constant 2 : index
    %c0_180 = arith.constant 0 : index
    %c0_181 = arith.constant 0 : index
    %261 = vector.load %arg15[%c2_179, %c0_180, %c0_181] : memref<9x1x4xf32, #tpu.memory_space<vmem>>, vector<1x1x4xf32>
    %262 = vector.shape_cast %261 : vector<1x1x4xf32> to vector<1x4xf32>
    %263 = vector.broadcast %241 : vector<8x1xf32> to vector<8x4xf32>
    %264 = vector.broadcast %262 : vector<1x4xf32> to vector<8x4xf32>
    %265 = arith.mulf %263, %264 : vector<8x4xf32>
    %266 = vector.extract_strided_slice %242 {offsets = [32, 0], sizes = [16, 8], strides = [1, 1]} : vector<144x8xf32> to vector<16x8xf32>
    %cst_182 = arith.constant dense<0.000000e+00> : vector<16x4xf32>
    %267 = tpu.matmul %266, %265, %cst_182 {dimension_numbers = #tpu.dot_dimension_numbers<[1], [0], [0], [1], [0, 0, 1, 1], [], []>} : vector<16x8xf32>, vector<8x4xf32>, vector<16x4xf32> -> vector<16x4xf32>
    %268 = arith.addf %260, %267 : vector<16x4xf32>
    %c3_183 = arith.constant 3 : index
    %c0_184 = arith.constant 0 : index
    %c0_185 = arith.constant 0 : index
    %269 = vector.load %arg15[%c3_183, %c0_184, %c0_185] : memref<9x1x4xf32, #tpu.memory_space<vmem>>, vector<1x1x4xf32>
    %270 = vector.shape_cast %269 : vector<1x1x4xf32> to vector<1x4xf32>
    %271 = vector.broadcast %241 : vector<8x1xf32> to vector<8x4xf32>
    %272 = vector.broadcast %270 : vector<1x4xf32> to vector<8x4xf32>
    %273 = arith.mulf %271, %272 : vector<8x4xf32>
    %274 = vector.extract_strided_slice %242 {offsets = [48, 0], sizes = [16, 8], strides = [1, 1]} : vector<144x8xf32> to vector<16x8xf32>
    %cst_186 = arith.constant dense<0.000000e+00> : vector<16x4xf32>
    %275 = tpu.matmul %274, %273, %cst_186 {dimension_numbers = #tpu.dot_dimension_numbers<[1], [0], [0], [1], [0, 0, 1, 1], [], []>} : vector<16x8xf32>, vector<8x4xf32>, vector<16x4xf32> -> vector<16x4xf32>
    %276 = arith.addf %268, %275 : vector<16x4xf32>
    %c4_187 = arith.constant 4 : index
    %c0_188 = arith.constant 0 : index
    %c0_189 = arith.constant 0 : index
    %277 = vector.load %arg15[%c4_187, %c0_188, %c0_189] : memref<9x1x4xf32, #tpu.memory_space<vmem>>, vector<1x1x4xf32>
    %278 = vector.shape_cast %277 : vector<1x1x4xf32> to vector<1x4xf32>
    %279 = vector.broadcast %241 : vector<8x1xf32> to vector<8x4xf32>
    %280 = vector.broadcast %278 : vector<1x4xf32> to vector<8x4xf32>
    %281 = arith.mulf %279, %280 : vector<8x4xf32>
    %282 = vector.extract_strided_slice %242 {offsets = [64, 0], sizes = [16, 8], strides = [1, 1]} : vector<144x8xf32> to vector<16x8xf32>
    %cst_190 = arith.constant dense<0.000000e+00> : vector<16x4xf32>
    %283 = tpu.matmul %282, %281, %cst_190 {dimension_numbers = #tpu.dot_dimension_numbers<[1], [0], [0], [1], [0, 0, 1, 1], [], []>} : vector<16x8xf32>, vector<8x4xf32>, vector<16x4xf32> -> vector<16x4xf32>
    %284 = arith.addf %276, %283 : vector<16x4xf32>
    %c5_191 = arith.constant 5 : index
    %c0_192 = arith.constant 0 : index
    %c0_193 = arith.constant 0 : index
    %285 = vector.load %arg15[%c5_191, %c0_192, %c0_193] : memref<9x1x4xf32, #tpu.memory_space<vmem>>, vector<1x1x4xf32>
    %286 = vector.shape_cast %285 : vector<1x1x4xf32> to vector<1x4xf32>
    %287 = vector.broadcast %241 : vector<8x1xf32> to vector<8x4xf32>
    %288 = vector.broadcast %286 : vector<1x4xf32> to vector<8x4xf32>
    %289 = arith.mulf %287, %288 : vector<8x4xf32>
    %290 = vector.extract_strided_slice %242 {offsets = [80, 0], sizes = [16, 8], strides = [1, 1]} : vector<144x8xf32> to vector<16x8xf32>
    %cst_194 = arith.constant dense<0.000000e+00> : vector<16x4xf32>
    %291 = tpu.matmul %290, %289, %cst_194 {dimension_numbers = #tpu.dot_dimension_numbers<[1], [0], [0], [1], [0, 0, 1, 1], [], []>} : vector<16x8xf32>, vector<8x4xf32>, vector<16x4xf32> -> vector<16x4xf32>
    %292 = arith.addf %284, %291 : vector<16x4xf32>
    %c6_195 = arith.constant 6 : index
    %c0_196 = arith.constant 0 : index
    %c0_197 = arith.constant 0 : index
    %293 = vector.load %arg15[%c6_195, %c0_196, %c0_197] : memref<9x1x4xf32, #tpu.memory_space<vmem>>, vector<1x1x4xf32>
    %294 = vector.shape_cast %293 : vector<1x1x4xf32> to vector<1x4xf32>
    %295 = vector.broadcast %241 : vector<8x1xf32> to vector<8x4xf32>
    %296 = vector.broadcast %294 : vector<1x4xf32> to vector<8x4xf32>
    %297 = arith.mulf %295, %296 : vector<8x4xf32>
    %298 = vector.extract_strided_slice %242 {offsets = [96, 0], sizes = [16, 8], strides = [1, 1]} : vector<144x8xf32> to vector<16x8xf32>
    %cst_198 = arith.constant dense<0.000000e+00> : vector<16x4xf32>
    %299 = tpu.matmul %298, %297, %cst_198 {dimension_numbers = #tpu.dot_dimension_numbers<[1], [0], [0], [1], [0, 0, 1, 1], [], []>} : vector<16x8xf32>, vector<8x4xf32>, vector<16x4xf32> -> vector<16x4xf32>
    %300 = arith.addf %292, %299 : vector<16x4xf32>
    %c7_199 = arith.constant 7 : index
    %c0_200 = arith.constant 0 : index
    %c0_201 = arith.constant 0 : index
    %301 = vector.load %arg15[%c7_199, %c0_200, %c0_201] : memref<9x1x4xf32, #tpu.memory_space<vmem>>, vector<1x1x4xf32>
    %302 = vector.shape_cast %301 : vector<1x1x4xf32> to vector<1x4xf32>
    %303 = vector.broadcast %241 : vector<8x1xf32> to vector<8x4xf32>
    %304 = vector.broadcast %302 : vector<1x4xf32> to vector<8x4xf32>
    %305 = arith.mulf %303, %304 : vector<8x4xf32>
    %306 = vector.extract_strided_slice %242 {offsets = [112, 0], sizes = [16, 8], strides = [1, 1]} : vector<144x8xf32> to vector<16x8xf32>
    %cst_202 = arith.constant dense<0.000000e+00> : vector<16x4xf32>
    %307 = tpu.matmul %306, %305, %cst_202 {dimension_numbers = #tpu.dot_dimension_numbers<[1], [0], [0], [1], [0, 0, 1, 1], [], []>} : vector<16x8xf32>, vector<8x4xf32>, vector<16x4xf32> -> vector<16x4xf32>
    %308 = arith.addf %300, %307 : vector<16x4xf32>
    %c8_203 = arith.constant 8 : index
    %c0_204 = arith.constant 0 : index
    %c0_205 = arith.constant 0 : index
    %309 = vector.load %arg15[%c8_203, %c0_204, %c0_205] : memref<9x1x4xf32, #tpu.memory_space<vmem>>, vector<1x1x4xf32>
    %310 = vector.shape_cast %309 : vector<1x1x4xf32> to vector<1x4xf32>
    %311 = vector.broadcast %241 : vector<8x1xf32> to vector<8x4xf32>
    %312 = vector.broadcast %310 : vector<1x4xf32> to vector<8x4xf32>
    %313 = arith.mulf %311, %312 : vector<8x4xf32>
    %314 = vector.extract_strided_slice %242 {offsets = [128, 0], sizes = [16, 8], strides = [1, 1]} : vector<144x8xf32> to vector<16x8xf32>
    %cst_206 = arith.constant dense<0.000000e+00> : vector<16x4xf32>
    %315 = tpu.matmul %314, %313, %cst_206 {dimension_numbers = #tpu.dot_dimension_numbers<[1], [0], [0], [1], [0, 0, 1, 1], [], []>} : vector<16x8xf32>, vector<8x4xf32>, vector<16x4xf32> -> vector<16x4xf32>
    %316 = arith.addf %308, %315 : vector<16x4xf32>
    %317 = vector.broadcast %243 : vector<16x1xf32> to vector<16x4xf32>
    %318 = arith.addf %316, %317 : vector<16x4xf32>
    %cst_207 = arith.constant 0.000000e+00 : f32
    %319 = vector.broadcast %cst_207 : f32 to vector<16x4xf32>
    %320 = arith.maximumf %318, %319 : vector<16x4xf32>
    %c0_208 = arith.constant 0 : index
    %c0_209 = arith.constant 0 : index
    %321 = vector.load %arg17[%c0_208, %c0_209] : memref<288x16xf32, #tpu.memory_space<vmem>>, vector<288x16xf32>
    %c0_210 = arith.constant 0 : index
    %c0_211 = arith.constant 0 : index
    %322 = vector.load %arg19[%c0_210, %c0_211] : memref<32x1xf32, #tpu.memory_space<vmem>>, vector<32x1xf32>
    %cst_212 = arith.constant dense<0.000000e+00> : vector<288x4xf32>
    %323 = tpu.matmul %321, %320, %cst_212 {dimension_numbers = #tpu.dot_dimension_numbers<[1], [0], [0], [1], [0, 0, 1, 1], [], []>} : vector<288x16xf32>, vector<16x4xf32>, vector<288x4xf32> -> vector<288x4xf32>
    %cst_213 = arith.constant 0.000000e+00 : f32
    %324 = vector.broadcast %cst_213 : f32 to vector<32x16xf32>
    %325 = vector.extract_strided_slice %323 {offsets = [0, 0], sizes = [32, 4], strides = [1, 1]} : vector<288x4xf32> to vector<32x4xf32>
    %c0_214 = arith.constant 0 : index
    %c0_215 = arith.constant 0 : index
    %c0_216 = arith.constant 0 : index
    %326 = vector.load %arg18[%c0_214, %c0_215, %c0_216] : memref<9x4x16xf32, #tpu.memory_space<vmem>>, vector<1x4x16xf32>
    %327 = vector.shape_cast %326 : vector<1x4x16xf32> to vector<4x16xf32>
    %cst_217 = arith.constant dense<0.000000e+00> : vector<32x16xf32>
    %328 = tpu.matmul %325, %327, %cst_217 {dimension_numbers = #tpu.dot_dimension_numbers<[1], [0], [0], [1], [0, 0, 1, 1], [], []>} : vector<32x4xf32>, vector<4x16xf32>, vector<32x16xf32> -> vector<32x16xf32>
    %329 = arith.addf %324, %328 : vector<32x16xf32>
    %330 = vector.extract_strided_slice %323 {offsets = [32, 0], sizes = [32, 4], strides = [1, 1]} : vector<288x4xf32> to vector<32x4xf32>
    %c1_218 = arith.constant 1 : index
    %c0_219 = arith.constant 0 : index
    %c0_220 = arith.constant 0 : index
    %331 = vector.load %arg18[%c1_218, %c0_219, %c0_220] : memref<9x4x16xf32, #tpu.memory_space<vmem>>, vector<1x4x16xf32>
    %332 = vector.shape_cast %331 : vector<1x4x16xf32> to vector<4x16xf32>
    %cst_221 = arith.constant dense<0.000000e+00> : vector<32x16xf32>
    %333 = tpu.matmul %330, %332, %cst_221 {dimension_numbers = #tpu.dot_dimension_numbers<[1], [0], [0], [1], [0, 0, 1, 1], [], []>} : vector<32x4xf32>, vector<4x16xf32>, vector<32x16xf32> -> vector<32x16xf32>
    %334 = arith.addf %329, %333 : vector<32x16xf32>
    %335 = vector.extract_strided_slice %323 {offsets = [64, 0], sizes = [32, 4], strides = [1, 1]} : vector<288x4xf32> to vector<32x4xf32>
    %c2_222 = arith.constant 2 : index
    %c0_223 = arith.constant 0 : index
    %c0_224 = arith.constant 0 : index
    %336 = vector.load %arg18[%c2_222, %c0_223, %c0_224] : memref<9x4x16xf32, #tpu.memory_space<vmem>>, vector<1x4x16xf32>
    %337 = vector.shape_cast %336 : vector<1x4x16xf32> to vector<4x16xf32>
    %cst_225 = arith.constant dense<0.000000e+00> : vector<32x16xf32>
    %338 = tpu.matmul %335, %337, %cst_225 {dimension_numbers = #tpu.dot_dimension_numbers<[1], [0], [0], [1], [0, 0, 1, 1], [], []>} : vector<32x4xf32>, vector<4x16xf32>, vector<32x16xf32> -> vector<32x16xf32>
    %339 = arith.addf %334, %338 : vector<32x16xf32>
    %340 = vector.extract_strided_slice %323 {offsets = [96, 0], sizes = [32, 4], strides = [1, 1]} : vector<288x4xf32> to vector<32x4xf32>
    %c3_226 = arith.constant 3 : index
    %c0_227 = arith.constant 0 : index
    %c0_228 = arith.constant 0 : index
    %341 = vector.load %arg18[%c3_226, %c0_227, %c0_228] : memref<9x4x16xf32, #tpu.memory_space<vmem>>, vector<1x4x16xf32>
    %342 = vector.shape_cast %341 : vector<1x4x16xf32> to vector<4x16xf32>
    %cst_229 = arith.constant dense<0.000000e+00> : vector<32x16xf32>
    %343 = tpu.matmul %340, %342, %cst_229 {dimension_numbers = #tpu.dot_dimension_numbers<[1], [0], [0], [1], [0, 0, 1, 1], [], []>} : vector<32x4xf32>, vector<4x16xf32>, vector<32x16xf32> -> vector<32x16xf32>
    %344 = arith.addf %339, %343 : vector<32x16xf32>
    %345 = vector.extract_strided_slice %323 {offsets = [128, 0], sizes = [32, 4], strides = [1, 1]} : vector<288x4xf32> to vector<32x4xf32>
    %c4_230 = arith.constant 4 : index
    %c0_231 = arith.constant 0 : index
    %c0_232 = arith.constant 0 : index
    %346 = vector.load %arg18[%c4_230, %c0_231, %c0_232] : memref<9x4x16xf32, #tpu.memory_space<vmem>>, vector<1x4x16xf32>
    %347 = vector.shape_cast %346 : vector<1x4x16xf32> to vector<4x16xf32>
    %cst_233 = arith.constant dense<0.000000e+00> : vector<32x16xf32>
    %348 = tpu.matmul %345, %347, %cst_233 {dimension_numbers = #tpu.dot_dimension_numbers<[1], [0], [0], [1], [0, 0, 1, 1], [], []>} : vector<32x4xf32>, vector<4x16xf32>, vector<32x16xf32> -> vector<32x16xf32>
    %349 = arith.addf %344, %348 : vector<32x16xf32>
    %350 = vector.extract_strided_slice %323 {offsets = [160, 0], sizes = [32, 4], strides = [1, 1]} : vector<288x4xf32> to vector<32x4xf32>
    %c5_234 = arith.constant 5 : index
    %c0_235 = arith.constant 0 : index
    %c0_236 = arith.constant 0 : index
    %351 = vector.load %arg18[%c5_234, %c0_235, %c0_236] : memref<9x4x16xf32, #tpu.memory_space<vmem>>, vector<1x4x16xf32>
    %352 = vector.shape_cast %351 : vector<1x4x16xf32> to vector<4x16xf32>
    %cst_237 = arith.constant dense<0.000000e+00> : vector<32x16xf32>
    %353 = tpu.matmul %350, %352, %cst_237 {dimension_numbers = #tpu.dot_dimension_numbers<[1], [0], [0], [1], [0, 0, 1, 1], [], []>} : vector<32x4xf32>, vector<4x16xf32>, vector<32x16xf32> -> vector<32x16xf32>
    %354 = arith.addf %349, %353 : vector<32x16xf32>
    %355 = vector.extract_strided_slice %323 {offsets = [192, 0], sizes = [32, 4], strides = [1, 1]} : vector<288x4xf32> to vector<32x4xf32>
    %c6_238 = arith.constant 6 : index
    %c0_239 = arith.constant 0 : index
    %c0_240 = arith.constant 0 : index
    %356 = vector.load %arg18[%c6_238, %c0_239, %c0_240] : memref<9x4x16xf32, #tpu.memory_space<vmem>>, vector<1x4x16xf32>
    %357 = vector.shape_cast %356 : vector<1x4x16xf32> to vector<4x16xf32>
    %cst_241 = arith.constant dense<0.000000e+00> : vector<32x16xf32>
    %358 = tpu.matmul %355, %357, %cst_241 {dimension_numbers = #tpu.dot_dimension_numbers<[1], [0], [0], [1], [0, 0, 1, 1], [], []>} : vector<32x4xf32>, vector<4x16xf32>, vector<32x16xf32> -> vector<32x16xf32>
    %359 = arith.addf %354, %358 : vector<32x16xf32>
    %360 = vector.extract_strided_slice %323 {offsets = [224, 0], sizes = [32, 4], strides = [1, 1]} : vector<288x4xf32> to vector<32x4xf32>
    %c7_242 = arith.constant 7 : index
    %c0_243 = arith.constant 0 : index
    %c0_244 = arith.constant 0 : index
    %361 = vector.load %arg18[%c7_242, %c0_243, %c0_244] : memref<9x4x16xf32, #tpu.memory_space<vmem>>, vector<1x4x16xf32>
    %362 = vector.shape_cast %361 : vector<1x4x16xf32> to vector<4x16xf32>
    %cst_245 = arith.constant dense<0.000000e+00> : vector<32x16xf32>
    %363 = tpu.matmul %360, %362, %cst_245 {dimension_numbers = #tpu.dot_dimension_numbers<[1], [0], [0], [1], [0, 0, 1, 1], [], []>} : vector<32x4xf32>, vector<4x16xf32>, vector<32x16xf32> -> vector<32x16xf32>
    %364 = arith.addf %359, %363 : vector<32x16xf32>
    %365 = vector.extract_strided_slice %323 {offsets = [256, 0], sizes = [32, 4], strides = [1, 1]} : vector<288x4xf32> to vector<32x4xf32>
    %c8_246 = arith.constant 8 : index
    %c0_247 = arith.constant 0 : index
    %c0_248 = arith.constant 0 : index
    %366 = vector.load %arg18[%c8_246, %c0_247, %c0_248] : memref<9x4x16xf32, #tpu.memory_space<vmem>>, vector<1x4x16xf32>
    %367 = vector.shape_cast %366 : vector<1x4x16xf32> to vector<4x16xf32>
    %cst_249 = arith.constant dense<0.000000e+00> : vector<32x16xf32>
    %368 = tpu.matmul %365, %367, %cst_249 {dimension_numbers = #tpu.dot_dimension_numbers<[1], [0], [0], [1], [0, 0, 1, 1], [], []>} : vector<32x4xf32>, vector<4x16xf32>, vector<32x16xf32> -> vector<32x16xf32>
    %369 = arith.addf %364, %368 : vector<32x16xf32>
    %370 = vector.broadcast %322 : vector<32x1xf32> to vector<32x16xf32>
    %371 = arith.addf %369, %370 : vector<32x16xf32>
    %cst_250 = arith.constant 0.000000e+00 : f32
    %372 = vector.broadcast %cst_250 : f32 to vector<32x16xf32>
    %373 = arith.maximumf %371, %372 : vector<32x16xf32>
    %c0_251 = arith.constant 0 : index
    %c0_252 = arith.constant 0 : index
    %374 = vector.load %arg20[%c0_251, %c0_252] : memref<288x32xf32, #tpu.memory_space<vmem>>, vector<288x32xf32>
    %c0_253 = arith.constant 0 : index
    %c0_254 = arith.constant 0 : index
    %375 = vector.load %arg22[%c0_253, %c0_254] : memref<32x1xf32, #tpu.memory_space<vmem>>, vector<32x1xf32>
    %cst_255 = arith.constant dense<0.000000e+00> : vector<288x16xf32>
    %376 = tpu.matmul %374, %373, %cst_255 {dimension_numbers = #tpu.dot_dimension_numbers<[1], [0], [0], [1], [0, 0, 1, 1], [], []>} : vector<288x32xf32>, vector<32x16xf32>, vector<288x16xf32> -> vector<288x16xf32>
    %cst_256 = arith.constant 0.000000e+00 : f32
    %377 = vector.broadcast %cst_256 : f32 to vector<32x64xf32>
    %378 = vector.extract_strided_slice %376 {offsets = [0, 0], sizes = [32, 16], strides = [1, 1]} : vector<288x16xf32> to vector<32x16xf32>
    %c0_257 = arith.constant 0 : index
    %c0_258 = arith.constant 0 : index
    %c0_259 = arith.constant 0 : index
    %379 = vector.load %arg21[%c0_257, %c0_258, %c0_259] : memref<9x16x64xf32, #tpu.memory_space<vmem>>, vector<1x16x64xf32>
    %380 = vector.shape_cast %379 : vector<1x16x64xf32> to vector<16x64xf32>
    %cst_260 = arith.constant dense<0.000000e+00> : vector<32x64xf32>
    %381 = tpu.matmul %378, %380, %cst_260 {dimension_numbers = #tpu.dot_dimension_numbers<[1], [0], [0], [1], [0, 0, 1, 1], [], []>} : vector<32x16xf32>, vector<16x64xf32>, vector<32x64xf32> -> vector<32x64xf32>
    %382 = arith.addf %377, %381 : vector<32x64xf32>
    %383 = vector.extract_strided_slice %376 {offsets = [32, 0], sizes = [32, 16], strides = [1, 1]} : vector<288x16xf32> to vector<32x16xf32>
    %c1_261 = arith.constant 1 : index
    %c0_262 = arith.constant 0 : index
    %c0_263 = arith.constant 0 : index
    %384 = vector.load %arg21[%c1_261, %c0_262, %c0_263] : memref<9x16x64xf32, #tpu.memory_space<vmem>>, vector<1x16x64xf32>
    %385 = vector.shape_cast %384 : vector<1x16x64xf32> to vector<16x64xf32>
    %cst_264 = arith.constant dense<0.000000e+00> : vector<32x64xf32>
    %386 = tpu.matmul %383, %385, %cst_264 {dimension_numbers = #tpu.dot_dimension_numbers<[1], [0], [0], [1], [0, 0, 1, 1], [], []>} : vector<32x16xf32>, vector<16x64xf32>, vector<32x64xf32> -> vector<32x64xf32>
    %387 = arith.addf %382, %386 : vector<32x64xf32>
    %388 = vector.extract_strided_slice %376 {offsets = [64, 0], sizes = [32, 16], strides = [1, 1]} : vector<288x16xf32> to vector<32x16xf32>
    %c2_265 = arith.constant 2 : index
    %c0_266 = arith.constant 0 : index
    %c0_267 = arith.constant 0 : index
    %389 = vector.load %arg21[%c2_265, %c0_266, %c0_267] : memref<9x16x64xf32, #tpu.memory_space<vmem>>, vector<1x16x64xf32>
    %390 = vector.shape_cast %389 : vector<1x16x64xf32> to vector<16x64xf32>
    %cst_268 = arith.constant dense<0.000000e+00> : vector<32x64xf32>
    %391 = tpu.matmul %388, %390, %cst_268 {dimension_numbers = #tpu.dot_dimension_numbers<[1], [0], [0], [1], [0, 0, 1, 1], [], []>} : vector<32x16xf32>, vector<16x64xf32>, vector<32x64xf32> -> vector<32x64xf32>
    %392 = arith.addf %387, %391 : vector<32x64xf32>
    %393 = vector.extract_strided_slice %376 {offsets = [96, 0], sizes = [32, 16], strides = [1, 1]} : vector<288x16xf32> to vector<32x16xf32>
    %c3_269 = arith.constant 3 : index
    %c0_270 = arith.constant 0 : index
    %c0_271 = arith.constant 0 : index
    %394 = vector.load %arg21[%c3_269, %c0_270, %c0_271] : memref<9x16x64xf32, #tpu.memory_space<vmem>>, vector<1x16x64xf32>
    %395 = vector.shape_cast %394 : vector<1x16x64xf32> to vector<16x64xf32>
    %cst_272 = arith.constant dense<0.000000e+00> : vector<32x64xf32>
    %396 = tpu.matmul %393, %395, %cst_272 {dimension_numbers = #tpu.dot_dimension_numbers<[1], [0], [0], [1], [0, 0, 1, 1], [], []>} : vector<32x16xf32>, vector<16x64xf32>, vector<32x64xf32> -> vector<32x64xf32>
    %397 = arith.addf %392, %396 : vector<32x64xf32>
    %398 = vector.extract_strided_slice %376 {offsets = [128, 0], sizes = [32, 16], strides = [1, 1]} : vector<288x16xf32> to vector<32x16xf32>
    %c4_273 = arith.constant 4 : index
    %c0_274 = arith.constant 0 : index
    %c0_275 = arith.constant 0 : index
    %399 = vector.load %arg21[%c4_273, %c0_274, %c0_275] : memref<9x16x64xf32, #tpu.memory_space<vmem>>, vector<1x16x64xf32>
    %400 = vector.shape_cast %399 : vector<1x16x64xf32> to vector<16x64xf32>
    %cst_276 = arith.constant dense<0.000000e+00> : vector<32x64xf32>
    %401 = tpu.matmul %398, %400, %cst_276 {dimension_numbers = #tpu.dot_dimension_numbers<[1], [0], [0], [1], [0, 0, 1, 1], [], []>} : vector<32x16xf32>, vector<16x64xf32>, vector<32x64xf32> -> vector<32x64xf32>
    %402 = arith.addf %397, %401 : vector<32x64xf32>
    %403 = vector.extract_strided_slice %376 {offsets = [160, 0], sizes = [32, 16], strides = [1, 1]} : vector<288x16xf32> to vector<32x16xf32>
    %c5_277 = arith.constant 5 : index
    %c0_278 = arith.constant 0 : index
    %c0_279 = arith.constant 0 : index
    %404 = vector.load %arg21[%c5_277, %c0_278, %c0_279] : memref<9x16x64xf32, #tpu.memory_space<vmem>>, vector<1x16x64xf32>
    %405 = vector.shape_cast %404 : vector<1x16x64xf32> to vector<16x64xf32>
    %cst_280 = arith.constant dense<0.000000e+00> : vector<32x64xf32>
    %406 = tpu.matmul %403, %405, %cst_280 {dimension_numbers = #tpu.dot_dimension_numbers<[1], [0], [0], [1], [0, 0, 1, 1], [], []>} : vector<32x16xf32>, vector<16x64xf32>, vector<32x64xf32> -> vector<32x64xf32>
    %407 = arith.addf %402, %406 : vector<32x64xf32>
    %408 = vector.extract_strided_slice %376 {offsets = [192, 0], sizes = [32, 16], strides = [1, 1]} : vector<288x16xf32> to vector<32x16xf32>
    %c6_281 = arith.constant 6 : index
    %c0_282 = arith.constant 0 : index
    %c0_283 = arith.constant 0 : index
    %409 = vector.load %arg21[%c6_281, %c0_282, %c0_283] : memref<9x16x64xf32, #tpu.memory_space<vmem>>, vector<1x16x64xf32>
    %410 = vector.shape_cast %409 : vector<1x16x64xf32> to vector<16x64xf32>
    %cst_284 = arith.constant dense<0.000000e+00> : vector<32x64xf32>
    %411 = tpu.matmul %408, %410, %cst_284 {dimension_numbers = #tpu.dot_dimension_numbers<[1], [0], [0], [1], [0, 0, 1, 1], [], []>} : vector<32x16xf32>, vector<16x64xf32>, vector<32x64xf32> -> vector<32x64xf32>
    %412 = arith.addf %407, %411 : vector<32x64xf32>
    %413 = vector.extract_strided_slice %376 {offsets = [224, 0], sizes = [32, 16], strides = [1, 1]} : vector<288x16xf32> to vector<32x16xf32>
    %c7_285 = arith.constant 7 : index
    %c0_286 = arith.constant 0 : index
    %c0_287 = arith.constant 0 : index
    %414 = vector.load %arg21[%c7_285, %c0_286, %c0_287] : memref<9x16x64xf32, #tpu.memory_space<vmem>>, vector<1x16x64xf32>
    %415 = vector.shape_cast %414 : vector<1x16x64xf32> to vector<16x64xf32>
    %cst_288 = arith.constant dense<0.000000e+00> : vector<32x64xf32>
    %416 = tpu.matmul %413, %415, %cst_288 {dimension_numbers = #tpu.dot_dimension_numbers<[1], [0], [0], [1], [0, 0, 1, 1], [], []>} : vector<32x16xf32>, vector<16x64xf32>, vector<32x64xf32> -> vector<32x64xf32>
    %417 = arith.addf %412, %416 : vector<32x64xf32>
    %418 = vector.extract_strided_slice %376 {offsets = [256, 0], sizes = [32, 16], strides = [1, 1]} : vector<288x16xf32> to vector<32x16xf32>
    %c8_289 = arith.constant 8 : index
    %c0_290 = arith.constant 0 : index
    %c0_291 = arith.constant 0 : index
    %419 = vector.load %arg21[%c8_289, %c0_290, %c0_291] : memref<9x16x64xf32, #tpu.memory_space<vmem>>, vector<1x16x64xf32>
    %420 = vector.shape_cast %419 : vector<1x16x64xf32> to vector<16x64xf32>
    %cst_292 = arith.constant dense<0.000000e+00> : vector<32x64xf32>
    %421 = tpu.matmul %418, %420, %cst_292 {dimension_numbers = #tpu.dot_dimension_numbers<[1], [0], [0], [1], [0, 0, 1, 1], [], []>} : vector<32x16xf32>, vector<16x64xf32>, vector<32x64xf32> -> vector<32x64xf32>
    %422 = arith.addf %417, %421 : vector<32x64xf32>
    %423 = vector.broadcast %375 : vector<32x1xf32> to vector<32x64xf32>
    %424 = arith.addf %422, %423 : vector<32x64xf32>
    %cst_293 = arith.constant 0.000000e+00 : f32
    %425 = vector.broadcast %cst_293 : f32 to vector<32x64xf32>
    %426 = arith.maximumf %424, %425 : vector<32x64xf32>
    %c0_294 = arith.constant 0 : index
    %c0_295 = arith.constant 0 : index
    %427 = vector.load %arg23[%c0_294, %c0_295] : memref<36x32xf32, #tpu.memory_space<vmem>>, vector<36x32xf32>
    %c0_296 = arith.constant 0 : index
    %c0_297 = arith.constant 0 : index
    %428 = vector.load %arg25[%c0_296, %c0_297] : memref<4x1xf32, #tpu.memory_space<vmem>>, vector<4x1xf32>
    %cst_298 = arith.constant dense<0.000000e+00> : vector<36x64xf32>
    %429 = tpu.matmul %427, %426, %cst_298 {dimension_numbers = #tpu.dot_dimension_numbers<[1], [0], [0], [1], [0, 0, 1, 1], [], []>} : vector<36x32xf32>, vector<32x64xf32>, vector<36x64xf32> -> vector<36x64xf32>
    %cst_299 = arith.constant 0.000000e+00 : f32
    %430 = vector.broadcast %cst_299 : f32 to vector<4x256xf32>
    %431 = vector.extract_strided_slice %429 {offsets = [0, 0], sizes = [4, 64], strides = [1, 1]} : vector<36x64xf32> to vector<4x64xf32>
    %c0_300 = arith.constant 0 : index
    %c0_301 = arith.constant 0 : index
    %c0_302 = arith.constant 0 : index
    %432 = vector.load %arg24[%c0_300, %c0_301, %c0_302] : memref<9x64x256xf32, #tpu.memory_space<vmem>>, vector<1x64x256xf32>
    %433 = vector.shape_cast %432 : vector<1x64x256xf32> to vector<64x256xf32>
    %cst_303 = arith.constant dense<0.000000e+00> : vector<4x256xf32>
    %434 = tpu.matmul %431, %433, %cst_303 {dimension_numbers = #tpu.dot_dimension_numbers<[1], [0], [0], [1], [0, 0, 1, 1], [], []>} : vector<4x64xf32>, vector<64x256xf32>, vector<4x256xf32> -> vector<4x256xf32>
    %435 = arith.addf %430, %434 : vector<4x256xf32>
    %436 = vector.extract_strided_slice %429 {offsets = [4, 0], sizes = [4, 64], strides = [1, 1]} : vector<36x64xf32> to vector<4x64xf32>
    %c1_304 = arith.constant 1 : index
    %c0_305 = arith.constant 0 : index
    %c0_306 = arith.constant 0 : index
    %437 = vector.load %arg24[%c1_304, %c0_305, %c0_306] : memref<9x64x256xf32, #tpu.memory_space<vmem>>, vector<1x64x256xf32>
    %438 = vector.shape_cast %437 : vector<1x64x256xf32> to vector<64x256xf32>
    %cst_307 = arith.constant dense<0.000000e+00> : vector<4x256xf32>
    %439 = tpu.matmul %436, %438, %cst_307 {dimension_numbers = #tpu.dot_dimension_numbers<[1], [0], [0], [1], [0, 0, 1, 1], [], []>} : vector<4x64xf32>, vector<64x256xf32>, vector<4x256xf32> -> vector<4x256xf32>
    %440 = arith.addf %435, %439 : vector<4x256xf32>
    %441 = vector.extract_strided_slice %429 {offsets = [8, 0], sizes = [4, 64], strides = [1, 1]} : vector<36x64xf32> to vector<4x64xf32>
    %c2_308 = arith.constant 2 : index
    %c0_309 = arith.constant 0 : index
    %c0_310 = arith.constant 0 : index
    %442 = vector.load %arg24[%c2_308, %c0_309, %c0_310] : memref<9x64x256xf32, #tpu.memory_space<vmem>>, vector<1x64x256xf32>
    %443 = vector.shape_cast %442 : vector<1x64x256xf32> to vector<64x256xf32>
    %cst_311 = arith.constant dense<0.000000e+00> : vector<4x256xf32>
    %444 = tpu.matmul %441, %443, %cst_311 {dimension_numbers = #tpu.dot_dimension_numbers<[1], [0], [0], [1], [0, 0, 1, 1], [], []>} : vector<4x64xf32>, vector<64x256xf32>, vector<4x256xf32> -> vector<4x256xf32>
    %445 = arith.addf %440, %444 : vector<4x256xf32>
    %446 = vector.extract_strided_slice %429 {offsets = [12, 0], sizes = [4, 64], strides = [1, 1]} : vector<36x64xf32> to vector<4x64xf32>
    %c3_312 = arith.constant 3 : index
    %c0_313 = arith.constant 0 : index
    %c0_314 = arith.constant 0 : index
    %447 = vector.load %arg24[%c3_312, %c0_313, %c0_314] : memref<9x64x256xf32, #tpu.memory_space<vmem>>, vector<1x64x256xf32>
    %448 = vector.shape_cast %447 : vector<1x64x256xf32> to vector<64x256xf32>
    %cst_315 = arith.constant dense<0.000000e+00> : vector<4x256xf32>
    %449 = tpu.matmul %446, %448, %cst_315 {dimension_numbers = #tpu.dot_dimension_numbers<[1], [0], [0], [1], [0, 0, 1, 1], [], []>} : vector<4x64xf32>, vector<64x256xf32>, vector<4x256xf32> -> vector<4x256xf32>
    %450 = arith.addf %445, %449 : vector<4x256xf32>
    %451 = vector.extract_strided_slice %429 {offsets = [16, 0], sizes = [4, 64], strides = [1, 1]} : vector<36x64xf32> to vector<4x64xf32>
    %c4_316 = arith.constant 4 : index
    %c0_317 = arith.constant 0 : index
    %c0_318 = arith.constant 0 : index
    %452 = vector.load %arg24[%c4_316, %c0_317, %c0_318] : memref<9x64x256xf32, #tpu.memory_space<vmem>>, vector<1x64x256xf32>
    %453 = vector.shape_cast %452 : vector<1x64x256xf32> to vector<64x256xf32>
    %cst_319 = arith.constant dense<0.000000e+00> : vector<4x256xf32>
    %454 = tpu.matmul %451, %453, %cst_319 {dimension_numbers = #tpu.dot_dimension_numbers<[1], [0], [0], [1], [0, 0, 1, 1], [], []>} : vector<4x64xf32>, vector<64x256xf32>, vector<4x256xf32> -> vector<4x256xf32>
    %455 = arith.addf %450, %454 : vector<4x256xf32>
    %456 = vector.extract_strided_slice %429 {offsets = [20, 0], sizes = [4, 64], strides = [1, 1]} : vector<36x64xf32> to vector<4x64xf32>
    %c5_320 = arith.constant 5 : index
    %c0_321 = arith.constant 0 : index
    %c0_322 = arith.constant 0 : index
    %457 = vector.load %arg24[%c5_320, %c0_321, %c0_322] : memref<9x64x256xf32, #tpu.memory_space<vmem>>, vector<1x64x256xf32>
    %458 = vector.shape_cast %457 : vector<1x64x256xf32> to vector<64x256xf32>
    %cst_323 = arith.constant dense<0.000000e+00> : vector<4x256xf32>
    %459 = tpu.matmul %456, %458, %cst_323 {dimension_numbers = #tpu.dot_dimension_numbers<[1], [0], [0], [1], [0, 0, 1, 1], [], []>} : vector<4x64xf32>, vector<64x256xf32>, vector<4x256xf32> -> vector<4x256xf32>
    %460 = arith.addf %455, %459 : vector<4x256xf32>
    %461 = vector.extract_strided_slice %429 {offsets = [24, 0], sizes = [4, 64], strides = [1, 1]} : vector<36x64xf32> to vector<4x64xf32>
    %c6_324 = arith.constant 6 : index
    %c0_325 = arith.constant 0 : index
    %c0_326 = arith.constant 0 : index
    %462 = vector.load %arg24[%c6_324, %c0_325, %c0_326] : memref<9x64x256xf32, #tpu.memory_space<vmem>>, vector<1x64x256xf32>
    %463 = vector.shape_cast %462 : vector<1x64x256xf32> to vector<64x256xf32>
    %cst_327 = arith.constant dense<0.000000e+00> : vector<4x256xf32>
    %464 = tpu.matmul %461, %463, %cst_327 {dimension_numbers = #tpu.dot_dimension_numbers<[1], [0], [0], [1], [0, 0, 1, 1], [], []>} : vector<4x64xf32>, vector<64x256xf32>, vector<4x256xf32> -> vector<4x256xf32>
    %465 = arith.addf %460, %464 : vector<4x256xf32>
    %466 = vector.extract_strided_slice %429 {offsets = [28, 0], sizes = [4, 64], strides = [1, 1]} : vector<36x64xf32> to vector<4x64xf32>
    %c7_328 = arith.constant 7 : index
    %c0_329 = arith.constant 0 : index
    %c0_330 = arith.constant 0 : index
    %467 = vector.load %arg24[%c7_328, %c0_329, %c0_330] : memref<9x64x256xf32, #tpu.memory_space<vmem>>, vector<1x64x256xf32>
    %468 = vector.shape_cast %467 : vector<1x64x256xf32> to vector<64x256xf32>
    %cst_331 = arith.constant dense<0.000000e+00> : vector<4x256xf32>
    %469 = tpu.matmul %466, %468, %cst_331 {dimension_numbers = #tpu.dot_dimension_numbers<[1], [0], [0], [1], [0, 0, 1, 1], [], []>} : vector<4x64xf32>, vector<64x256xf32>, vector<4x256xf32> -> vector<4x256xf32>
    %470 = arith.addf %465, %469 : vector<4x256xf32>
    %471 = vector.extract_strided_slice %429 {offsets = [32, 0], sizes = [4, 64], strides = [1, 1]} : vector<36x64xf32> to vector<4x64xf32>
    %c8_332 = arith.constant 8 : index
    %c0_333 = arith.constant 0 : index
    %c0_334 = arith.constant 0 : index
    %472 = vector.load %arg24[%c8_332, %c0_333, %c0_334] : memref<9x64x256xf32, #tpu.memory_space<vmem>>, vector<1x64x256xf32>
    %473 = vector.shape_cast %472 : vector<1x64x256xf32> to vector<64x256xf32>
    %cst_335 = arith.constant dense<0.000000e+00> : vector<4x256xf32>
    %474 = tpu.matmul %471, %473, %cst_335 {dimension_numbers = #tpu.dot_dimension_numbers<[1], [0], [0], [1], [0, 0, 1, 1], [], []>} : vector<4x64xf32>, vector<64x256xf32>, vector<4x256xf32> -> vector<4x256xf32>
    %475 = arith.addf %470, %474 : vector<4x256xf32>
    %476 = vector.broadcast %428 : vector<4x1xf32> to vector<4x256xf32>
    %477 = arith.addf %475, %476 : vector<4x256xf32>
    %478 = math.absf %477 : vector<4x256xf32>
    %cst_336 = arith.constant 0.000000e+00 : f32
    %479 = vector.broadcast %cst_336 : f32 to vector<4x256xf32>
    %480 = arith.subf %479, %478 : vector<4x256xf32>
    %481 = math.exp %480 : vector<4x256xf32>
    %cst_337 = arith.constant 1.000000e+00 : f32
    %482 = vector.broadcast %cst_337 : f32 to vector<4x256xf32>
    %483 = arith.addf %482, %481 : vector<4x256xf32>
    %484 = arith.divf %481, %483 : vector<4x256xf32>
    %cst_338 = arith.constant 0.000000e+00 : f32
    %485 = vector.broadcast %cst_338 : f32 to vector<4x256xf32>
    %486 = arith.cmpf oge, %477, %485 : vector<4x256xf32>
    %cst_339 = arith.constant 1.000000e+00 : f32
    %487 = vector.broadcast %cst_339 : f32 to vector<4x256xf32>
    %488 = arith.subf %487, %484 : vector<4x256xf32>
    %489 = arith.select %486, %488, %484 : vector<4x256xi1>, vector<4x256xf32>
    %c0_340 = arith.constant 0 : index
    %c0_341 = arith.constant 0 : index
    %c0_342 = arith.constant 0 : index
    %490 = vector.load %arg26[%c0_340, %c0_341, %c0_342] : memref<1x4x256xf32, #tpu.memory_space<vmem>>, vector<1x4x256xf32>
    %491 = vector.shape_cast %490 : vector<1x4x256xf32> to vector<4x256xf32>
    %492 = vector.shape_cast %489 : vector<4x256xf32> to vector<1x4x256xf32>
    tpu.vector_store %arg26[%c0_340, %c0_341, %c0_342], %492 {strides = array<i32>} : memref<1x4x256xf32, #tpu.memory_space<vmem>>, vector<1x4x256xf32>,
    return
  }
  func.func @transform_0(%arg0: i32) -> (i32, i32, i32) {
    %c0_i32 = arith.constant 0 : i32
    %c0_i32_0 = arith.constant 0 : i32
    %c0_i32_1 = arith.constant 0 : i32
    return %arg0, %c0_i32, %c0_i32_0 : i32, i32, i32
  }
  func.func @transform_1(%arg0: i32) -> (i32, i32) {
    %c0_i32 = arith.constant 0 : i32
    %c0_i32_0 = arith.constant 0 : i32
    %c0_i32_1 = arith.constant 0 : i32
    return %c0_i32, %c0_i32_0 : i32, i32
  }
  func.func @transform_2(%arg0: i32) -> (i32, i32, i32) {
    %c0_i32 = arith.constant 0 : i32
    %c0_i32_0 = arith.constant 0 : i32
    %c0_i32_1 = arith.constant 0 : i32
    %c0_i32_2 = arith.constant 0 : i32
    return %c0_i32, %c0_i32_0, %c0_i32_1 : i32, i32, i32
  }
  func.func @transform_3(%arg0: i32) -> (i32, i32) {
    %c0_i32 = arith.constant 0 : i32
    %c0_i32_0 = arith.constant 0 : i32
    %c0_i32_1 = arith.constant 0 : i32
    return %c0_i32, %c0_i32_0 : i32, i32
  }
  func.func @transform_4(%arg0: i32) -> (i32, i32) {
    %c0_i32 = arith.constant 0 : i32
    %c0_i32_0 = arith.constant 0 : i32
    %c0_i32_1 = arith.constant 0 : i32
    return %c0_i32, %c0_i32_0 : i32, i32
  }
  func.func @transform_5(%arg0: i32) -> (i32, i32, i32) {
    %c0_i32 = arith.constant 0 : i32
    %c0_i32_0 = arith.constant 0 : i32
    %c0_i32_1 = arith.constant 0 : i32
    %c0_i32_2 = arith.constant 0 : i32
    return %c0_i32, %c0_i32_0, %c0_i32_1 : i32, i32, i32
  }
  func.func @transform_6(%arg0: i32) -> (i32, i32) {
    %c0_i32 = arith.constant 0 : i32
    %c0_i32_0 = arith.constant 0 : i32
    %c0_i32_1 = arith.constant 0 : i32
    return %c0_i32, %c0_i32_0 : i32, i32
  }
  func.func @transform_7(%arg0: i32) -> (i32, i32) {
    %c0_i32 = arith.constant 0 : i32
    %c0_i32_0 = arith.constant 0 : i32
    %c0_i32_1 = arith.constant 0 : i32
    return %c0_i32, %c0_i32_0 : i32, i32
  }
  func.func @transform_8(%arg0: i32) -> (i32, i32, i32) {
    %c0_i32 = arith.constant 0 : i32
    %c0_i32_0 = arith.constant 0 : i32
    %c0_i32_1 = arith.constant 0 : i32
    %c0_i32_2 = arith.constant 0 : i32
    return %c0_i32, %c0_i32_0, %c0_i32_1 : i32, i32, i32
  }
  func.func @transform_9(%arg0: i32) -> (i32, i32) {
    %c0_i32 = arith.constant 0 : i32
    %c0_i32_0 = arith.constant 0 : i32
    %c0_i32_1 = arith.constant 0 : i32
    return %c0_i32, %c0_i32_0 : i32, i32
  }
  func.func @transform_10(%arg0: i32) -> (i32, i32) {
    %c0_i32 = arith.constant 0 : i32
    %c0_i32_0 = arith.constant 0 : i32
    %c0_i32_1 = arith.constant 0 : i32
    return %c0_i32, %c0_i32_0 : i32, i32
  }
  func.func @transform_11(%arg0: i32) -> (i32, i32, i32) {
    %c0_i32 = arith.constant 0 : i32
    %c0_i32_0 = arith.constant 0 : i32
    %c0_i32_1 = arith.constant 0 : i32
    %c0_i32_2 = arith.constant 0 : i32
    return %c0_i32, %c0_i32_0, %c0_i32_1 : i32, i32, i32
  }
  func.func @transform_12(%arg0: i32) -> (i32, i32) {
    %c0_i32 = arith.constant 0 : i32
    %c0_i32_0 = arith.constant 0 : i32
    %c0_i32_1 = arith.constant 0 : i32
    return %c0_i32, %c0_i32_0 : i32, i32
  }
  func.func @transform_13(%arg0: i32) -> (i32, i32) {
    %c0_i32 = arith.constant 0 : i32
    %c0_i32_0 = arith.constant 0 : i32
    %c0_i32_1 = arith.constant 0 : i32
    return %c0_i32, %c0_i32_0 : i32, i32
  }
  func.func @transform_14(%arg0: i32) -> (i32, i32, i32) {
    %c0_i32 = arith.constant 0 : i32
    %c0_i32_0 = arith.constant 0 : i32
    %c0_i32_1 = arith.constant 0 : i32
    %c0_i32_2 = arith.constant 0 : i32
    return %c0_i32, %c0_i32_0, %c0_i32_1 : i32, i32, i32
  }
  func.func @transform_15(%arg0: i32) -> (i32, i32) {
    %c0_i32 = arith.constant 0 : i32
    %c0_i32_0 = arith.constant 0 : i32
    %c0_i32_1 = arith.constant 0 : i32
    return %c0_i32, %c0_i32_0 : i32, i32
  }
  func.func @transform_16(%arg0: i32) -> (i32, i32) {
    %c0_i32 = arith.constant 0 : i32
    %c0_i32_0 = arith.constant 0 : i32
    %c0_i32_1 = arith.constant 0 : i32
    return %c0_i32, %c0_i32_0 : i32, i32
  }
  func.func @transform_17(%arg0: i32) -> (i32, i32, i32) {
    %c0_i32 = arith.constant 0 : i32
    %c0_i32_0 = arith.constant 0 : i32
    %c0_i32_1 = arith.constant 0 : i32
    %c0_i32_2 = arith.constant 0 : i32
    return %c0_i32, %c0_i32_0, %c0_i32_1 : i32, i32, i32
  }
  func.func @transform_18(%arg0: i32) -> (i32, i32) {
    %c0_i32 = arith.constant 0 : i32
    %c0_i32_0 = arith.constant 0 : i32
    %c0_i32_1 = arith.constant 0 : i32
    return %c0_i32, %c0_i32_0 : i32, i32
  }
  func.func @transform_19(%arg0: i32) -> (i32, i32) {
    %c0_i32 = arith.constant 0 : i32
    %c0_i32_0 = arith.constant 0 : i32
    %c0_i32_1 = arith.constant 0 : i32
    return %c0_i32, %c0_i32_0 : i32, i32
  }
  func.func @transform_20(%arg0: i32) -> (i32, i32, i32) {
    %c0_i32 = arith.constant 0 : i32
    %c0_i32_0 = arith.constant 0 : i32
    %c0_i32_1 = arith.constant 0 : i32
    %c0_i32_2 = arith.constant 0 : i32
    return %c0_i32, %c0_i32_0, %c0_i32_1 : i32, i32, i32
  }
  func.func @transform_21(%arg0: i32) -> (i32, i32) {
    %c0_i32 = arith.constant 0 : i32
    %c0_i32_0 = arith.constant 0 : i32
    %c0_i32_1 = arith.constant 0 : i32
    return %c0_i32, %c0_i32_0 : i32, i32
  }
  func.func @transform_22(%arg0: i32) -> (i32, i32) {
    %c0_i32 = arith.constant 0 : i32
    %c0_i32_0 = arith.constant 0 : i32
    %c0_i32_1 = arith.constant 0 : i32
    return %c0_i32, %c0_i32_0 : i32, i32
  }
  func.func @transform_23(%arg0: i32) -> (i32, i32, i32) {
    %c0_i32 = arith.constant 0 : i32
    %c0_i32_0 = arith.constant 0 : i32
    %c0_i32_1 = arith.constant 0 : i32
    %c0_i32_2 = arith.constant 0 : i32
    return %c0_i32, %c0_i32_0, %c0_i32_1 : i32, i32, i32
  }
  func.func @transform_24(%arg0: i32) -> (i32, i32) {
    %c0_i32 = arith.constant 0 : i32
    %c0_i32_0 = arith.constant 0 : i32
    %c0_i32_1 = arith.constant 0 : i32
    return %c0_i32, %c0_i32_0 : i32, i32
  }
  func.func @transform_25(%arg0: i32) -> (i32, i32, i32) {
    %c0_i32 = arith.constant 0 : i32
    %c0_i32_0 = arith.constant 0 : i32
    %c0_i32_1 = arith.constant 0 : i32
    return %arg0, %c0_i32, %c0_i32_0 : i32, i32, i32
  }
}

</mosaic_0001>

<bundles_post_ra>
// kernel: conv_obs_qbnet_forward.1
= control target key start
LH: loop header
LB: loop body
LE: loop exit
PB: predicated region body
PF: predicated region fallthrough
CT: control target
= control target key end

     0   :  { %s13046_s29 = smov 0   ;;  %s16089_s0 = inlined_call_operand.vmem [shape: f32[2,4,256], index: 0, kind: input, shape index: {}]   ;;  %s16090_s1 = inlined_call_operand.vmem [shape: f32[288,4], index: 1, kind: input, shape index: {}]   ;;  %s16091_s2 = inlined_call_operand.vmem [shape: f32[9,256,64], index: 2, kind: input, shape index: {}]   ;;  %s16092_s3 = inlined_call_operand.vmem [shape: f32[32,1], index: 3, kind: input, shape index: {}]   ;;  %s16093_s4 = inlined_call_operand.vmem [shape: f32[288,32], index: 4, kind: input, shape index: {}]   ;;  %s16094_s5 = inlined_call_operand.vmem [shape: f32[9,64,16], index: 5, kind: input, shape index: {}]   ;;  %s16095_s6 = inlined_call_operand.vmem [shape: f32[32,1], index: 6, kind: input, shape index: {}]   ;;  %s16096_s7 = inlined_call_operand.vmem [shape: f32[144,32], index: 7, kind: input, shape index: {}]   ;;  %s16097_s8 = inlined_call_operand.vmem [shape: f32[9,16,4], index: 8, kind: input, shape index: {}]   ;;  %s16098_s9 = inlined_call_operand.vmem [shape: f32[16,1], index: 9, kind: input, shape index: {}]   ;;  %s16099_s10 = inlined_call_operand.vmem [shape: f32[72,16], index: 10, kind: input, shape index: {}]   ;;  %s16100_s11 = inlined_call_operand.vmem [shape: f32[9,1,4], index: 11, kind: input, shape index: {}]   ;;  %s16101_s12 = inlined_call_operand.vmem [shape: f32[8,1], index: 12, kind: input, shape index: {}]   ;;  %s16102_s13 = inlined_call_operand.vmem [shape: f32[144,8], index: 13, kind: input, shape index: {}]   ;;  %s16103_s14 = inlined_call_operand.vmem [shape: f32[9,1,4], index: 14, kind: input, shape index: {}]   ;;  %s16104_s15 = inlined_call_operand.vmem [shape: f32[16,1], index: 15, kind: input, shape index: {}]   ;;  %s16105_s16 = inlined_call_operand.vmem [shape: f32[288,16], index: 16, kind: input, shape index: {}]   ;;  %s16106_s17 = inlined_call_operand.vmem [shape: f32[9,4,16], index: 17, kind: input, shape index: {}]   ;;  %s16107_s18 = inlined_call_operand.vmem [shape: f32[32,1], index: 18, kind: input, shape index: {}]   ;;  %s16108_s19 = inlined_call_operand.vmem [shape: f32[288,32], index: 19, kind: input, shape index: {}]   ;;  %s16109_s20 = inlined_call_operand.vmem [shape: f32[9,16,64], index: 20, kind: input, shape index: {}]   ;;  %s16110_s21 = inlined_call_operand.vmem [shape: f32[32,1], index: 21, kind: input, shape index: {}]   ;;  %s16111_s22 = inlined_call_operand.vmem [shape: f32[36,32], index: 22, kind: input, shape index: {}]   ;;  %s16112_s23 = inlined_call_operand.vmem [shape: f32[9,64,256], index: 23, kind: input, shape index: {}]   ;;  %s16113_s24 = inlined_call_operand.vmem [shape: f32[4,1], index: 24, kind: input, shape index: {}]   ;;  %s16114_s25 = inlined_call_operand.vmem [shape: f32[2,4,256], index: 25, kind: output, shape index: {}]  }
   0x1   :  { %16131 = sst [smem:[#allocation2_spill]] %s16089_s0 }
   0x2   :  { %16132 = sst [smem:[#allocation3_spill]] %s16090_s1 }
   0x3   :  { %16133 = sst [smem:[#allocation4_spill]] %s16091_s2 }
   0x4   :  { %16134 = sst [smem:[#allocation5_spill]] %s16092_s3 }
   0x5   :  { %16135 = sst [smem:[#allocation6_spill]] %s16093_s4 }
   0x6   :  { %16136 = sst [smem:[#allocation7_spill]] %s16094_s5 }
   0x7   :  { %16137 = sst [smem:[#allocation8_spill]] %s16095_s6 }
   0x8   :  { %16138 = sst [smem:[#allocation9_spill]] %s16096_s7 }
   0x9   :  { %16139 = sst [smem:[#allocation10_spill]] %s16097_s8 }
   0xa   :  { %16140 = sst [smem:[#allocation11_spill]] %s16098_s9 }
   0xb   :  { %16141 = sst [smem:[#allocation12_spill]] %s16099_s10 }
   0xc LB: > { %s9610_s2 = sadd.s32 4294967295, %s12910_s29   ;;  %p9614_p0 = scmp.ge.s32.totalorder %s12910_s29, 1  ;;  %s12910_s29 = sphi %s13046_s29, %s35_s29  }
   0xd   : > { %p687_p1 = scmp.lt.s32.totalorder %s12910_s29, 3 }
   0xf   : > { %p688_p2 = pnand %p9614_p0, %p687_p1 }
  0x10   : > { %p755_p3 = scmp.lt.s32.totalorder (!%p688_p2), %s9610_s2, 1  ;;  %v12912_v0 = vmov (!%p688_p2), 0.0   ;;  %s16142_s3 = sld [smem:[#allocation2_spill]] (!%p688_p2)  ;;  %vm917_vm0 = vcmask (!%p688_p2), 1043456   ;;  %vm808_vm1 = vcmask (!%p688_p2), 31744   ;;  %vm2360_vm2 = vcmask (!%p688_p2), 261120  }
  0x11   : > { %691 = sbr.rel (%p688_p2) target bundleno = 4180 (0x1054), region = 120  ;;  %986 = vmatprep.mubr.f32.mxu0 (!%p688_p2), %v12912_v0  ;;  %1082 = vmatprep.mubr.f32.mxu1 (!%p688_p2), %v12912_v0  ;;  %s16143_s27 = sld [smem:[#allocation3_spill]] (!%p688_p2)  ;;  %vm2731_vm3 = vcmask (!%p688_p2), 523264   ;;  %vm3958_vm4 = vcmask (!%p688_p2), 130048   ;;  %vm12915_vm5 = vmmov (!%p688_p2), 0   ;;  %vm5045_vm6 = vcmask (!%p688_p2), 64512  }
  0x12   : > { %s16145_s4 = sld [smem:[#allocation5_spill]] (!%p688_p2)  ;;  %s16147_s7 = sld [smem:[#allocation11_spill]] (!%p688_p2) }
  0x13   : > { %s16148_s1 = sld [smem:[#allocation6_spill]] (!%p688_p2)  ;;  %s16149_s28 = sld [smem:[#allocation7_spill]] (!%p688_p2) }
  0x14   : > { %s16152_s10 = sld [smem:[#allocation12_spill]] (!%p688_p2) }
  0x17   : > { %v766_v3 = vld [vmem:[%s16143_s27] sm:$0xff] (!%p688_p2)  ;;  %v767_v5 = vld [vmem:[%s16143_s27 + $0x8] sm:$0xff] (!%p688_p2)  ;;  %v768_v17 = vld [vmem:[%s16143_s27 + $0x10] sm:$0xff] (!%p688_p2) }
  0x18   : > { %s16155_s2 = smov (!%p755_p3, %s9610_s2), 1  ;;  %v782_v4 = vld [vmem:[%s16143_s27 + $0x80] sm:$0xff]  ;;  %v783_v6 = vld [vmem:[%s16143_s27 + $0x88] sm:$0xff]  ;;  %v784_v18 = vld [vmem:[%s16143_s27 + $0x90] sm:$0xff] }
  0x19   : > { %s16124_s6 = sshll.u32 %s16155_s2, 3  ;;  %v769_v25 = vld [vmem:[%s16143_s27 + $0x18] sm:$0xff]  ;;  %v770_v33 = vld [vmem:[%s16143_s27 + $0x20] sm:$0xff]  ;;  %v771_v37 = vld [vmem:[%s16143_s27 + $0x28] sm:$0xff]  ;;  %s16153_s8 = sshll.u32 %s16155_s2, 3 }
  0x1a   : > { %s759_s26 = scalar_lea.vmem %s16142_s3, %s16124_s6  ;;  %v785_v26 = vld [vmem:[%s16143_s27 + $0x98] sm:$0xff]  ;;  %v786_v34 = vld [vmem:[%s16143_s27 + $0xa0] sm:$0xff]  ;;  %v787_v38 = vld [vmem:[%s16143_s27 + $0xa8] sm:$0xff]  ;;  %s16146_s6 = sld [smem:[#allocation8_spill]] }
  0x1b   : > { %v765_v1 = vld [vmem:[%s759_s26] sm:$0xff]  ;;  %s16144_s26 = sld [smem:[#allocation4_spill]]  ;;  %v772_v39 = vld [vmem:[%s16143_s27 + $0x30] sm:$0xff]  ;;  %v773_v41 = vld [vmem:[%s16143_s27 + $0x38] sm:$0xff]  ;;  %s764_s9 = scalar_lea.vmem %s16114_s25, %s16153_s8 }
  0x1c   : > { %v807_v2 = vcombine.high %v765_v1, %v765_v1  ;;  %v788_v40 = vld [vmem:[%s16143_s27 + $0xb0] sm:$0xff]  ;;  %v789_v42 = vld [vmem:[%s16143_s27 + $0xb8] sm:$0xff]  ;;  %v774_v43 = vld [vmem:[%s16143_s27 + $0x40] sm:$0xff] }
  0x1d   : > { %v790_v44 = vld [vmem:[%s16143_s27 + $0xc0] sm:$0xff]  ;;  %v775_v45 = vld [vmem:[%s16143_s27 + $0x48] sm:$0xff]  ;;  %v776_v47 = vld [vmem:[%s16143_s27 + $0x50] sm:$0xff] }
  0x1e   : > { %9619 = vmatprep.subr.msk.mxu0 %vm917_vm0, %v807_v2  ;;  %12735 = vmatprep.subr.msk.mxu1 %vm917_vm0, %v807_v2  ;;  %v791_v46 = vld [vmem:[%s16143_s27 + $0xc8] sm:$0xff]  ;;  %v792_v48 = vld [vmem:[%s16143_s27 + $0xd0] sm:$0xff]  ;;  %v777_v49 = vld [vmem:[%s16143_s27 + $0x58] sm:$0xff] }
  0x1f   : > { %9620 = vmatpush1.msk.msra.mxu0 %vm917_vm0, %v765_v1  ;;  %12736 = vmatpush1.msk.msra.mxu1 %vm917_vm0, %v765_v1  ;;  %v793_v50 = vld [vmem:[%s16143_s27 + $0xd8] sm:$0xff]  ;;  %v778_v51 = vld [vmem:[%s16143_s27 + $0x60] sm:$0xff]  ;;  %v779_v53 = vld [vmem:[%s16143_s27 + $0x68] sm:$0xff] }
  0x20   : > { %9621 = vmatmul.mubr.msk.f32.vlgmr.msra.gmra.mrb[0].mxu0 %vm808_vm1, %v766_v3  ;;  %9637 = vmatmul.mubr.msk.f32.vlgmr.msra.gmra.mrb[0].mxu1 %vm808_vm1, %v782_v4  ;;  %v794_v52 = vld [vmem:[%s16143_s27 + $0xe0] sm:$0xff]  ;;  %v795_v54 = vld [vmem:[%s16143_s27 + $0xe8] sm:$0xff]  ;;  %v780_v55 = vld [vmem:[%s16143_s27 + $0x70] sm:$0xff] }
  0x21   : > { %992 = vmatprep.mubr.f32.mxu0 %v12912_v0  ;;  %1088 = vmatprep.mubr.f32.mxu1 %v12912_v0  ;;  %v9673_v7 = vld [vmem:[%s16144_s26 + $0x180] sm:$0xff]  ;;  %v9674_v8 = vld [vmem:[%s16144_s26 + $0x188] sm:$0xff]  ;;  %v9675_v13 = vld [vmem:[%s16144_s26 + $0x190] sm:$0xff] }
  0x22   : > { %v9657_v9 = vld [vmem:[%s16144_s26 + $0x100] sm:$0xff]  ;;  %v9658_v10 = vld [vmem:[%s16144_s26 + $0x108] sm:$0xff]  ;;  %v12050_v11 = vpack.c.bf16 %v9674_v8, %v9673_v7  ;;  %v9676_v14 = vld [vmem:[%s16144_s26 + $0x198] sm:$0xff] }
  0x23   : > { %v12052_v12 = vpack.c.bf16 %v9658_v10, %v9657_v9  ;;  %v9659_v15 = vld [vmem:[%s16144_s26 + $0x110] sm:$0xff]  ;;  %v9660_v16 = vld [vmem:[%s16144_s26 + $0x118] sm:$0xff]  ;;  %v12054_v19 = vpack.c.bf16 %v9676_v14, %v9675_v13  ;;  %v9677_v21 = vld [vmem:[%s16144_s26 + $0x1a0] sm:$0xff] }
  0x24   : > { %9622 = vmatmul.mubr.msk.f32.gmra.mrb[2].mxu0 %vm808_vm1, %v767_v5  ;;  %9638 = vmatmul.mubr.msk.f32.gmra.mrb[2].mxu1 %vm808_vm1, %v783_v6  ;;  %v12056_v20 = vpack.c.bf16 %v9660_v16, %v9659_v15  ;;  %v9678_v22 = vld [vmem:[%s16144_s26 + $0x1a8] sm:$0xff]  ;;  %v9661_v23 = vld [vmem:[%s16144_s26 + $0x120] sm:$0xff]  ;;  %v9679_v29 = vld [vmem:[%s16144_s26 + $0x1b0] sm:$0xff] }
  0x25   : > { %998 = vmatprep.mubr.f32.mxu0 %v12912_v0  ;;  %1094 = vmatprep.mubr.f32.mxu1 %v12912_v0  ;;  %v9662_v24 = vld [vmem:[%s16144_s26 + $0x128] sm:$0xff]  ;;  %v12058_v27 = vpack.c.bf16 %v9678_v22, %v9677_v21  ;;  %v9680_v30 = vld [vmem:[%s16144_s26 + $0x1b8] sm:$0xff]  ;;  %v9663_v31 = vld [vmem:[%s16144_s26 + $0x130] sm:$0xff] }
  0x26   : > { %12051 = vmatprep.subr.bf16.mxu1 %v12050_v11  ;;  %v12060_v28 = vpack.c.bf16 %v9662_v24, %v9661_v23  ;;  %v9664_v32 = vld [vmem:[%s16144_s26 + $0x138] sm:$0xff]  ;;  %v12062_v35 = vpack.c.bf16 %v9680_v30, %v9679_v29  ;;  %v796_v56 = vld [vmem:[%s16143_s27 + $0xf0] sm:$0xff]  ;;  %v798_v59 = vld [vmem:[%s16143_s27 + $0x100] sm:$0xff] }
  0x27   : > { %12053 = vmatpush3.bf16.msra.mxu1 %v12052_v12  ;;  %v12064_v36 = vpack.c.bf16 %v9664_v32, %v9663_v31  ;;  %v781_v57 = vld [vmem:[%s16143_s27 + $0x78] sm:$0xff]  ;;  %v799_v60 = vld [vmem:[%s16143_s27 + $0x108] sm:$0xff]  ;;  %v800_v61 = vld [vmem:[%s16143_s27 + $0x110] sm:$0xff] }
  0x28   : > { %9623 = vmatmul.mubr.msk.f32.gmra.mrb[4].mxu0 %vm808_vm1, %v768_v17  ;;  %9639 = vmatmul.mubr.msk.f32.gmra.mrb[4].mxu1 %vm808_vm1, %v784_v18  ;;  %v797_v58 = vld [vmem:[%s16143_s27 + $0xf8] sm:$0xff]  ;;  %v9681_v63 = vld [vmem:[%s16144_s26 + $0x1c0] sm:$0xff]  ;;  %v9682_v1 = vld [vmem:[%s16144_s26 + $0x1c8] sm:$0xff] }
  0x29   : > { %1004 = vmatprep.mubr.f32.mxu0 %v12912_v0  ;;  %1100 = vmatprep.mubr.f32.mxu1 %v12912_v0  ;;  %v801_v62 = vld [vmem:[%s16143_s27 + $0x118] sm:$0xff]  ;;  %v12066_v2 = vpack.c.bf16 %v9682_v1, %v9681_v63  ;;  %v9665_v3 = vld [vmem:[%s16144_s26 + $0x140] sm:$0xff]  ;;  %v9666_v4 = vld [vmem:[%s16144_s26 + $0x148] sm:$0xff]  ;;  %s16150_s27 = sld [smem:[#allocation9_spill]] }
  0x2a   : > { %12055 = vmatprep.subr.bf16.mxu1 %v12054_v19  ;;  %v12068_v5 = vpack.c.bf16 %v9666_v4, %v9665_v3  ;;  %v9683_v6 = vld [vmem:[%s16144_s26 + $0x1d0] sm:$0xff]  ;;  %v9684_v7 = vld [vmem:[%s16144_s26 + $0x1d8] sm:$0xff]  ;;  %v9685_v12 = vld [vmem:[%s16144_s26 + $0x1e0] sm:$0xff] }
  0x2b   : > { %12057 = vmatpush3.bf16.msra.mxu1 %v12056_v20  ;;  %v12070_v8 = vpack.c.bf16 %v9684_v7, %v9683_v6  ;;  %v9667_v9 = vld [vmem:[%s16144_s26 + $0x150] sm:$0xff]  ;;  %v9668_v10 = vld [vmem:[%s16144_s26 + $0x158] sm:$0xff]  ;;  %v9686_v13 = vld [vmem:[%s16144_s26 + $0x1e8] sm:$0xff] }
  0x2c   : > { %9624 = vmatmul.mubr.msk.f32.gmra.mrb[6].mxu0 %vm808_vm1, %v769_v25  ;;  %9640 = vmatmul.mubr.msk.f32.gmra.mrb[6].mxu1 %vm808_vm1, %v785_v26  ;;  %v12072_v11 = vpack.c.bf16 %v9668_v10, %v9667_v9  ;;  %v12074_v14 = vpack.c.bf16 %v9686_v13, %v9685_v12  ;;  %v9669_v15 = vld [vmem:[%s16144_s26 + $0x160] sm:$0xff]  ;;  %v9670_v16 = vld [vmem:[%s16144_s26 + $0x168] sm:$0xff]  ;;  %v9687_v18 = vld [vmem:[%s16144_s26 + $0x1f0] sm:$0xff] }
  0x2d   : > { %1010 = vmatprep.mubr.f32.mxu0 %v12912_v0  ;;  %1106 = vmatprep.mubr.f32.mxu1 %v12912_v0  ;;  %v12076_v17 = vpack.c.bf16 %v9670_v16, %v9669_v15  ;;  %v9688_v19 = vld [vmem:[%s16144_s26 + $0x1f8] sm:$0xff]  ;;  %v9671_v21 = vld [vmem:[%s16144_s26 + $0x170] sm:$0xff]  ;;  %v1219_v24 = vld [vmem:[%s16144_s26 + $0x80] sm:$0xff] }
  0x2e   : > { %12059 = vmatprep.subr.bf16.mxu1 %v12058_v27  ;;  %v12078_v20 = vpack.c.bf16 %v9688_v19, %v9687_v18  ;;  %v9672_v22 = vld [vmem:[%s16144_s26 + $0x178] sm:$0xff]  ;;  %v1220_v25 = vld [vmem:[%s16144_s26 + $0x88] sm:$0xff]  ;;  %v9769_v27 = vld [vmem:[%s16144_s26 + $0x480] sm:$0xff] }
  0x2f   : > { %12061 = vmatpush3.bf16.msra.mxu1 %v12060_v28  ;;  %v12080_v23 = vpack.c.bf16 %v9672_v22, %v9671_v21  ;;  %v12082_v26 = vpack.c.bf16 %v1220_v25, %v1219_v24  ;;  %v9770_v28 = vld [vmem:[%s16144_s26 + $0x488] sm:$0xff]  ;;  %v9753_v30 = vld [vmem:[%s16144_s26 + $0x400] sm:$0xff]  ;;  %v9783_v6 = vld [vmem:[%s16144_s26 + $0x4f0] sm:$0xff] }
  0x30   : > { %9625 = vmatmul.mubr.msk.f32.gmra.mrb[8].mxu0 %vm808_vm1, %v770_v33  ;;  %9641 = vmatmul.mubr.msk.f32.gmra.mrb[8].mxu1 %vm808_vm1, %v786_v34  ;;  %v12178_v29 = vpack.c.bf16 %v9770_v28, %v9769_v27  ;;  %v9754_v31 = vld [vmem:[%s16144_s26 + $0x408] sm:$0xff]  ;;  %v9771_v33 = vld [vmem:[%s16144_s26 + $0x490] sm:$0xff]  ;;  %v9772_v34 = vld [vmem:[%s16144_s26 + $0x498] sm:$0xff] }
  0x31   : > { %1016 = vmatprep.mubr.f32.mxu0 %v12912_v0  ;;  %1112 = vmatprep.mubr.f32.mxu1 %v12912_v0  ;;  %v12180_v32 = vpack.c.bf16 %v9754_v31, %v9753_v30  ;;  %v9781_v63 = vld [vmem:[%s16144_s26 + $0x4e0] sm:$0xff]  ;;  %v9782_v1 = vld [vmem:[%s16144_s26 + $0x4e8] sm:$0xff]  ;;  %v9784_v7 = vld [vmem:[%s16144_s26 + $0x4f8] sm:$0xff] }
  0x32   : > { %12063 = vmatprep.subr.bf16.mxu1 %v12062_v35  ;;  %12179 = vmatprep.subr.bf16.mxu0 %v12178_v29  ;;  %v12182_v35 = vpack.c.bf16 %v9772_v34, %v9771_v33  ;;  %v9765_v3 = vld [vmem:[%s16144_s26 + $0x460] sm:$0xff]  ;;  %v9766_v4 = vld [vmem:[%s16144_s26 + $0x468] sm:$0xff]  ;;  %v9767_v9 = vld [vmem:[%s16144_s26 + $0x470] sm:$0xff] }
  0x33   : > { %12065 = vmatpush3.bf16.msra.mxu1 %v12064_v36  ;;  %12181 = vmatpush3.bf16.msra.mxu0 %v12180_v32  ;;  %v9755_v36 = vld [vmem:[%s16144_s26 + $0x410] sm:$0xff]  ;;  %v9768_v10 = vld [vmem:[%s16144_s26 + $0x478] sm:$0xff]  ;;  %v9833_v12 = vld [vmem:[%s16144_s26 + $0x680] sm:$0xff] }
  0x34   : > { %9626 = vmatmul.mubr.msk.f32.gmra.mrb[10].mxu0 %vm808_vm1, %v771_v37  ;;  %9642 = vmatmul.mubr.msk.f32.gmra.mrb[10].mxu1 %vm808_vm1, %v787_v38  ;;  %v9756_v37 = vld [vmem:[%s16144_s26 + $0x418] sm:$0xff]  ;;  %v9834_v13 = vld [vmem:[%s16144_s26 + $0x688] sm:$0xff]  ;;  %v9817_v15 = vld [vmem:[%s16144_s26 + $0x600] sm:$0xff] }
  0x35   : > { %1022 = vmatprep.mubr.f32.mxu0 %v12912_v0  ;;  %1118 = vmatprep.mubr.f32.mxu1 %v12912_v0  ;;  %v12184_v38 = vpack.c.bf16 %v9756_v37, %v9755_v36  ;;  %v9818_v16 = vld [vmem:[%s16144_s26 + $0x608] sm:$0xff]  ;;  %v9836_v18 = vld [vmem:[%s16144_s26 + $0x698] sm:$0xff]  ;;  %v9819_v25 = vld [vmem:[%s16144_s26 + $0x610] sm:$0xff] }
  0x36   : > { %12067 = vmatprep.subr.bf16.mxu1 %v12066_v2  ;;  %12183 = vmatprep.subr.bf16.mxu0 %v12182_v35  ;;  %v12202_v2 = vpack.c.bf16 %v9782_v1, %v9781_v63  ;;  %v12244_v21 = vpack.c.bf16 %v9818_v16, %v9817_v15  ;;  %v9837_v27 = vld [vmem:[%s16144_s26 + $0x6a0] sm:$0xff]  ;;  %v9838_v28 = vld [vmem:[%s16144_s26 + $0x6a8] sm:$0xff]  ;;  %v9839_v37 = vld [vmem:[%s16144_s26 + $0x6b0] sm:$0xff] }
  0x37   : > { %12069 = vmatpush3.bf16.msra.mxu1 %v12068_v5  ;;  %12185 = vmatpush3.bf16.msra.mxu0 %v12184_v38  ;;  %v12204_v5 = vpack.c.bf16 %v9766_v4, %v9765_v3  ;;  %v12250_v34 = vpack.c.bf16 %v9838_v28, %v9837_v27  ;;  %v9821_v35 = vld [vmem:[%s16144_s26 + $0x620] sm:$0xff]  ;;  %v9822_v36 = vld [vmem:[%s16144_s26 + $0x628] sm:$0xff]  ;;  %v9840_v38 = vld [vmem:[%s16144_s26 + $0x6b8] sm:$0xff] }
  0x38   : > { %9627 = vmatmul.mubr.msk.f32.gmra.mrb[12].mxu0 %vm808_vm1, %v772_v39  ;;  %9643 = vmatmul.mubr.msk.f32.gmra.mrb[12].mxu1 %vm808_vm1, %v788_v40  ;;  %v9773_v39 = vld [vmem:[%s16144_s26 + $0x4a0] sm:$0xff]  ;;  %v9774_v40 = vld [vmem:[%s16144_s26 + $0x4a8] sm:$0xff]  ;;  %v1206_v3 = vld [vmem:[%s16144_s26 + $0x18] sm:$0xff] }
  0x39   : > { %1028 = vmatprep.mubr.f32.mxu0 %v12912_v0  ;;  %1124 = vmatprep.mubr.f32.mxu1 %v12912_v0  ;;  %v9846_v15 = vld [vmem:[%s16144_s26 + $0x6e8] sm:$0xff] }
  0x3a   : > { %12071 = vmatprep.subr.bf16.mxu1 %v12070_v8  ;;  %v12206_v8 = vpack.c.bf16 %v9784_v7, %v9783_v6 }
  0x3b   : > { %12073 = vmatpush3.bf16.msra.mxu1 %v12072_v11  ;;  %v12208_v11 = vpack.c.bf16 %v9768_v10, %v9767_v9 }
  0x3c   : > { %9628 = vmatmul.mubr.msk.f32.gmra.mrb[14].mxu0 %vm808_vm1, %v773_v41  ;;  %9644 = vmatmul.mubr.msk.f32.gmra.mrb[14].mxu1 %vm808_vm1, %v789_v42  ;;  %v12186_v41 = vpack.c.bf16 %v9774_v40, %v9773_v39  ;;  %v9757_v42 = vld [vmem:[%s16144_s26 + $0x420] sm:$0xff] }
  0x3d   : > { %1034 = vmatprep.mubr.f32.mxu0 %v12912_v0  ;;  %1130 = vmatprep.mubr.f32.mxu1 %v12912_v0 }
  0x3e   : > { %12075 = vmatprep.subr.bf16.mxu1 %v12074_v14  ;;  %12187 = vmatprep.subr.bf16.mxu0 %v12186_v41  ;;  %v12242_v14 = vpack.c.bf16 %v9834_v13, %v9833_v12  ;;  %v12252_v41 = vpack.c.bf16 %v9822_v36, %v9821_v35  ;;  %v9828_v12 = vld [vmem:[%s16144_s26 + $0x658] sm:$0xff]  ;;  %v1224_v13 = vld [vmem:[%s16144_s26 + $0xa8] sm:$0xff] }
  0x3f   : > { %12077 = vmatpush3.bf16.msra.mxu1 %v12076_v17  ;;  %v9835_v17 = vld [vmem:[%s16144_s26 + $0x690] sm:$0xff]  ;;  %v9848_v35 = vld [vmem:[%s16144_s26 + $0x6f8] sm:$0xff] }
  0x40   : > { %9629 = vmatmul.mubr.msk.f32.gmra.mrb[16].mxu0 %vm808_vm1, %v774_v43  ;;  %9645 = vmatmul.mubr.msk.f32.gmra.mrb[16].mxu1 %vm808_vm1, %v790_v44  ;;  %v9758_v43 = vld [vmem:[%s16144_s26 + $0x428] sm:$0xff]  ;;  %v12246_v24 = vpack.c.bf16 %v9836_v18, %v9835_v17  ;;  %v1207_v18 = vld [vmem:[%s16144_s26 + $0x20] sm:$0xff] }
  0x41   : > { %1040 = vmatprep.mubr.f32.mxu0 %v12912_v0  ;;  %1136 = vmatprep.mubr.f32.mxu1 %v12912_v0  ;;  %v12188_v44 = vpack.c.bf16 %v9758_v43, %v9757_v42 }
  0x42   : > { %12079 = vmatprep.subr.bf16.mxu1 %v12078_v20 }
  0x43   : > { %12081 = vmatpush3.bf16.msra.mxu1 %v12080_v23  ;;  %12189 = vmatpush3.bf16.msra.mxu0 %v12188_v44  ;;  %v12254_v44 = vpack.c.bf16 %v9840_v38, %v9839_v37 }
  0x44   : > { %9630 = vmatmul.mubr.msk.f32.gmra.mrb[18].mxu0 %vm808_vm1, %v775_v45  ;;  %9646 = vmatmul.mubr.msk.f32.gmra.mrb[18].mxu1 %vm808_vm1, %v791_v46  ;;  %v9775_v45 = vld [vmem:[%s16144_s26 + $0x4b0] sm:$0xff]  ;;  %v9776_v46 = vld [vmem:[%s16144_s26 + $0x4b8] sm:$0xff] }
  0x45   : > { %1046 = vmatprep.mubr.f32.mxu0 %v12912_v0  ;;  %1142 = vmatprep.mubr.f32.mxu1 %v12912_v0 }
  0x46   : > { %12083 = vmatprep.subr.bf16.mxu1 %v12082_v26  ;;  %v9820_v26 = vld [vmem:[%s16144_s26 + $0x618] sm:$0xff] }
  0x47   : > { %v12248_v31 = vpack.c.bf16 %v9820_v26, %v9819_v25  ;;  %v1225_v26 = vld [vmem:[%s16144_s26 + $0xb0] sm:$0xff] }
  0x48   : > { %9631 = vmatmul.mubr.msk.f32.gmra.mrb[20].mxu0 %vm808_vm1, %v776_v47  ;;  %9647 = vmatmul.mubr.msk.f32.gmra.mrb[20].mxu1 %vm808_vm1, %v792_v48  ;;  %v12190_v47 = vpack.c.bf16 %v9776_v46, %v9775_v45  ;;  %v9759_v48 = vld [vmem:[%s16144_s26 + $0x430] sm:$0xff]  ;;  %v9824_v46 = vld [vmem:[%s16144_s26 + $0x638] sm:$0xff] }
  0x49   : > { %1052 = vmatprep.mubr.f32.mxu0 %v12912_v0  ;;  %1148 = vmatprep.mubr.f32.mxu1 %v12912_v0  ;;  %v9823_v45 = vld [vmem:[%s16144_s26 + $0x630] sm:$0xff] }
  0x4a   : > { %12191 = vmatprep.subr.bf16.mxu0 %v12190_v47  ;;  %v9841_v47 = vld [vmem:[%s16144_s26 + $0x6c0] sm:$0xff] }
  0x4c   : > { %9632 = vmatmul.mubr.msk.f32.gmra.mrb[22].mxu0 %vm808_vm1, %v777_v49  ;;  %9648 = vmatmul.mubr.msk.f32.gmra.mrb[22].mxu1 %vm808_vm1, %v793_v50  ;;  %v9760_v49 = vld [vmem:[%s16144_s26 + $0x438] sm:$0xff] }
  0x4d   : > { %1058 = vmatprep.mubr.f32.mxu0 %v12912_v0  ;;  %1154 = vmatprep.mubr.f32.mxu1 %v12912_v0  ;;  %v12192_v50 = vpack.c.bf16 %v9760_v49, %v9759_v48  ;;  %v9842_v48 = vld [vmem:[%s16144_s26 + $0x6c8] sm:$0xff] }
  0x4f   : > { %12193 = vmatpush3.bf16.msra.mxu0 %v12192_v50  ;;  %v1203_v50 = vld [vmem:[%s16144_s26] sm:$0xff] }
  0x50   : > { %9633 = vmatmul.mubr.msk.f32.gmra.mrb[24].mxu0 %vm808_vm1, %v778_v51  ;;  %9649 = vmatmul.mubr.msk.f32.gmra.mrb[24].mxu1 %vm808_vm1, %v794_v52  ;;  %v9777_v51 = vld [vmem:[%s16144_s26 + $0x4c0] sm:$0xff]  ;;  %v9778_v52 = vld [vmem:[%s16144_s26 + $0x4c8] sm:$0xff] }
  0x51   : > { %1064 = vmatprep.mubr.f32.mxu0 %v12912_v0  ;;  %1160 = vmatprep.mubr.f32.mxu1 %v12912_v0 }
  0x54   : > { %9634 = vmatmul.mubr.msk.f32.gmra.mrb[26].mxu0 %vm808_vm1, %v779_v53  ;;  %9650 = vmatmul.mubr.msk.f32.gmra.mrb[26].mxu1 %vm808_vm1, %v795_v54  ;;  %v12194_v53 = vpack.c.bf16 %v9778_v52, %v9777_v51  ;;  %v9761_v54 = vld [vmem:[%s16144_s26 + $0x440] sm:$0xff]  ;;  %v1204_v51 = vld [vmem:[%s16144_s26 + $0x8] sm:$0xff] }
  0x55   : > { %1070 = vmatprep.mubr.f32.mxu0 %v12912_v0  ;;  %1166 = vmatprep.mubr.f32.mxu1 %v12912_v0  ;;  %v12084_v1 = vpack.c.bf16 %v1204_v51, %v1203_v50  ;;  %v1228_v50 = vld [vmem:[%s16144_s26 + $0xc8] sm:$0xff]  ;;  %v9831_v51 = vld [vmem:[%s16144_s26 + $0x670] sm:$0xff] }
  0x56   : > { %12195 = vmatprep.subr.bf16.mxu0 %v12194_v53  ;;  %v12256_v53 = vpack.c.bf16 %v9824_v46, %v9823_v45  ;;  %v1210_v45 = vld [vmem:[%s16144_s26 + $0x38] sm:$0xff]  ;;  %v1227_v46 = vld [vmem:[%s16144_s26 + $0xc0] sm:$0xff] }
  0x58   : > { %9635 = vmatmul.mubr.msk.f32.gmra.mrb[28].mxu0 %vm808_vm1, %v780_v55  ;;  %9651 = vmatmul.mubr.msk.f32.gmra.mrb[28].mxu1 %vm808_vm1, %v796_v56  ;;  %v9762_v55 = vld [vmem:[%s16144_s26 + $0x448] sm:$0xff] }
  0x59   : > { %1076 = vmatprep.mubr.f32.mxu0 %v12912_v0  ;;  %1172 = vmatprep.mubr.f32.mxu1 %v12912_v0  ;;  %v12196_v56 = vpack.c.bf16 %v9762_v55, %v9761_v54  ;;  %v1221_v55 = vld [vmem:[%s16144_s26 + $0x90] sm:$0xff] }
  0x5b   : > { %12197 = vmatpush3.bf16.msra.mxu0 %v12196_v56 }
  0x5c   : > { %9636 = vmatmul.mubr.msk.f32.gmra.mrb[30].mxu0 %vm808_vm1, %v781_v57  ;;  %9652 = vmatmul.mubr.msk.f32.gmra.mrb[30].mxu1 %vm808_vm1, %v797_v58  ;;  %v9779_v57 = vld [vmem:[%s16144_s26 + $0x4d0] sm:$0xff]  ;;  %v9780_v58 = vld [vmem:[%s16144_s26 + $0x4d8] sm:$0xff] }
  0x5d   : > { %1178 = vmatprep.mubr.f32.mxu1 %v12912_v0 }
  0x60   : > { %9653 = vmatmul.mubr.msk.f32.gmra.mrb[32].mxu1 %vm808_vm1, %v798_v59  ;;  %v12198_v59 = vpack.c.bf16 %v9780_v58, %v9779_v57  ;;  %v12258_v57 = vpack.c.bf16 %v9842_v48, %v9841_v47  ;;  %v9825_v58 = vld [vmem:[%s16144_s26 + $0x640] sm:$0xff] }
  0x61   : > { %1184 = vmatprep.mubr.f32.mxu1 %v12912_v0 }
  0x62   : > { %12199 = vmatprep.subr.bf16.mxu0 %v12198_v59  ;;  %v9826_v59 = vld [vmem:[%s16144_s26 + $0x648] sm:$0xff] }
  0x64   : > { %9654 = vmatmul.mubr.msk.f32.gmra.mrb[34].mxu1 %vm808_vm1, %v799_v60  ;;  %v9763_v60 = vld [vmem:[%s16144_s26 + $0x450] sm:$0xff] }
  0x65   : > { %1190 = vmatprep.mubr.f32.mxu1 %v12912_v0 }
  0x68   : > { %9655 = vmatmul.mubr.msk.f32.gmra.mrb[36].mxu1 %vm808_vm1, %v800_v61  ;;  %v9764_v61 = vld [vmem:[%s16144_s26 + $0x458] sm:$0xff] }
  0x69   : > { %1196 = vmatprep.mubr.f32.mxu1 %v12912_v0 }
  0x6c   : > { %9656 = vmatmul.mubr.msk.f32.gmra.mrb[38].mxu1 %vm808_vm1, %v801_v62  ;;  %v12200_v62 = vpack.c.bf16 %v9764_v61, %v9763_v60  ;;  %v1222_v60 = vld [vmem:[%s16144_s26 + $0x98] sm:$0xff]  ;;  %v9843_v61 = vld [vmem:[%s16144_s26 + $0x6d0] sm:$0xff] }
  0x6d   : > { %v12086_v7 = vpack.c.bf16 %v1222_v60, %v1221_v55  ;;  %v9898_v55 = vld [vmem:[%s16144_s26 + $0x888] sm:$0xff]  ;;  %v12098_v60 = vpack.c.bf16 %v1228_v50, %v1227_v46 }
  0x6e   : > { %12201 = vmatpush3.bf16.msra.mxu0 %v12200_v62  ;;  %v9844_v62 = vld [vmem:[%s16144_s26 + $0x6d8] sm:$0xff]  ;;  %v9886_v50 = vld [vmem:[%s16144_s26 + $0x828] sm:$0xff] }
  0x6f   : > { %12203 = vmatprep.subr.bf16.mxu0 %v12202_v2  ;;  %v1205_v2 = vld [vmem:[%s16144_s26 + $0x10] sm:$0xff]  ;;  %v12262_v10 = vpack.c.bf16 %v9844_v62, %v9843_v61  ;;  %v1211_v61 = vld [vmem:[%s16144_s26 + $0x40] sm:$0xff]  ;;  %v1212_v62 = vld [vmem:[%s16144_s26 + $0x48] sm:$0xff] }
  0x70   : > { %v12088_v17 = vpack.c.bf16 %v1206_v3, %v1205_v2  ;;  %v1230_v3 = vld [vmem:[%s16144_s26 + $0xd8] sm:$0xff] }
  0x72   : > { %12205 = vmatpush3.bf16.msra.mxu0 %v12204_v5  ;;  %v12260_v5 = vpack.c.bf16 %v9826_v59, %v9825_v58 }
  0x73   : > { %12207 = vmatprep.subr.bf16.mxu0 %v12206_v8  ;;  %v1223_v8 = vld [vmem:[%s16144_s26 + $0xa0] sm:$0xff] }
  0x74   : > { %v12090_v25 = vpack.c.bf16 %v1224_v13, %v1223_v8  ;;  %v9899_v8 = vld [vmem:[%s16144_s26 + $0x890] sm:$0xff] }
  0x76   : > { %12209 = vmatpush3.bf16.msra.mxu0 %v12208_v11  ;;  %v9827_v11 = vld [vmem:[%s16144_s26 + $0x650] sm:$0xff] }
  0x77   : > { %12243 = vmatprep.subr.bf16.mxu0 %v12242_v14  ;;  %v9845_v14 = vld [vmem:[%s16144_s26 + $0x6e0] sm:$0xff] }
  0x78   : > { %v12266_v28 = vpack.c.bf16 %v9846_v15, %v9845_v14  ;;  %v1213_v15 = vld [vmem:[%s16144_s26 + $0x50] sm:$0xff] }
  0xf3   : > { %v13462_v19 = vpop.f32.mrb[0].mxu0  ;;  %v1084_v20 = vpop.f32.mrb[0].mxu1 }
  0xf4   : > { %v13464_v22 = vpop.f32.mrb[1].mxu0  ;;  %v1086_v23 = vpop.f32.mrb[1].mxu1 }
  0xf5   : > { %1779 = vmatprep.mubr.f32.mxu0 %v1086_v23  ;;  %v12264_v23 = vpack.c.bf16 %v9828_v12, %v9827_v11  ;;  %v12100_v11 = vpack.c.bf16 %v1212_v62, %v1211_v61  ;;  %v9705_v61 = vld [vmem:[%s16144_s26 + $0x280] sm:$0xff] }
  0xf6   : > { %1780 = vmatmul.mubr.f32.vlgmr.msra.gmra.mrb[32].mxu0 %v1084_v20  ;;  %v1208_v20 = vld [vmem:[%s16144_s26 + $0x28] sm:$0xff] }
  0xf7   : > { %v13478_v29 = vpop.f32.mrb[2].mxu0  ;;  %v1090_v30 = vpop.f32.mrb[2].mxu1  ;;  %12245 = vmatpush3.bf16.msra.mxu0 %v12244_v21  ;;  %v12092_v37 = vpack.c.bf16 %v1208_v20, %v1207_v18 }
  0xf8   : > { %v13480_v32 = vpop.f32.mrb[3].mxu0  ;;  %v1092_v33 = vpop.f32.mrb[3].mxu1  ;;  %12247 = vmatprep.subr.bf16.mxu0 %v12246_v24 }
  0xf9   : > { %1784 = vmatprep.mubr.f32.mxu0 %v1092_v33  ;;  %v1226_v33 = vld [vmem:[%s16144_s26 + $0xb8] sm:$0xff] }
  0xfa   : > { %1785 = vmatmul.mubr.f32.gmra.mrb[34].mxu0 %v1090_v30  ;;  %v9829_v30 = vld [vmem:[%s16144_s26 + $0x660] sm:$0xff] }
  0xfb   : > { %v13494_v39 = vpop.f32.mrb[4].mxu0  ;;  %v1096_v40 = vpop.f32.mrb[4].mxu1  ;;  %12249 = vmatpush3.bf16.msra.mxu0 %v12248_v31  ;;  %v9830_v31 = vld [vmem:[%s16144_s26 + $0x668] sm:$0xff] }
  0xfc   : > { %v13496_v42 = vpop.f32.mrb[5].mxu0  ;;  %v1098_v43 = vpop.f32.mrb[5].mxu1  ;;  %12251 = vmatprep.subr.bf16.mxu0 %v12250_v34  ;;  %v9847_v34 = vld [vmem:[%s16144_s26 + $0x6f0] sm:$0xff] }
  0xfd   : > { %1789 = vmatprep.mubr.f32.mxu0 %v1098_v43  ;;  %v12094_v43 = vpack.c.bf16 %v1226_v33, %v1225_v26  ;;  %v12270_v48 = vpack.c.bf16 %v9848_v35, %v9847_v34  ;;  %v9884_v26 = vld [vmem:[%s16144_s26 + $0x818] sm:$0xff] }
  0xfe   : > { %1790 = vmatmul.mubr.f32.gmra.mrb[36].mxu0 %v1096_v40  ;;  %v12268_v40 = vpack.c.bf16 %v9830_v31, %v9829_v30  ;;  %v9902_v30 = vld [vmem:[%s16144_s26 + $0x8a8] sm:$0xff] }
  0xff   : > { %v13510_v49 = vpop.f32.mrb[6].mxu0  ;;  %v1102_v52 = vpop.f32.mrb[6].mxu1  ;;  %12253 = vmatpush3.bf16.msra.mxu0 %v12252_v41 }
 0x100   : > { %v13518_v54 = vpop.f32.mrb[7].mxu0  ;;  %v1104_v56 = vpop.f32.mrb[7].mxu1  ;;  %12255 = vmatprep.subr.bf16.mxu0 %v12254_v44  ;;  %v1209_v44 = vld [vmem:[%s16144_s26 + $0x30] sm:$0xff] }
 0x101   : > { %1794 = vmatprep.mubr.f32.mxu0 %v1104_v56 }
 0x102   : > { %1795 = vmatmul.mubr.f32.gmra.mrb[38].mxu0 %v1102_v52  ;;  %v9832_v52 = vld [vmem:[%s16144_s26 + $0x678] sm:$0xff] }
 0x103   : > { %v1012_v63 = vpop.f32.mrb[8].mxu0  ;;  %12257 = vmatpush3.bf16.msra.mxu0 %v12256_v53  ;;  %v13544_v4 = vpop.f32.mrb[8].mxu1  ;;  %v9897_v53 = vld [vmem:[%s16144_s26 + $0x880] sm:$0xff]  ;;  %v12272_v2 = vpack.c.bf16 %v9832_v52, %v9831_v51  ;;  %v9903_v51 = vld [vmem:[%s16144_s26 + $0x8b0] sm:$0xff]  ;;  %v9904_v52 = vld [vmem:[%s16144_s26 + $0x8b8] sm:$0xff] }
 0x104   : > { %v1014_v6 = vpop.f32.mrb[9].mxu0  ;;  %v13549_v9 = vpop.f32.mrb[9].mxu1  ;;  %12259 = vmatprep.subr.bf16.mxu0 %v12258_v57  ;;  %v12096_v57 = vpack.c.bf16 %v1210_v45, %v1209_v44  ;;  %v1234_v45 = vld [vmem:[%s16144_s26 + $0xf8] sm:$0xff] }
 0x105   : > { %1332 = vmatprep.mubr.f32.mxu1 %v1014_v6  ;;  %v9881_v6 = vld [vmem:[%s16144_s26 + $0x800] sm:$0xff] }
 0x106   : > { %1333 = vmatmul.mubr.f32.vlgmr.msra.gmra.mrb[40].mxu1 %v1012_v63  ;;  %v1229_v63 = vld [vmem:[%s16144_s26 + $0xd0] sm:$0xff] }
 0x107   : > { %12085 = vmatpush3.bf16.msra.mxu1 %v12084_v1  ;;  %v1018_v16 = vpop.f32.mrb[10].mxu0  ;;  %12261 = vmatpush3.bf16.msra.mxu0 %v12260_v5  ;;  %v13572_v21 = vpop.f32.mrb[10].mxu1  ;;  %v12306_v5 = vpack.c.bf16 %v9898_v55, %v9897_v53  ;;  %v12102_v14 = vpack.c.bf16 %v1230_v3, %v1229_v63  ;;  %v9706_v3 = vld [vmem:[%s16144_s26 + $0x288] sm:$0xff] }
 0x108   : > { %v1020_v24 = vpop.f32.mrb[11].mxu0  ;;  %12087 = vmatprep.subr.bf16.mxu1 %v12086_v7  ;;  %v13577_v27 = vpop.f32.mrb[11].mxu1  ;;  %12263 = vmatprep.subr.bf16.mxu0 %v12262_v10  ;;  %v9882_v7 = vld [vmem:[%s16144_s26 + $0x808] sm:$0xff]  ;;  %v9900_v10 = vld [vmem:[%s16144_s26 + $0x898] sm:$0xff] }
 0x109   : > { %1337 = vmatprep.mubr.f32.mxu1 %v1020_v24  ;;  %v12308_v20 = vpack.c.bf16 %v9882_v7, %v9881_v6  ;;  %v12310_v24 = vpack.c.bf16 %v9900_v10, %v9899_v8  ;;  %v9887_v6 = vld [vmem:[%s16144_s26 + $0x830] sm:$0xff]  ;;  %v9888_v7 = vld [vmem:[%s16144_s26 + $0x838] sm:$0xff]  ;;  %v9905_v8 = vld [vmem:[%s16144_s26 + $0x8c0] sm:$0xff] }
 0x10a   : > { %1338 = vmatmul.mubr.f32.gmra.mrb[42].mxu1 %v1018_v16  ;;  %v1214_v16 = vld [vmem:[%s16144_s26 + $0x58] sm:$0xff]  ;;  %v9906_v10 = vld [vmem:[%s16144_s26 + $0x8c8] sm:$0xff] }
 0x10b   : > { %12089 = vmatpush3.bf16.msra.mxu1 %v12088_v17  ;;  %v1024_v36 = vpop.f32.mrb[12].mxu0  ;;  %12265 = vmatpush3.bf16.msra.mxu0 %v12264_v23  ;;  %v13594_v38 = vpop.f32.mrb[12].mxu1  ;;  %v1231_v17 = vld [vmem:[%s16144_s26 + $0xe0] sm:$0xff]  ;;  %v1232_v23 = vld [vmem:[%s16144_s26 + $0xe8] sm:$0xff]  ;;  %v12104_v31 = vpack.c.bf16 %v1214_v16, %v1213_v15  ;;  %v12114_v15 = vpack.c.bf16 %v9706_v3, %v9705_v61 }
 0x10c   : > { %v1026_v41 = vpop.f32.mrb[13].mxu0  ;;  %12091 = vmatprep.subr.bf16.mxu1 %v12090_v25  ;;  %v13605_v47 = vpop.f32.mrb[13].mxu1  ;;  %12267 = vmatprep.subr.bf16.mxu0 %v12266_v28  ;;  %v9883_v25 = vld [vmem:[%s16144_s26 + $0x810] sm:$0xff]  ;;  %v9901_v28 = vld [vmem:[%s16144_s26 + $0x8a0] sm:$0xff]  ;;  %v12106_v35 = vpack.c.bf16 %v1232_v23, %v1231_v17  ;;  %v9690_v17 = vld [vmem:[%s16144_s26 + $0x208] sm:$0xff] }
 0x10d   : > { %1342 = vmatprep.mubr.f32.mxu1 %v1026_v41  ;;  %v12312_v44 = vpack.c.bf16 %v9884_v26, %v9883_v25  ;;  %v12314_v46 = vpack.c.bf16 %v9902_v30, %v9901_v28  ;;  %v9689_v16 = vld [vmem:[%s16144_s26 + $0x200] sm:$0xff]  ;;  %v9708_v25 = vld [vmem:[%s16144_s26 + $0x298] sm:$0xff]  ;;  %v12322_v26 = vpack.c.bf16 %v9906_v10, %v9905_v8  ;;  %v9890_v30 = vld [vmem:[%s16144_s26 + $0x848] sm:$0xff] }
 0x10e   : > { %1343 = vmatmul.mubr.f32.gmra.mrb[44].mxu1 %v1024_v36  ;;  %v1215_v36 = vld [vmem:[%s16144_s26 + $0x60] sm:$0xff]  ;;  %v9694_v3 = vld [vmem:[%s16144_s26 + $0x228] sm:$0xff]  ;;  %v9712_v8 = vld [vmem:[%s16144_s26 + $0x2b8] sm:$0xff] }
 0x10f   : > { %12093 = vmatpush3.bf16.msra.mxu1 %v12092_v37  ;;  %v1030_v56 = vpop.f32.mrb[14].mxu0  ;;  %12269 = vmatpush3.bf16.msra.mxu0 %v12268_v40  ;;  %v13622_v58 = vpop.f32.mrb[14].mxu1  ;;  %v1216_v37 = vld [vmem:[%s16144_s26 + $0x68] sm:$0xff]  ;;  %v1233_v40 = vld [vmem:[%s16144_s26 + $0xf0] sm:$0xff]  ;;  %v9889_v28 = vld [vmem:[%s16144_s26 + $0x840] sm:$0xff] }
 0x110   : > { %v1032_v59 = vpop.f32.mrb[15].mxu0  ;;  %12095 = vmatprep.subr.bf16.mxu1 %v12094_v43  ;;  %v13633_v1 = vpop.f32.mrb[15].mxu1  ;;  %12271 = vmatprep.subr.bf16.mxu0 %v12270_v48  ;;  %v9885_v48 = vld [vmem:[%s16144_s26 + $0x820] sm:$0xff]  ;;  %v12108_v53 = vpack.c.bf16 %v1216_v37, %v1215_v36 }
 0x111   : > { %1347 = vmatprep.mubr.f32.mxu1 %v1032_v59  ;;  %v1217_v59 = vld [vmem:[%s16144_s26 + $0x70] sm:$0xff] }
 0x112   : > { %1348 = vmatmul.mubr.f32.gmra.mrb[46].mxu1 %v1030_v56 }
 0x113   : > { %12097 = vmatpush3.bf16.msra.mxu1 %v12096_v57  ;;  %1417 = vmatprep.mubr.f32.mxu1 %v13464_v22  ;;  %v13651_v12 = vpop.f32.mrb[16].mxu0  ;;  %v1132_v13 = vpop.f32.mrb[16].mxu1  ;;  %v12110_v57 = vpack.c.bf16 %v1234_v45, %v1233_v40  ;;  %v9709_v45 = vld [vmem:[%s16144_s26 + $0x2a0] sm:$0xff] }
 0x114   : > { %12099 = vmatprep.subr.bf16.mxu1 %v12098_v60  ;;  %v13662_v18 = vpop.f32.mrb[17].mxu0  ;;  %12273 = vmatpush3.bf16.msra.mxu0 %v12272_v2  ;;  %v1134_v22 = vpop.f32.mrb[17].mxu1  ;;  %v1218_v60 = vld [vmem:[%s16144_s26 + $0x78] sm:$0xff]  ;;  %v12316_v2 = vpack.c.bf16 %v9886_v50, %v9885_v48  ;;  %v12324_v50 = vpack.c.bf16 %v9890_v30, %v9889_v28 }
 0x115   : > { %2023 = vmatprep.mubr.f32.mxu0 %v1134_v22  ;;  %12307 = vmatprep.subr.bf16.mxu0 %v12306_v5  ;;  %v12318_v5 = vpack.c.bf16 %v9904_v52, %v9903_v51  ;;  %v9707_v22 = vld [vmem:[%s16144_s26 + $0x290] sm:$0xff]  ;;  %v9710_v51 = vld [vmem:[%s16144_s26 + $0x2a8] sm:$0xff] }
 0x116   : > { %v12118_v40 = vpack.c.bf16 %v9708_v25, %v9707_v22  ;;  %v9696_v25 = vld [vmem:[%s16144_s26 + $0x238] sm:$0xff] }
 0x117   : > { %12101 = vmatpush3.bf16.msra.mxu1 %v12100_v11  ;;  %v13679_v33 = vpop.f32.mrb[18].mxu0  ;;  %2024 = vmatmul.mubr.f32.vlgmr.msra.gmra.mrb[40].mxu0 %v1132_v13  ;;  %v1138_v34 = vpop.f32.mrb[18].mxu1  ;;  %v12112_v11 = vpack.c.bf16 %v1218_v60, %v1217_v59  ;;  %v9910_v59 = vld [vmem:[%s16144_s26 + $0x8e8] sm:$0xff] }
 0x118   : > { %12103 = vmatprep.subr.bf16.mxu1 %v12102_v14  ;;  %v13690_v41 = vpop.f32.mrb[19].mxu0  ;;  %12309 = vmatpush3.bf16.msra.mxu0 %v12308_v20  ;;  %v1140_v43 = vpop.f32.mrb[19].mxu1 }
 0x119   : > { %2028 = vmatprep.mubr.f32.mxu0 %v1140_v43  ;;  %12311 = vmatprep.subr.bf16.mxu0 %v12310_v24  ;;  %v12320_v24 = vpack.c.bf16 %v9888_v7, %v9887_v6  ;;  %v9691_v43 = vld [vmem:[%s16144_s26 + $0x210] sm:$0xff] }
 0x11b   : > { %12105 = vmatpush3.bf16.msra.mxu1 %v12104_v31  ;;  %v13707_v55 = vpop.f32.mrb[20].mxu0  ;;  %2029 = vmatmul.mubr.f32.gmra.mrb[42].mxu0 %v1138_v34  ;;  %v1144_v56 = vpop.f32.mrb[20].mxu1  ;;  %v9907_v31 = vld [vmem:[%s16144_s26 + $0x8d0] sm:$0xff]  ;;  %v9908_v34 = vld [vmem:[%s16144_s26 + $0x8d8] sm:$0xff] }
 0x11c   : > { %12107 = vmatprep.subr.bf16.mxu1 %v12106_v35  ;;  %v13718_v62 = vpop.f32.mrb[21].mxu0  ;;  %12313 = vmatpush3.bf16.msra.mxu0 %v12312_v44  ;;  %v1146_v63 = vpop.f32.mrb[21].mxu1  ;;  %v12116_v35 = vpack.c.bf16 %v9690_v17, %v9689_v16  ;;  %v9692_v44 = vld [vmem:[%s16144_s26 + $0x218] sm:$0xff]  ;;  %v12326_v52 = vpack.c.bf16 %v9908_v34, %v9907_v31  ;;  %v9714_v31 = vld [vmem:[%s16144_s26 + $0x2c8] sm:$0xff] }
 0x11d   : > { %2033 = vmatprep.mubr.f32.mxu0 %v1146_v63  ;;  %12315 = vmatprep.subr.bf16.mxu0 %v12314_v46  ;;  %v12120_v60 = vpack.c.bf16 %v9692_v44, %v9691_v43  ;;  %v9912_v16 = vld [vmem:[%s16144_s26 + $0x8f8] sm:$0xff] }
 0x11f   : > { %12109 = vmatpush3.bf16.msra.mxu1 %v12108_v53  ;;  %v13735_v13 = vpop.f32.mrb[22].mxu0  ;;  %2034 = vmatmul.mubr.f32.gmra.mrb[44].mxu0 %v1144_v56  ;;  %v1150_v14 = vpop.f32.mrb[22].mxu1  ;;  %v9891_v53 = vld [vmem:[%s16144_s26 + $0x850] sm:$0xff]  ;;  %v9892_v56 = vld [vmem:[%s16144_s26 + $0x858] sm:$0xff] }
 0x120   : > { %12111 = vmatprep.subr.bf16.mxu1 %v12110_v57  ;;  %v13746_v20 = vpop.f32.mrb[23].mxu0  ;;  %12317 = vmatpush3.bf16.msra.mxu0 %v12316_v2  ;;  %v1152_v23 = vpop.f32.mrb[23].mxu1  ;;  %v9909_v57 = vld [vmem:[%s16144_s26 + $0x8e0] sm:$0xff]  ;;  %v12122_v2 = vpack.c.bf16 %v9710_v51, %v9709_v45  ;;  %v12328_v7 = vpack.c.bf16 %v9892_v56, %v9891_v53  ;;  %v9715_v56 = vld [vmem:[%s16144_s26 + $0x2d0] sm:$0xff] }
 0x121   : > { %2038 = vmatprep.mubr.f32.mxu0 %v1152_v23  ;;  %12319 = vmatprep.subr.bf16.mxu0 %v12318_v5  ;;  %v12330_v10 = vpack.c.bf16 %v9910_v59, %v9909_v57  ;;  %v9697_v51 = vld [vmem:[%s16144_s26 + $0x240] sm:$0xff]  ;;  %v9716_v57 = vld [vmem:[%s16144_s26 + $0x2d8] sm:$0xff] }
 0x123   : > { %12113 = vmatpush3.bf16.msra.mxu1 %v12112_v11  ;;  %v13763_v36 = vpop.f32.mrb[24].mxu0  ;;  %2039 = vmatmul.mubr.f32.gmra.mrb[46].mxu0 %v1150_v14  ;;  %v13765_v37 = vpop.f32.mrb[24].mxu1  ;;  %v9893_v11 = vld [vmem:[%s16144_s26 + $0x860] sm:$0xff]  ;;  %v9894_v14 = vld [vmem:[%s16144_s26 + $0x868] sm:$0xff] }
 0x124   : > { %12115 = vmatprep.subr.bf16.mxu1 %v12114_v15  ;;  %v13776_v46 = vpop.f32.mrb[25].mxu0  ;;  %12321 = vmatpush3.bf16.msra.mxu0 %v12320_v24  ;;  %v13778_v48 = vpop.f32.mrb[25].mxu1  ;;  %v9911_v15 = vld [vmem:[%s16144_s26 + $0x8f0] sm:$0xff]  ;;  %v12332_v30 = vpack.c.bf16 %v9894_v14, %v9893_v11  ;;  %v9701_v11 = vld [vmem:[%s16144_s26 + $0x260] sm:$0xff]  ;;  %v9702_v14 = vld [vmem:[%s16144_s26 + $0x268] sm:$0xff] }
 0x125   : > { %12323 = vmatprep.subr.bf16.mxu0 %v12322_v26  ;;  %v12334_v34 = vpack.c.bf16 %v9912_v16, %v9911_v15  ;;  %v9719_v16 = vld [vmem:[%s16144_s26 + $0x2f0] sm:$0xff] }
 0x126   : > { %1418 = vmatmul.mubr.f32.vlgmr.msra.gmra.mrb[48].mxu1 %v13462_v19  ;;  %v9693_v19 = vld [vmem:[%s16144_s26 + $0x220] sm:$0xff] }
 0x127   : > { %1422 = vmatprep.mubr.f32.mxu1 %v13480_v32  ;;  %12117 = vmatpush3.bf16.msra.mxu1 %v12116_v35  ;;  %v13797_v61 = vpop.f32.mrb[26].mxu0  ;;  %v13799_v63 = vpop.f32.mrb[26].mxu1  ;;  %v9711_v32 = vld [vmem:[%s16144_s26 + $0x2b0] sm:$0xff]  ;;  %v12124_v17 = vpack.c.bf16 %v9694_v3, %v9693_v19  ;;  %v9700_v3 = vld [vmem:[%s16144_s26 + $0x258] sm:$0xff] }
 0x128   : > { %12119 = vmatprep.subr.bf16.mxu1 %v12118_v40  ;;  %v13810_v5 = vpop.f32.mrb[27].mxu0  ;;  %12325 = vmatpush3.bf16.msra.mxu0 %v12324_v50  ;;  %v13812_v6 = vpop.f32.mrb[27].mxu1  ;;  %v12126_v24 = vpack.c.bf16 %v9712_v8, %v9711_v32  ;;  %v9895_v35 = vld [vmem:[%s16144_s26 + $0x870] sm:$0xff]  ;;  %v9896_v40 = vld [vmem:[%s16144_s26 + $0x878] sm:$0xff] }
 0x129   : > { %12327 = vmatprep.subr.bf16.mxu0 %v12326_v52  ;;  %v9698_v52 = vld [vmem:[%s16144_s26 + $0x248] sm:$0xff]  ;;  %v9699_v19 = vld [vmem:[%s16144_s26 + $0x250] sm:$0xff] }
 0x12a   : > { %1423 = vmatmul.mubr.f32.gmra.mrb[50].mxu1 %v13478_v29  ;;  %v9695_v29 = vld [vmem:[%s16144_s26 + $0x230] sm:$0xff]  ;;  %v12132_v59 = vpack.c.bf16 %v9698_v52, %v9697_v51  ;;  %v9721_v51 = vld [vmem:[%s16144_s26 + $0x300] sm:$0xff]  ;;  %v9722_v52 = vld [vmem:[%s16144_s26 + $0x308] sm:$0xff] }
 0x12b   : > { %1427 = vmatprep.mubr.f32.mxu1 %v13496_v42  ;;  %12121 = vmatpush3.bf16.msra.mxu1 %v12120_v60  ;;  %v13831_v22 = vpop.f32.mrb[28].mxu0  ;;  %v13833_v23 = vpop.f32.mrb[28].mxu1  ;;  %v9713_v42 = vld [vmem:[%s16144_s26 + $0x2c0] sm:$0xff]  ;;  %v12128_v43 = vpack.c.bf16 %v9696_v25, %v9695_v29 }
 0x12c   : > { %12123 = vmatprep.subr.bf16.mxu1 %v12122_v2  ;;  %v13844_v26 = vpop.f32.mrb[29].mxu0  ;;  %12329 = vmatpush3.bf16.msra.mxu0 %v12328_v7  ;;  %v13846_v28 = vpop.f32.mrb[29].mxu1  ;;  %v12130_v50 = vpack.c.bf16 %v9714_v31, %v9713_v42  ;;  %v12134_v2 = vpack.c.bf16 %v9716_v57, %v9715_v56  ;;  %v12136_v7 = vpack.c.bf16 %v9700_v3, %v9699_v19  ;;  %v9703_v42 = vld [vmem:[%s16144_s26 + $0x270] sm:$0xff]  ;;  %v9740_v57 = vld [vmem:[%s16144_s26 + $0x398] sm:$0xff]  ;;  %v9741_v3 = vld [vmem:[%s16144_s26 + $0x3a0] sm:$0xff] }
 0x12d   : > { %12331 = vmatprep.subr.bf16.mxu0 %v12330_v10  ;;  %v9739_v56 = vld [vmem:[%s16144_s26 + $0x390] sm:$0xff]  ;;  %v9724_v19 = vld [vmem:[%s16144_s26 + $0x318] sm:$0xff] }
 0x12e   : > { %1428 = vmatmul.mubr.f32.gmra.mrb[52].mxu1 %v13494_v39 }
 0x12f   : > { %1432 = vmatprep.mubr.f32.mxu1 %v13518_v54  ;;  %12125 = vmatpush3.bf16.msra.mxu1 %v12124_v17  ;;  %v13859_v44 = vpop.f32.mrb[30].mxu0  ;;  %v13861_v45 = vpop.f32.mrb[30].mxu1  ;;  %v12336_v54 = vpack.c.bf16 %v9896_v40, %v9895_v35  ;;  %v9720_v17 = vld [vmem:[%s16144_s26 + $0x2f8] sm:$0xff]  ;;  %v9738_v35 = vld [vmem:[%s16144_s26 + $0x388] sm:$0xff] }
 0x130   : > { %12127 = vmatprep.subr.bf16.mxu1 %v12126_v24  ;;  %v13869_v53 = vpop.f32.mrb[31].mxu0  ;;  %12333 = vmatpush3.bf16.msra.mxu0 %v12332_v30  ;;  %v13871_v39 = vpop.f32.mrb[31].mxu1  ;;  %v12140_v24 = vpack.c.bf16 %v9702_v14, %v9701_v11  ;;  %v12142_v25 = vpack.c.bf16 %v9720_v17, %v9719_v16  ;;  %v9704_v30 = vld [vmem:[%s16144_s26 + $0x278] sm:$0xff]  ;;  %v9727_v14 = vld [vmem:[%s16144_s26 + $0x330] sm:$0xff]  ;;  %v9745_v16 = vld [vmem:[%s16144_s26 + $0x3c0] sm:$0xff] }
 0x131   : > { %12335 = vmatprep.subr.bf16.mxu0 %v12334_v34  ;;  %v9737_v34 = vld [vmem:[%s16144_s26 + $0x380] sm:$0xff]  ;;  %v12144_v40 = vpack.c.bf16 %v9704_v30, %v9703_v42  ;;  %v9731_v30 = vld [vmem:[%s16144_s26 + $0x350] sm:$0xff] }
 0x132   : > { %1433 = vmatmul.mubr.f32.gmra.mrb[54].mxu1 %v13510_v49  ;;  %v9717_v49 = vld [vmem:[%s16144_s26 + $0x2e0] sm:$0xff] }
 0x133   : > { %12129 = vmatpush3.bf16.msra.mxu1 %v12128_v43  ;;  %1535 = vmatprep.mubr.f32.mxu1 %v13662_v18  ;;  %v1180_v60 = vpop.f32.mrb[32].mxu1  ;;  %v9718_v18 = vld [vmem:[%s16144_s26 + $0x2e8] sm:$0xff] }
 0x134   : > { %12131 = vmatprep.subr.bf16.mxu1 %v12130_v50  ;;  %12337 = vmatpush3.bf16.msra.mxu0 %v12336_v54  ;;  %v1182_v32 = vpop.f32.mrb[33].mxu1  ;;  %v12138_v10 = vpack.c.bf16 %v9718_v18, %v9717_v49  ;;  %v12146_v50 = vpack.c.bf16 %v9738_v35, %v9737_v34  ;;  %v9749_v34 = vld [vmem:[%s16144_s26 + $0x3e0] sm:$0xff] }
 0x135   : > { %2267 = vmatprep.mubr.f32.mxu0 %v1182_v32  ;;  %v9742_v32 = vld [vmem:[%s16144_s26 + $0x3a8] sm:$0xff] }
 0x136   : > { %v12154_v18 = vpack.c.bf16 %v9742_v32, %v9741_v3  ;;  %v9785_v3 = vld [vmem:[%s16144_s26 + $0x500] sm:$0xff]  ;;  %v9786_v32 = vld [vmem:[%s16144_s26 + $0x508] sm:$0xff] }
 0x137   : > { %12133 = vmatpush3.bf16.msra.mxu1 %v12132_v59  ;;  %2268 = vmatmul.mubr.f32.vlgmr.msra.gmra.mrb[48].mxu0 %v1180_v60  ;;  %v1186_v8 = vpop.f32.mrb[34].mxu1  ;;  %v12148_v59 = vpack.c.bf16 %v9722_v52, %v9721_v51  ;;  %v12150_v60 = vpack.c.bf16 %v9740_v57, %v9739_v56  ;;  %v9752_v51 = vld [vmem:[%s16144_s26 + $0x3f8] sm:$0xff]  ;;  %v9735_v56 = vld [vmem:[%s16144_s26 + $0x370] sm:$0xff] }
 0x138   : > { %12135 = vmatprep.subr.bf16.mxu1 %v12134_v2  ;;  %v1188_v15 = vpop.f32.mrb[35].mxu1  ;;  %v9723_v2 = vld [vmem:[%s16144_s26 + $0x310] sm:$0xff]  ;;  %v9736_v57 = vld [vmem:[%s16144_s26 + $0x378] sm:$0xff] }
 0x139   : > { %2272 = vmatprep.mubr.f32.mxu0 %v1188_v15  ;;  %v12152_v49 = vpack.c.bf16 %v9724_v19, %v9723_v2  ;;  %v9728_v15 = vld [vmem:[%s16144_s26 + $0x338] sm:$0xff]  ;;  %v12176_v2 = vpack.c.bf16 %v9736_v57, %v9735_v56  ;;  %v9815_v56 = vld [vmem:[%s16144_s26 + $0x5f0] sm:$0xff] }
 0x13a   : > { %v9816_v57 = vld [vmem:[%s16144_s26 + $0x5f8] sm:$0xff] }
 0x13b   : > { %12137 = vmatpush3.bf16.msra.mxu1 %v12136_v7  ;;  %2273 = vmatmul.mubr.f32.gmra.mrb[50].mxu0 %v1186_v8  ;;  %v1192_v29 = vpop.f32.mrb[36].mxu1  ;;  %v9725_v7 = vld [vmem:[%s16144_s26 + $0x320] sm:$0xff]  ;;  %v9726_v8 = vld [vmem:[%s16144_s26 + $0x328] sm:$0xff] }
 0x13c   : > { %12139 = vmatprep.subr.bf16.mxu1 %v12138_v10  ;;  %v1194_v31 = vpop.f32.mrb[37].mxu1  ;;  %v9743_v10 = vld [vmem:[%s16144_s26 + $0x3b0] sm:$0xff] }
 0x13d   : > { %2277 = vmatprep.mubr.f32.mxu0 %v1194_v31  ;;  %v9732_v31 = vld [vmem:[%s16144_s26 + $0x358] sm:$0xff] }
 0x13f   : > { %12141 = vmatpush3.bf16.msra.mxu1 %v12140_v24  ;;  %2278 = vmatmul.mubr.f32.gmra.mrb[52].mxu0 %v1192_v29  ;;  %v1198_v43 = vpop.f32.mrb[38].mxu1  ;;  %v9729_v24 = vld [vmem:[%s16144_s26 + $0x340] sm:$0xff]  ;;  %v9730_v29 = vld [vmem:[%s16144_s26 + $0x348] sm:$0xff] }
 0x140   : > { %12143 = vmatprep.subr.bf16.mxu1 %v12142_v25  ;;  %v1200_v54 = vpop.f32.mrb[39].mxu1  ;;  %v9747_v25 = vld [vmem:[%s16144_s26 + $0x3d0] sm:$0xff] }
 0x141   : > { %2282 = vmatprep.mubr.f32.mxu0 %v1200_v54 }
 0x143   : > { %12145 = vmatpush3.bf16.msra.mxu1 %v12144_v40  ;;  %2283 = vmatmul.mubr.f32.gmra.mrb[54].mxu0 %v1198_v43  ;;  %v9733_v40 = vld [vmem:[%s16144_s26 + $0x360] sm:$0xff]  ;;  %v9734_v43 = vld [vmem:[%s16144_s26 + $0x368] sm:$0xff] }
 0x144   : > { %12147 = vmatprep.subr.bf16.mxu1 %v12146_v50  ;;  %v9751_v50 = vld [vmem:[%s16144_s26 + $0x3f0] sm:$0xff]  ;;  %v12172_v52 = vpack.c.bf16 %v9734_v43, %v9733_v40  ;;  %v9796_v43 = vld [vmem:[%s16144_s26 + $0x558] sm:$0xff] }
 0x145   : > { %v12174_v54 = vpack.c.bf16 %v9752_v51, %v9751_v50  ;;  %v9795_v40 = vld [vmem:[%s16144_s26 + $0x550] sm:$0xff]  ;;  %v9813_v50 = vld [vmem:[%s16144_s26 + $0x5e0] sm:$0xff] }
 0x146   : > { %1536 = vmatmul.mubr.f32.vlgmr.msra.gmra.mrb[56].mxu1 %v13651_v12  ;;  %v9744_v12 = vld [vmem:[%s16144_s26 + $0x3b8] sm:$0xff] }
 0x147   : > { %12149 = vmatpush3.bf16.msra.mxu1 %v12148_v59  ;;  %1540 = vmatprep.mubr.f32.mxu1 %v13690_v41  ;;  %v12156_v41 = vpack.c.bf16 %v9726_v8, %v9725_v7  ;;  %v12158_v11 = vpack.c.bf16 %v9744_v12, %v9743_v10  ;;  %v9801_v59 = vld [vmem:[%s16144_s26 + $0x580] sm:$0xff]  ;;  %v12212_v7 = vpack.c.bf16 %v9786_v32, %v9785_v3  ;;  %v9787_v10 = vld [vmem:[%s16144_s26 + $0x510] sm:$0xff]  ;;  %v9788_v12 = vld [vmem:[%s16144_s26 + $0x518] sm:$0xff] }
 0x148   : > { %12151 = vmatprep.subr.bf16.mxu1 %v12150_v60  ;;  %v9802_v60 = vld [vmem:[%s16144_s26 + $0x588] sm:$0xff]  ;;  %v805_v3 = vld [vmem:[%s16145_s4 + $0x18] sm:$0xff]  ;;  %v2356_v32 = vld [vmem:[%s16146_s6] sm:$0xff] }
 0x149   : > { %v12210_v19 = vpack.c.bf16 %v9802_v60, %v9801_v59  ;;  %v9799_v60 = vld [vmem:[%s16144_s26 + $0x570] sm:$0xff] }
 0x14a   : > { %1541 = vmatmul.mubr.f32.gmra.mrb[58].mxu1 %v13679_v33  ;;  %v9746_v33 = vld [vmem:[%s16144_s26 + $0x3c8] sm:$0xff] }
 0x14b   : > { %12153 = vmatpush3.bf16.msra.mxu1 %v12152_v49  ;;  %1545 = vmatprep.mubr.f32.mxu1 %v13718_v62  ;;  %v12160_v62 = vpack.c.bf16 %v9728_v15, %v9727_v14  ;;  %v12162_v17 = vpack.c.bf16 %v9746_v33, %v9745_v16  ;;  %v9803_v49 = vld [vmem:[%s16144_s26 + $0x590] sm:$0xff]  ;;  %v12913_v14 = vmov 0   ;;  %v12216_v15 = vpack.c.bf16 %v9788_v12, %v9787_v10  ;;  %v802_v16 = vld [vmem:[%s16145_s4] sm:$0xff]  ;;  %v9850_v12 = vld [vmem:[%s16144_s26 + $0x708] sm:$0xff] }
 0x14c   : > { %12155 = vmatprep.subr.bf16.mxu1 %v12154_v18  ;;  %v9804_v18 = vld [vmem:[%s16144_s26 + $0x598] sm:$0xff]  ;;  %12893 = vset.pattern.permute.xlu0 %v12913_v14  ;;  %v804_v33 = vld [vmem:[%s16145_s4 + $0x10] sm:$0xff] }
 0x14d   : > { %v12214_v8 = vpack.c.bf16 %v9804_v18, %v9803_v49  ;;  %2294 = vperm.xlu0 %12893, %v802_v16   ;;  %12894 = vset.pattern.permute.xlu1 %v12913_v14  ;;  %v9865_v49 = vld [vmem:[%s16144_s26 + $0x780] sm:$0xff]  ;;  %v9866_v18 = vld [vmem:[%s16144_s26 + $0x788] sm:$0xff]  ;;  %v9867_v14 = vld [vmem:[%s16144_s26 + $0x790] sm:$0xff] }
 0x14e   : > { %1546 = vmatmul.mubr.f32.gmra.mrb[60].mxu1 %v13707_v55  ;;  %v9748_v55 = vld [vmem:[%s16144_s26 + $0x3d8] sm:$0xff]  ;;  %2304 = vperm.xlu1 %12894, %v804_v33   ;;  %v12274_v10 = vpack.c.bf16 %v9866_v18, %v9865_v49  ;;  %v9851_v33 = vld [vmem:[%s16144_s26 + $0x710] sm:$0xff] }
 0x14f   : > { %12157 = vmatpush3.bf16.msra.mxu1 %v12156_v41  ;;  %1550 = vmatprep.mubr.f32.mxu1 %v13746_v20  ;;  %v12164_v20 = vpack.c.bf16 %v9730_v29, %v9729_v24  ;;  %v12166_v42 = vpack.c.bf16 %v9748_v55, %v9747_v25  ;;  %v9805_v41 = vld [vmem:[%s16144_s26 + $0x5a0] sm:$0xff]  ;;  %v9808_v24 = vld [vmem:[%s16144_s26 + $0x5b8] sm:$0xff]  ;;  %v803_v29 = vld [vmem:[%s16145_s4 + $0x8] sm:$0xff] }
 0x150   : > { %12159 = vmatprep.subr.bf16.mxu1 %v12158_v11  ;;  %v9806_v11 = vld [vmem:[%s16144_s26 + $0x5a8] sm:$0xff] }
 0x151   : > { %2299 = vperm.xlu0 %12893, %v803_v29   ;;  %v9870_v29 = vld [vmem:[%s16144_s26 + $0x7a8] sm:$0xff] }
 0x152   : > { %1551 = vmatmul.mubr.f32.gmra.mrb[62].mxu1 %v13735_v13  ;;  %v9750_v13 = vld [vmem:[%s16144_s26 + $0x3e8] sm:$0xff]  ;;  %2309 = vperm.xlu1 %12894, %v805_v3  }
 0x153   : > { %12161 = vmatpush3.bf16.msra.mxu1 %v12160_v62  ;;  %1657 = vmatprep.mubr.f32.mxu1 %v13776_v46  ;;  %v12168_v46 = vpack.c.bf16 %v9732_v31, %v9731_v30  ;;  %v12170_v35 = vpack.c.bf16 %v9750_v13, %v9749_v34  ;;  %v12218_v62 = vpack.c.bf16 %v9806_v11, %v9805_v41  ;;  %v9793_v34 = vld [vmem:[%s16144_s26 + $0x540] sm:$0xff]  ;;  %v9794_v13 = vld [vmem:[%s16144_s26 + $0x548] sm:$0xff]  ;;  %v2358_v11 = vld [vmem:[%s16146_s6 + $0x10] sm:$0xff] }
 0x154   : > { %12163 = vmatprep.subr.bf16.mxu1 %v12162_v17  ;;  %v9790_v17 = vld [vmem:[%s16144_s26 + $0x528] sm:$0xff] }
 0x155   : > { %3698 = vperm.xlu0 %12893, %v2356_v32   ;;  %v2357_v41 = vld [vmem:[%s16146_s6 + $0x8] sm:$0xff] }
 0x156   : > { %3703 = vperm.xlu1 %12894, %v2357_v41  }
 0x157   : > { %12165 = vmatpush3.bf16.msra.mxu1 %v12164_v20  ;;  %v9791_v20 = vld [vmem:[%s16144_s26 + $0x530] sm:$0xff] }
 0x158   : > { %12167 = vmatprep.subr.bf16.mxu1 %v12166_v42  ;;  %v9792_v42 = vld [vmem:[%s16144_s26 + $0x538] sm:$0xff] }
 0x159   : > { %v12224_v30 = vpack.c.bf16 %v9792_v42, %v9791_v20  ;;  %3708 = vperm.xlu0 %12893, %v2358_v11   ;;  %v9853_v20 = vld [vmem:[%s16144_s26 + $0x720] sm:$0xff]  ;;  %v9854_v42 = vld [vmem:[%s16144_s26 + $0x728] sm:$0xff] }
 0x15b   : > { %12169 = vmatpush3.bf16.msra.mxu1 %v12168_v46  ;;  %v9811_v46 = vld [vmem:[%s16144_s26 + $0x5d0] sm:$0xff] }
 0x15c   : > { %12171 = vmatprep.subr.bf16.mxu1 %v12170_v35 }
 0x15f   : > { %12173 = vmatpush3.bf16.msra.mxu1 %v12172_v52  ;;  %v9797_v52 = vld [vmem:[%s16144_s26 + $0x560] sm:$0xff] }
 0x160   : > { %12175 = vmatprep.subr.bf16.mxu1 %v12174_v54  ;;  %v9798_v54 = vld [vmem:[%s16144_s26 + $0x568] sm:$0xff] }
 0x161   : > { %v12236_v59 = vpack.c.bf16 %v9798_v54, %v9797_v52  ;;  %v9862_v52 = vld [vmem:[%s16144_s26 + $0x768] sm:$0xff]  ;;  %v9879_v54 = vld [vmem:[%s16144_s26 + $0x7f0] sm:$0xff] }
 0x163   : > { %12177 = vmatpush3.bf16.msra.mxu1 %v12176_v2  ;;  %v12238_v2 = vpack.c.bf16 %v9816_v57, %v9815_v56  ;;  %v9880_v56 = vld [vmem:[%s16144_s26 + $0x7f8] sm:$0xff] }
 0x164   : > { %12211 = vmatprep.subr.bf16.mxu1 %v12210_v19  ;;  %v9800_v19 = vld [vmem:[%s16144_s26 + $0x578] sm:$0xff] }
 0x166   : > { %1658 = vmatmul.mubr.f32.vlgmr.msra.gmra.mrb[64].mxu1 %v13763_v36  ;;  %v9789_v36 = vld [vmem:[%s16144_s26 + $0x520] sm:$0xff] }
 0x167   : > { %12213 = vmatpush3.bf16.msra.mxu1 %v12212_v7  ;;  %1662 = vmatprep.mubr.f32.mxu1 %v13810_v5  ;;  %v9807_v5 = vld [vmem:[%s16144_s26 + $0x5b0] sm:$0xff]  ;;  %v12220_v25 = vpack.c.bf16 %v9790_v17, %v9789_v36  ;;  %v12240_v7 = vpack.c.bf16 %v9800_v19, %v9799_v60  ;;  %v9852_v36 = vld [vmem:[%s16144_s26 + $0x718] sm:$0xff] }
 0x168   : > { %12215 = vmatprep.subr.bf16.mxu1 %v12214_v8  ;;  %v12222_v55 = vpack.c.bf16 %v9808_v24, %v9807_v5  ;;  %v9849_v8 = vld [vmem:[%s16144_s26 + $0x700] sm:$0xff]  ;;  %v2359_v17 = vld [vmem:[%s16146_s6 + $0x18] sm:$0xff]  ;;  %v9863_v60 = vld [vmem:[%s16144_s26 + $0x770] sm:$0xff] }
 0x169   : > { %v12276_v16 = vpack.c.bf16 %v9850_v12, %v9849_v8  ;;  %v3742_v5 = vld [vmem:[%s16147_s7] sm:$0xff]  ;;  %3713 = vperm.xlu1 %12894, %v2359_v17  }
 0x16a   : > { %1663 = vmatmul.mubr.f32.gmra.mrb[66].mxu1 %v13797_v61  ;;  %v9809_v61 = vld [vmem:[%s16144_s26 + $0x5c0] sm:$0xff]  ;;  %4725 = vperm.xlu0 %12893, %v3742_v5  }
 0x16b   : > { %12217 = vmatpush3.bf16.msra.mxu1 %v12216_v15  ;;  %1667 = vmatprep.mubr.f32.mxu1 %v13844_v26  ;;  %v9810_v26 = vld [vmem:[%s16144_s26 + $0x5c8] sm:$0xff]  ;;  %v9868_v15 = vld [vmem:[%s16144_s26 + $0x798] sm:$0xff]  ;;  %v9869_v24 = vld [vmem:[%s16144_s26 + $0x7a0] sm:$0xff] }
 0x16c   : > { %12219 = vmatprep.subr.bf16.mxu1 %v12218_v62  ;;  %v12226_v31 = vpack.c.bf16 %v9810_v26, %v9809_v61  ;;  %v12278_v62 = vpack.c.bf16 %v9868_v15, %v9867_v14  ;;  %v3743_v61 = vld [vmem:[%s16147_s7 + $0x8] sm:$0xff]  ;;  %v12284_v26 = vpack.c.bf16 %v9854_v42, %v9853_v20 }
 0x16d   : > { %4730 = vperm.xlu1 %12894, %v3743_v61  }
 0x16e   : > { %1668 = vmatmul.mubr.f32.gmra.mrb[68].mxu1 %v13831_v22  ;;  %v9812_v22 = vld [vmem:[%s16144_s26 + $0x5d8] sm:$0xff] }
 0x16f   : > { %12221 = vmatpush3.bf16.msra.mxu1 %v12220_v25  ;;  %1672 = vmatprep.mubr.f32.mxu1 %v13869_v53  ;;  %v12228_v53 = vpack.c.bf16 %v9794_v13, %v9793_v34  ;;  %v12230_v35 = vpack.c.bf16 %v9812_v22, %v9811_v46  ;;  %v12280_v25 = vpack.c.bf16 %v9852_v36, %v9851_v33  ;;  %v9856_v34 = vld [vmem:[%s16144_s26 + $0x738] sm:$0xff]  ;;  %v9873_v13 = vld [vmem:[%s16144_s26 + $0x7c0] sm:$0xff] }
 0x170   : > { %12223 = vmatprep.subr.bf16.mxu1 %v12222_v55  ;;  %v12282_v55 = vpack.c.bf16 %v9870_v29, %v9869_v24  ;;  %v9857_v22 = vld [vmem:[%s16144_s26 + $0x740] sm:$0xff] }
 0x172   : > { %1673 = vmatmul.mubr.f32.gmra.mrb[70].mxu1 %v13859_v44  ;;  %v9814_v44 = vld [vmem:[%s16144_s26 + $0x5e8] sm:$0xff] }
 0x173   : > { %12225 = vmatpush3.bf16.msra.mxu1 %v12224_v30  ;;  %1901 = vmatprep.mubr.f32.mxu1 %v13549_v9  ;;  %v12232_v9 = vpack.c.bf16 %v9796_v43, %v9795_v40  ;;  %v12234_v51 = vpack.c.bf16 %v9814_v44, %v9813_v50  ;;  %v9859_v43 = vld [vmem:[%s16144_s26 + $0x750] sm:$0xff]  ;;  %v9860_v50 = vld [vmem:[%s16144_s26 + $0x758] sm:$0xff]  ;;  %v9877_v44 = vld [vmem:[%s16144_s26 + $0x7e0] sm:$0xff] }
 0x174   : > { %12227 = vmatprep.subr.bf16.mxu1 %v12226_v31  ;;  %v9855_v31 = vld [vmem:[%s16144_s26 + $0x730] sm:$0xff] }
 0x177   : > { %12229 = vmatpush3.bf16.msra.mxu1 %v12228_v53  ;;  %v9858_v53 = vld [vmem:[%s16144_s26 + $0x748] sm:$0xff] }
 0x178   : > { %12231 = vmatprep.subr.bf16.mxu1 %v12230_v35  ;;  %v9875_v35 = vld [vmem:[%s16144_s26 + $0x7d0] sm:$0xff] }
 0x17b   : > { %12233 = vmatpush3.bf16.msra.mxu1 %v12232_v9 }
 0x17c   : > { %12235 = vmatprep.subr.bf16.mxu1 %v12234_v51  ;;  %v9861_v51 = vld [vmem:[%s16144_s26 + $0x760] sm:$0xff] }
 0x17d   : > { %v12300_v57 = vpack.c.bf16 %v9862_v52, %v9861_v51 }
 0x17f   : > { %12237 = vmatpush3.bf16.msra.mxu1 %v12236_v59  ;;  %v12302_v59 = vpack.c.bf16 %v9880_v56, %v9879_v54 }
 0x180   : > { %12239 = vmatprep.subr.bf16.mxu1 %v12238_v2  ;;  %v9864_v2 = vld [vmem:[%s16144_s26 + $0x778] sm:$0xff] }
 0x181   : > { %v12304_v19 = vpack.c.bf16 %v9864_v2, %v9863_v60  ;;  %v2320_v2 = vld [vmem:[%s16148_s1] sm:$0xff] }
 0x183   : > { %12241 = vmatpush3.bf16.msra.mxu1 %v12240_v7 }
 0x184   : > { %12275 = vmatprep.subr.bf16.mxu1 %v12274_v10 }
 0x186   : > { %1902 = vmatmul.mubr.f32.vlgmr.msra.gmra.mrb[72].mxu1 %v13544_v4  ;;  %v9871_v4 = vld [vmem:[%s16144_s26 + $0x7b0] sm:$0xff] }
 0x187   : > { %1906 = vmatprep.mubr.f32.mxu1 %v13577_v27  ;;  %12277 = vmatpush3.bf16.msra.mxu1 %v12276_v16  ;;  %v9872_v27 = vld [vmem:[%s16144_s26 + $0x7b8] sm:$0xff] }
 0x188   : > { %12279 = vmatprep.subr.bf16.mxu1 %v12278_v62  ;;  %v12286_v30 = vpack.c.bf16 %v9872_v27, %v9871_v4 }
 0x18a   : > { %1907 = vmatmul.mubr.f32.gmra.mrb[74].mxu1 %v13572_v21  ;;  %v9874_v21 = vld [vmem:[%s16144_s26 + $0x7c8] sm:$0xff] }
 0x18b   : > { %1911 = vmatprep.mubr.f32.mxu1 %v13605_v47  ;;  %12281 = vmatpush3.bf16.msra.mxu1 %v12280_v25  ;;  %v12288_v47 = vpack.c.bf16 %v9856_v34, %v9855_v31  ;;  %v12290_v46 = vpack.c.bf16 %v9874_v21, %v9873_v13 }
 0x18c   : > { %12283 = vmatprep.subr.bf16.mxu1 %v12282_v55 }
 0x18e   : > { %1912 = vmatmul.mubr.f32.gmra.mrb[76].mxu1 %v13594_v38  ;;  %v9876_v38 = vld [vmem:[%s16144_s26 + $0x7d8] sm:$0xff] }
 0x18f   : > { %1916 = vmatprep.mubr.f32.mxu1 %v13633_v1  ;;  %12285 = vmatpush3.bf16.msra.mxu1 %v12284_v26  ;;  %v12292_v1 = vpack.c.bf16 %v9858_v53, %v9857_v22  ;;  %v12294_v40 = vpack.c.bf16 %v9876_v38, %v9875_v35 }
 0x190   : > { %12287 = vmatprep.subr.bf16.mxu1 %v12286_v30 }
 0x192   : > { %1917 = vmatmul.mubr.f32.gmra.mrb[78].mxu1 %v13622_v58  ;;  %v9878_v58 = vld [vmem:[%s16144_s26 + $0x7e8] sm:$0xff] }
 0x193   : > { %12289 = vmatpush3.bf16.msra.mxu1 %v12288_v47  ;;  %2145 = vmatprep.mubr.f32.mxu1 %v13778_v48  ;;  %v12296_v48 = vpack.c.bf16 %v9860_v50, %v9859_v43  ;;  %v12298_v9 = vpack.c.bf16 %v9878_v58, %v9877_v44 }
 0x194   : > { %12291 = vmatprep.subr.bf16.mxu1 %v12290_v46 }
 0x197   : > { %12293 = vmatpush3.bf16.msra.mxu1 %v12292_v1 }
 0x198   : > { %12295 = vmatprep.subr.bf16.mxu1 %v12294_v40 }
 0x19b   : > { %12297 = vmatpush3.bf16.msra.mxu1 %v12296_v48 }
 0x19c   : > { %12299 = vmatprep.subr.bf16.mxu1 %v12298_v9 }
 0x19f   : > { %12301 = vmatpush3.bf16.msra.mxu1 %v12300_v57 }
 0x1a0   : > { %12303 = vmatprep.subr.bf16.mxu1 %v12302_v59 }
 0x1a3   : > { %12305 = vmatpush3.bf16.msra.mxu1 %v12304_v19 }
 0x1a6   : > { %2146 = vmatmul.mubr.f32.vlgmr.msra.gmra.mrb[80].mxu1 %v13765_v37 }
 0x1a7   : > { %2150 = vmatprep.mubr.f32.mxu1 %v13812_v6 }
 0x1aa   : > { %2151 = vmatmul.mubr.f32.gmra.mrb[82].mxu1 %v13799_v63 }
 0x1ab   : > { %2155 = vmatprep.mubr.f32.mxu1 %v13846_v28 }
 0x1ae   : > { %2156 = vmatmul.mubr.f32.gmra.mrb[84].mxu1 %v13833_v23 }
 0x1af   : > { %2160 = vmatprep.mubr.f32.mxu1 %v13871_v39 }
 0x1b2   : > { %2161 = vmatmul.mubr.f32.gmra.mrb[86].mxu1 %v13861_v45 }
 0x1b3   : > { %11319 = vmatprep.mubr.msk.f32.mxu1 %vm2360_vm2, %v2320_v2 }
 0x1c9   : > { %v10693_v3 = vpop.f32.mrb[32].mxu0 }
 0x1ca   : > { %v10694_v32 = vpop.f32.mrb[33].mxu0 }
 0x1cb   : > { %v14260_v49 = vadd.f32 %v10694_v32, %v10693_v3 }
 0x1cd   : > { %v10696_v18 = vpop.f32.mrb[34].mxu0 }
 0x1ce   : > { %v10697_v7 = vpop.f32.mrb[35].mxu0 }
 0x1cf   : > { %v14262_v8 = vadd.f32 %v10697_v7, %v10696_v18 }
 0x1d1   : > { %v10699_v37 = vpop.f32.mrb[36].mxu0 }
 0x1d2   : > { %v10700_v6 = vpop.f32.mrb[37].mxu0 }
 0x1d3   : > { %v14264_v10 = vadd.f32 %v10700_v6, %v10699_v37 }
 0x1d5   : > { %v10702_v63 = vpop.f32.mrb[38].mxu0 }
 0x1d6   : > { %v10703_v28 = vpop.f32.mrb[39].mxu0 }
 0x1d7   : > { %v14266_v12 = vadd.f32 %v10703_v28, %v10702_v63 }
 0x1d9   : > { %v10517_v23 = vpop.f32.mrb[40].mxu1 }
 0x1da   : > { %v10518_v39 = vpop.f32.mrb[41].mxu1 }
 0x1db   : > { %v10519_v41 = vadd.f32 %v10518_v39, %v10517_v23 }
 0x1dd   : > { %v10520_v45 = vpop.f32.mrb[42].mxu1 }
 0x1de   : > { %v10521_v11 = vpop.f32.mrb[43].mxu1 }
 0x1df   : > { %v10522_v14 = vadd.f32 %v10521_v11, %v10520_v45 }
 0x1e1   : > { %v10523_v15 = vpop.f32.mrb[44].mxu1 }
 0x1e2   : > { %v10524_v16 = vpop.f32.mrb[45].mxu1 }
 0x1e3   : > { %v10525_v33 = vadd.f32 %v10524_v16, %v10523_v15 }
 0x1e5   : > { %v10526_v62 = vpop.f32.mrb[46].mxu1 }
 0x1e6   : > { %v10527_v36 = vpop.f32.mrb[47].mxu1 }
 0x1e7   : > { %v10528_v17 = vadd.f32 %v10527_v36, %v10526_v62 }
 0x1ea   : > { %v10781_v5 = vpop.f32.mrb[40].mxu0 }
 0x1eb   : > { %v10782_v24 = vpop.f32.mrb[41].mxu0 }
 0x1ec   : > { %v14268_v29 = vadd.f32 %v10782_v24, %v10781_v5 }
 0x1ee   : > { %v10784_v25 = vpop.f32.mrb[42].mxu0 }
 0x1ef   : > { %v10785_v55 = vpop.f32.mrb[43].mxu0 }
 0x1f0   : > { %v14270_v20 = vadd.f32 %v10785_v55, %v10784_v25 }
 0x1f2   : > { %v10787_v42 = vpop.f32.mrb[44].mxu0 }
 0x1f3   : > { %v10788_v61 = vpop.f32.mrb[45].mxu0 }
 0x1f4   : > { %v14272_v4 = vadd.f32 %v10788_v61, %v10787_v42 }
 0x1f6   : > { %v10790_v27 = vpop.f32.mrb[46].mxu0 }
 0x1f7   : > { %v10791_v26 = vpop.f32.mrb[47].mxu0 }
 0x1f8   : > { %v14274_v30 = vadd.f32 %v10791_v26, %v10790_v27 }
 0x1f9   : > { %v10561_v31 = vpop.f32.mrb[48].mxu1 }
 0x1fa   : > { %v10562_v34 = vpop.f32.mrb[49].mxu1 }
 0x1fb   : > { %v10563_v13 = vadd.f32 %v10562_v34, %v10561_v31 }
 0x1fd   : > { %v1420_v21 = vadd.f32 %v10563_v13, %v10519_v41  ;;  %v10564_v47 = vpop.f32.mrb[50].mxu1 }
 0x1fe   : > { %v10565_v46 = vpop.f32.mrb[51].mxu1 }
 0x1ff   : > { %v10566_v22 = vadd.f32 %v10565_v46, %v10564_v47 }
 0x201   : > { %v1425_v53 = vadd.f32 %v10566_v22, %v10522_v14  ;;  %v10567_v35 = vpop.f32.mrb[52].mxu1 }
 0x202   : > { %v10568_v38 = vpop.f32.mrb[53].mxu1 }
 0x203   : > { %v10569_v1 = vadd.f32 %v10568_v38, %v10567_v35 }
 0x205   : > { %v1430_v40 = vadd.f32 %v10569_v1, %v10525_v33  ;;  %v10570_v43 = vpop.f32.mrb[54].mxu1 }
 0x206   : > { %v10571_v50 = vpop.f32.mrb[55].mxu1 }
 0x207   : > { %v10572_v44 = vadd.f32 %v10571_v50, %v10570_v43  ;;  %v9951_v50 = vld [vmem:[%s16149_s28 + $0x50] sm:$0xff] }
 0x209   : > { %v1435_v58 = vadd.f32 %v10572_v44, %v10528_v17 }
 0x20a   : > { %v10869_v48 = vpop.f32.mrb[48].mxu0 }
 0x20b   : > { %v10870_v9 = vpop.f32.mrb[49].mxu0 }
 0x20c   : > { %v14276_v51 = vadd.f32 %v10870_v9, %v10869_v48 }
 0x20e   : > { %v10872_v52 = vpop.f32.mrb[50].mxu0 }
 0x20f   : > { %v10873_v54 = vpop.f32.mrb[51].mxu0 }
 0x210   : > { %v14278_v56 = vadd.f32 %v10873_v54, %v10872_v52 }
 0x212   : > { %v10875_v57 = vpop.f32.mrb[52].mxu0 }
 0x213   : > { %v10876_v59 = vpop.f32.mrb[53].mxu0 }
 0x214   : > { %v14280_v60 = vadd.f32 %v10876_v59, %v10875_v57 }
 0x216   : > { %v10878_v19 = vpop.f32.mrb[54].mxu0 }
 0x217   : > { %v10879_v3 = vpop.f32.mrb[55].mxu0 }
 0x218   : > { %v14286_v32 = vadd.f32 %v10879_v3, %v10878_v19 }
 0x219   : > { %v10605_v18 = vpop.f32.mrb[56].mxu1 }
 0x21a   : > { %v10606_v7 = vpop.f32.mrb[57].mxu1 }
 0x21b   : > { %v10607_v37 = vadd.f32 %v10606_v7, %v10605_v18 }
 0x21d   : > { %v1556_v6 = vadd.f32 %v10607_v37, %v1420_v21  ;;  %v10608_v63 = vpop.f32.mrb[58].mxu1 }
 0x21e   : > { %v10609_v28 = vpop.f32.mrb[59].mxu1 }
 0x21f   : > { %v10610_v23 = vadd.f32 %v10609_v28, %v10608_v63 }
 0x221   : > { %v1557_v39 = vadd.f32 %v10610_v23, %v1425_v53  ;;  %v10611_v41 = vpop.f32.mrb[60].mxu1 }
 0x222   : > { %v10612_v45 = vpop.f32.mrb[61].mxu1 }
 0x223   : > { %v10613_v11 = vadd.f32 %v10612_v45, %v10611_v41 }
 0x225   : > { %v1558_v14 = vadd.f32 %v10613_v11, %v1430_v40  ;;  %v10614_v15 = vpop.f32.mrb[62].mxu1 }
 0x226   : > { %v10615_v16 = vpop.f32.mrb[63].mxu1 }
 0x227   : > { %v10616_v33 = vadd.f32 %v10615_v16, %v10614_v15 }
 0x229   : > { %v1559_v62 = vadd.f32 %v10616_v33, %v1435_v58 }
 0x239   : > { %v10649_v36 = vpop.f32.mrb[64].mxu1 }
 0x23a   : > { %v10650_v17 = vpop.f32.mrb[65].mxu1 }
 0x23b   : > { %v10651_v5 = vadd.f32 %v10650_v17, %v10649_v36 }
 0x23d   : > { %v1678_v24 = vadd.f32 %v10651_v5, %v1556_v6  ;;  %v10652_v25 = vpop.f32.mrb[66].mxu1 }
 0x23e   : > { %v10653_v55 = vpop.f32.mrb[67].mxu1 }
 0x23f   : > { %v10654_v42 = vadd.f32 %v10653_v55, %v10652_v25  ;;  %v1800_v61 = vadd.f32 %v14260_v49, %v1678_v24  ;;  %v9949_v49 = vld [vmem:[%s16149_s28 + $0x40] sm:$0xff] }
 0x241   : > { %v1679_v27 = vadd.f32 %v10654_v42, %v1557_v39  ;;  %v10655_v26 = vpop.f32.mrb[68].mxu1  ;;  %v2305_v42 = vpop.permute.xlu1 %2304 }
 0x242   : > { %v10656_v31 = vpop.f32.mrb[69].mxu1 }
 0x243   : > { %v10657_v34 = vadd.f32 %v10656_v31, %v10655_v26  ;;  %v1801_v13 = vadd.f32 %v14262_v8, %v1679_v27  ;;  %v9950_v8 = vld [vmem:[%s16149_s28 + $0x48] sm:$0xff] }
 0x244   : > { %v12346_v44 = vpack.c.bf16 %v9950_v8, %v9949_v49  ;;  %v2327_v49 = vld [vmem:[%s16148_s1 + $0x38] sm:$0xff]  ;;  %v2328_v8 = vld [vmem:[%s16148_s1 + $0x40] sm:$0xff] }
 0x245   : > { %v1680_v21 = vadd.f32 %v10657_v34, %v1558_v14  ;;  %v10658_v47 = vpop.f32.mrb[70].mxu1  ;;  %v2295_v14 = vpop.permute.xlu0 %2294 }
 0x246   : > { %v10659_v46 = vpop.f32.mrb[71].mxu1  ;;  %12347 = vmatprep.subr.bf16.mxu0 %v12346_v44 }
 0x247   : > { %v10660_v22 = vadd.f32 %v10659_v46, %v10658_v47  ;;  %v1802_v53 = vadd.f32 %v14264_v10, %v1680_v21  ;;  %v9952_v10 = vld [vmem:[%s16149_s28 + $0x58] sm:$0xff]  ;;  %12349 = vmatpush3.bf16.msra.mxu0 %v12346_v44  ;;  %v2330_v44 = vld [vmem:[%s16148_s1 + $0x50] sm:$0xff] }
 0x248   : > { %v12350_v48 = vpack.c.bf16 %v9952_v10, %v9951_v50  ;;  %v2329_v50 = vld [vmem:[%s16148_s1 + $0x48] sm:$0xff]  ;;  %v2331_v10 = vld [vmem:[%s16148_s1 + $0x58] sm:$0xff] }
 0x249   : > { %v1681_v35 = vadd.f32 %v10660_v22, %v1559_v62  ;;  %v2300_v24 = vpop.permute.xlu0 %2299 }
 0x24a   : > { %12351 = vmatprep.subr.bf16.mxu0 %v12350_v48 }
 0x24b   : > { %v1803_v38 = vadd.f32 %v14266_v12, %v1681_v35  ;;  %12353 = vmatpush3.bf16.msra.mxu0 %v12350_v48  ;;  %v2334_v48 = vld [vmem:[%s16148_s1 + $0x70] sm:$0xff] }
 0x259   : > { %v10737_v1 = vpop.f32.mrb[72].mxu1 }
 0x25a   : > { %v10738_v40 = vpop.f32.mrb[73].mxu1 }
 0x25b   : > { %v10739_v43 = vadd.f32 %v10738_v40, %v10737_v1  ;;  %v2324_v1 = vld [vmem:[%s16148_s1 + $0x20] sm:$0xff]  ;;  %v2325_v40 = vld [vmem:[%s16148_s1 + $0x28] sm:$0xff] }
 0x25d   : > { %v1922_v12 = vadd.f32 %v10739_v43, %v1800_v61  ;;  %v10740_v58 = vpop.f32.mrb[74].mxu1  ;;  %v2326_v43 = vld [vmem:[%s16148_s1 + $0x30] sm:$0xff] }
 0x25e   : > { %v10741_v9 = vpop.f32.mrb[75].mxu1 }
 0x25f   : > { %v10742_v52 = vadd.f32 %v10741_v9, %v10740_v58  ;;  %v2044_v54 = vadd.f32 %v14268_v29, %v1922_v12  ;;  %v2332_v12 = vld [vmem:[%s16148_s1 + $0x60] sm:$0xff]  ;;  %v2333_v58 = vld [vmem:[%s16148_s1 + $0x68] sm:$0xff]  ;;  %v2335_v9 = vld [vmem:[%s16148_s1 + $0x78] sm:$0xff] }
 0x261   : > { %v1923_v57 = vadd.f32 %v10742_v52, %v1801_v13  ;;  %v10743_v59 = vpop.f32.mrb[76].mxu1  ;;  %v2336_v52 = vld [vmem:[%s16148_s1 + $0x80] sm:$0xff] }
 0x262   : > { %v10744_v2 = vpop.f32.mrb[77].mxu1 }
 0x263   : > { %v10745_v19 = vadd.f32 %v10744_v2, %v10743_v59  ;;  %v2045_v3 = vadd.f32 %v14270_v20, %v1923_v57  ;;  %v2338_v57 = vld [vmem:[%s16148_s1 + $0x90] sm:$0xff]  ;;  %v2339_v59 = vld [vmem:[%s16148_s1 + $0x98] sm:$0xff]  ;;  %v2340_v2 = vld [vmem:[%s16148_s1 + $0xa0] sm:$0xff] }
 0x265   : > { %v1924_v18 = vadd.f32 %v10745_v19, %v1802_v53  ;;  %v10746_v7 = vpop.f32.mrb[78].mxu1  ;;  %v2341_v19 = vld [vmem:[%s16148_s1 + $0xa8] sm:$0xff] }
 0x266   : > { %v10747_v37 = vpop.f32.mrb[79].mxu1 }
 0x267   : > { %v10748_v6 = vadd.f32 %v10747_v37, %v10746_v7  ;;  %v2046_v63 = vadd.f32 %v14272_v4, %v1924_v18  ;;  %v2343_v18 = vld [vmem:[%s16148_s1 + $0xb8] sm:$0xff]  ;;  %v2344_v7 = vld [vmem:[%s16148_s1 + $0xc0] sm:$0xff]  ;;  %v2345_v37 = vld [vmem:[%s16148_s1 + $0xc8] sm:$0xff] }
 0x269   : > { %v1925_v28 = vadd.f32 %v10748_v6, %v1803_v38  ;;  %v2322_v38 = vld [vmem:[%s16148_s1 + $0x10] sm:$0xff] }
 0x26a   : > { %v2346_v6 = vld [vmem:[%s16148_s1 + $0xd0] sm:$0xff] }
 0x26b   : > { %v2047_v23 = vadd.f32 %v14274_v30, %v1925_v28  ;;  %v2348_v28 = vld [vmem:[%s16148_s1 + $0xe0] sm:$0xff] }
 0x279   : > { %v10825_v39 = vpop.f32.mrb[80].mxu1 }
 0x27a   : > { %v10826_v29 = vpop.f32.mrb[81].mxu1 }
 0x27b   : > { %v10827_v41 = vadd.f32 %v10826_v29, %v10825_v39  ;;  %v2350_v39 = vld [vmem:[%s16148_s1 + $0xf0] sm:$0xff]  ;;  %v2351_v29 = vld [vmem:[%s16148_s1 + $0xf8] sm:$0xff] }
 0x27d   : > { %v2166_v45 = vadd.f32 %v10827_v41, %v2044_v54  ;;  %v10828_v11 = vpop.f32.mrb[82].mxu1  ;;  %v2337_v54 = vld [vmem:[%s16148_s1 + $0x88] sm:$0xff]  ;;  %v2352_v41 = vld [vmem:[%s16148_s1 + $0x100] sm:$0xff] }
 0x27e   : > { %v10829_v15 = vpop.f32.mrb[83].mxu1 }
 0x27f   : > { %v2288_v16 = vadd.f32 %v14276_v51, %v2166_v45  ;;  %v10830_v20 = vadd.f32 %v10829_v15, %v10828_v11  ;;  %v2353_v45 = vld [vmem:[%s16148_s1 + $0x108] sm:$0xff]  ;;  %v2354_v11 = vld [vmem:[%s16148_s1 + $0x110] sm:$0xff]  ;;  %v9953_v15 = vld [vmem:[%s16149_s28 + $0x60] sm:$0xff] }
 0x281   : > { %v2167_v33 = vadd.f32 %v10830_v20, %v2045_v3  ;;  %v10831_v62 = vpop.f32.mrb[84].mxu1  ;;  %v2312_v4 = vadd.f32 %v2295_v14, %v2288_v16  ;;  %v2342_v3 = vld [vmem:[%s16148_s1 + $0xb0] sm:$0xff]  ;;  %v2355_v14 = vld [vmem:[%s16148_s1 + $0x118] sm:$0xff]  ;;  %v9954_v16 = vld [vmem:[%s16149_s28 + $0x68] sm:$0xff] }
 0x282   : > { %v10832_v36 = vpop.f32.mrb[85].mxu1  ;;  %v12354_v20 = vpack.c.bf16 %v9954_v16, %v9953_v15  ;;  %v9983_v15 = vld [vmem:[%s16149_s28 + $0xf0] sm:$0xff]  ;;  %v9984_v16 = vld [vmem:[%s16149_s28 + $0xf8] sm:$0xff] }
 0x283   : > { %v2289_v17 = vadd.f32 %v14278_v56, %v2167_v33  ;;  %v10833_v5 = vadd.f32 %v10832_v36, %v10831_v62  ;;  %v2316_v31 = vmax.f32 %v2312_v4, 0.0  ;;  %v2310_v56 = vpop.permute.xlu1 %2309  ;;  %v9955_v33 = vld [vmem:[%s16149_s28 + $0x70] sm:$0xff]  ;;  %v9956_v62 = vld [vmem:[%s16149_s28 + $0x78] sm:$0xff] }
 0x284   : > { %12355 = vmatprep.subr.bf16.mxu0 %v12354_v20  ;;  %v12358_v36 = vpack.c.bf16 %v9956_v62, %v9955_v33  ;;  %v12406_v33 = vpack.c.bf16 %v9984_v16, %v9983_v15  ;;  %v10037_v15 = vld [vmem:[%s16149_s28 + $0x200] sm:$0xff]  ;;  %v10038_v16 = vld [vmem:[%s16149_s28 + $0x208] sm:$0xff] }
 0x285   : > { %v2168_v25 = vadd.f32 %v10833_v5, %v2046_v63  ;;  %v10834_v30 = vpop.f32.mrb[86].mxu1  ;;  %v2313_v55 = vadd.f32 %v2300_v24, %v2289_v17  ;;  %v2347_v63 = vld [vmem:[%s16148_s1 + $0xd8] sm:$0xff]  ;;  %12357 = vmatpush3.bf16.msra.mxu0 %v12354_v20  ;;  %v2714_v17 = vld [vmem:[%s16149_s28] sm:$0xff]  ;;  %v2715_v5 = vld [vmem:[%s16149_s28 + $0x8] sm:$0xff] }
 0x286   : > { %v10835_v61 = vpop.f32.mrb[87].mxu1  ;;  %12359 = vmatprep.subr.bf16.mxu0 %v12358_v36  ;;  %v12362_v4 = vpack.c.bf16 %v2715_v5, %v2714_v17  ;;  %v9990_v17 = vld [vmem:[%s16149_s28 + $0x108] sm:$0xff] }
 0x287   : > { %v2290_v27 = vadd.f32 %v14280_v60, %v2168_v25  ;;  %v10836_v26 = vadd.f32 %v10835_v61, %v10834_v30  ;;  %v2317_v34 = vmax.f32 %v2313_v55, 0.0  ;;  %v2321_v60 = vld [vmem:[%s16148_s1 + $0x8] sm:$0xff]  ;;  %v2717_v61 = vld [vmem:[%s16149_s28 + $0x18] sm:$0xff] }
 0x289   : > { %v2169_v51 = vadd.f32 %v10836_v26, %v2047_v23  ;;  %v12338_v13 = vpack.c.bf16 %v2317_v34, %v2316_v31  ;;  %v2314_v47 = vadd.f32 %v2305_v42, %v2290_v27  ;;  %v2349_v23 = vld [vmem:[%s16148_s1 + $0xe8] sm:$0xff]  ;;  %12361 = vmatpush3.bf16.msra.mxu0 %v12358_v36  ;;  %v2716_v42 = vld [vmem:[%s16149_s28 + $0x10] sm:$0xff]  ;;  %v2718_v34 = vld [vmem:[%s16149_s28 + $0x20] sm:$0xff] }
 0x28a   : > { %12363 = vmatprep.subr.bf16.mxu0 %v12362_v4  ;;  %v12366_v31 = vpack.c.bf16 %v2717_v61, %v2716_v42  ;;  %v9989_v36 = vld [vmem:[%s16149_s28 + $0x100] sm:$0xff] }
 0x28b   : > { %v2291_v21 = vadd.f32 %v14286_v32, %v2169_v51  ;;  %12339 = vmatprep.subr.bf16.mxu1 %v12338_v13  ;;  %v2318_v22 = vmax.f32 %v2314_v47, 0.0  ;;  %v2323_v32 = vld [vmem:[%s16148_s1 + $0x18] sm:$0xff]  ;;  %v2719_v51 = vld [vmem:[%s16149_s28 + $0x28] sm:$0xff]  ;;  %s16151_s1 = sld [smem:[#allocation10_spill]] }
 0x28c   : > { %12341 = vmatpush3.bf16.msra.mxu1 %v12338_v13  ;;  %v12370_v47 = vpack.c.bf16 %v2719_v51, %v2718_v34 }
 0x28d   : > { %v2315_v46 = vadd.f32 %v2310_v56, %v2291_v21  ;;  %v2720_v56 = vld [vmem:[%s16149_s28 + $0x30] sm:$0xff] }
 0x28f   : > { %v2319_v53 = vmax.f32 %v2315_v46, 0.0  ;;  %v2721_v46 = vld [vmem:[%s16149_s28 + $0x38] sm:$0xff] }
 0x291   : > { %v12342_v35 = vpack.c.bf16 %v2319_v53, %v2318_v22  ;;  %v12374_v53 = vpack.c.bf16 %v2721_v46, %v2720_v56 }
 0x293   : > { %12343 = vmatprep.subr.bf16.mxu1 %v12342_v35 }
 0x294   : > { %12345 = vmatpush3.bf16.msra.mxu1 %v12342_v35 }
 0x297   : > { %11320 = vmatmul.mubr.msk.f32.vlgmr.msra.gmra.mrb[88].mxu1 %vm2360_vm2, %v2321_v60  ;;  %v9965_v60 = vld [vmem:[%s16149_s28 + $0x80] sm:$0xff] }
 0x298   : > { %11322 = vmatprep.mubr.msk.f32.mxu1 %vm2360_vm2, %v2322_v38  ;;  %v9966_v38 = vld [vmem:[%s16149_s28 + $0x88] sm:$0xff] }
 0x29b   : > { %11323 = vmatmul.mubr.msk.f32.gmra.mrb[90].mxu1 %vm2360_vm2, %v2323_v32 }
 0x29c   : > { %11325 = vmatprep.mubr.msk.f32.mxu1 %vm2360_vm2, %v2324_v1  ;;  %v12378_v1 = vpack.c.bf16 %v9966_v38, %v9965_v60 }
 0x29f   : > { %11326 = vmatmul.mubr.msk.f32.gmra.mrb[92].mxu1 %vm2360_vm2, %v2325_v40 }
 0x2a0   : > { %11328 = vmatprep.mubr.msk.f32.mxu1 %vm2360_vm2, %v2326_v43  ;;  %v9967_v43 = vld [vmem:[%s16149_s28 + $0x90] sm:$0xff] }
 0x2a3   : > { %11329 = vmatmul.mubr.msk.f32.gmra.mrb[94].mxu1 %vm2360_vm2, %v2327_v49  ;;  %v9968_v49 = vld [vmem:[%s16149_s28 + $0x98] sm:$0xff] }
 0x2a4   : > { %11331 = vmatprep.mubr.msk.f32.mxu1 %vm2360_vm2, %v2328_v8 }
 0x2a7   : > { %11332 = vmatmul.mubr.msk.f32.gmra.mrb[96].mxu1 %vm2360_vm2, %v2329_v50  ;;  %v12382_v50 = vpack.c.bf16 %v9968_v49, %v9967_v43  ;;  %v10005_v43 = vld [vmem:[%s16149_s28 + $0x160] sm:$0xff]  ;;  %v10006_v49 = vld [vmem:[%s16149_s28 + $0x168] sm:$0xff] }
 0x2a8   : > { %11334 = vmatprep.mubr.msk.f32.mxu1 %vm2360_vm2, %v2330_v44 }
 0x2ab   : > { %11335 = vmatmul.mubr.msk.f32.gmra.mrb[98].mxu1 %vm2360_vm2, %v2331_v10  ;;  %v9969_v10 = vld [vmem:[%s16149_s28 + $0xa0] sm:$0xff] }
 0x2ac   : > { %11337 = vmatprep.mubr.msk.f32.mxu1 %vm2360_vm2, %v2332_v12  ;;  %v9970_v12 = vld [vmem:[%s16149_s28 + $0xa8] sm:$0xff] }
 0x2af   : > { %11338 = vmatmul.mubr.msk.f32.gmra.mrb[100].mxu1 %vm2360_vm2, %v2333_v58 }
 0x2b0   : > { %11340 = vmatprep.mubr.msk.f32.mxu1 %vm2360_vm2, %v2334_v48  ;;  %v12386_v48 = vpack.c.bf16 %v9970_v12, %v9969_v10  ;;  %v10013_v12 = vld [vmem:[%s16149_s28 + $0x180] sm:$0xff] }
 0x2b3   : > { %11341 = vmatmul.mubr.msk.f32.gmra.mrb[102].mxu1 %vm2360_vm2, %v2335_v9 }
 0x2b4   : > { %11343 = vmatprep.mubr.msk.f32.mxu1 %vm2360_vm2, %v2336_v52  ;;  %v9971_v52 = vld [vmem:[%s16149_s28 + $0xb0] sm:$0xff] }
 0x2b7   : > { %11344 = vmatmul.mubr.msk.f32.gmra.mrb[104].mxu1 %vm2360_vm2, %v2337_v54  ;;  %v9972_v54 = vld [vmem:[%s16149_s28 + $0xb8] sm:$0xff] }
 0x2b8   : > { %11346 = vmatprep.mubr.msk.f32.mxu1 %vm2360_vm2, %v2338_v57 }
 0x2bb   : > { %11347 = vmatmul.mubr.msk.f32.gmra.mrb[106].mxu1 %vm2360_vm2, %v2339_v59  ;;  %v12390_v59 = vpack.c.bf16 %v9972_v54, %v9971_v52  ;;  %v10016_v52 = vld [vmem:[%s16149_s28 + $0x198] sm:$0xff] }
 0x2bc   : > { %11349 = vmatprep.mubr.msk.f32.mxu1 %vm2360_vm2, %v2340_v2 }
 0x2bf   : > { %11350 = vmatmul.mubr.msk.f32.gmra.mrb[108].mxu1 %vm2360_vm2, %v2341_v19  ;;  %v9977_v19 = vld [vmem:[%s16149_s28 + $0xc0] sm:$0xff] }
 0x2c0   : > { %11352 = vmatprep.mubr.msk.f32.mxu1 %vm2360_vm2, %v2342_v3  ;;  %v9978_v3 = vld [vmem:[%s16149_s28 + $0xc8] sm:$0xff] }
 0x2c3   : > { %11353 = vmatmul.mubr.msk.f32.gmra.mrb[110].mxu1 %vm2360_vm2, %v2343_v18 }
 0x2c4   : > { %11355 = vmatprep.mubr.msk.f32.mxu1 %vm2360_vm2, %v2344_v7  ;;  %v12394_v7 = vpack.c.bf16 %v9978_v3, %v9977_v19  ;;  %v10019_v19 = vld [vmem:[%s16149_s28 + $0x1b0] sm:$0xff]  ;;  %v10020_v3 = vld [vmem:[%s16149_s28 + $0x1b8] sm:$0xff] }
 0x2c7   : > { %11356 = vmatmul.mubr.msk.f32.gmra.mrb[112].mxu1 %vm2360_vm2, %v2345_v37 }
 0x2c8   : > { %11358 = vmatprep.mubr.msk.f32.mxu1 %vm2360_vm2, %v2346_v6  ;;  %v9979_v6 = vld [vmem:[%s16149_s28 + $0xd0] sm:$0xff] }
 0x2cb   : > { %11359 = vmatmul.mubr.msk.f32.gmra.mrb[114].mxu1 %vm2360_vm2, %v2347_v63  ;;  %v9980_v63 = vld [vmem:[%s16149_s28 + $0xd8] sm:$0xff] }
 0x2cc   : > { %11361 = vmatprep.mubr.msk.f32.mxu1 %vm2360_vm2, %v2348_v28 }
 0x2cf   : > { %11362 = vmatmul.mubr.msk.f32.gmra.mrb[116].mxu1 %vm2360_vm2, %v2349_v23  ;;  %v12398_v23 = vpack.c.bf16 %v9980_v63, %v9979_v6  ;;  %v10027_v63 = vld [vmem:[%s16149_s28 + $0x1d0] sm:$0xff] }
 0x2d0   : > { %11364 = vmatprep.mubr.msk.f32.mxu1 %vm2360_vm2, %v2350_v39 }
 0x2d3   : > { %11365 = vmatmul.mubr.msk.f32.gmra.mrb[118].mxu1 %vm2360_vm2, %v2351_v29  ;;  %v9981_v29 = vld [vmem:[%s16149_s28 + $0xe0] sm:$0xff] }
 0x2d4   : > { %11367 = vmatprep.mubr.msk.f32.mxu1 %vm2360_vm2, %v2352_v41  ;;  %v9982_v41 = vld [vmem:[%s16149_s28 + $0xe8] sm:$0xff] }
 0x2d7   : > { %11368 = vmatmul.mubr.msk.f32.gmra.mrb[120].mxu1 %vm2360_vm2, %v2353_v45 }
 0x2d8   : > { %11370 = vmatprep.mubr.msk.f32.mxu1 %vm2360_vm2, %v2354_v11  ;;  %v12402_v11 = vpack.c.bf16 %v9982_v41, %v9981_v29  ;;  %v10030_v29 = vld [vmem:[%s16149_s28 + $0x1e8] sm:$0xff] }
 0x2db   : > { %11371 = vmatmul.mubr.msk.f32.gmra.mrb[122].mxu1 %vm2360_vm2, %v2355_v14 }
 0x36a   : > { %v11321_v24 = vpop.f32.mrb[88].mxu1 }
 0x36b   : > { %v2535_v25 = vpop.f32.mrb[89].mxu1 }
 0x36e   : > { %v11324_v30 = vpop.f32.mrb[90].mxu1 }
 0x36f   : > { %v2545_v55 = vpop.f32.mrb[91].mxu1 }
 0x372   : > { %v11327_v27 = vpop.f32.mrb[92].mxu1 }
 0x373   : > { %v2555_v26 = vpop.f32.mrb[93].mxu1 }
 0x374   : > { %11389 = vmatprep.mubr.msk.f32.mxu0 %vm2731_vm3, %v2555_v26  ;;  %v9994_v26 = vld [vmem:[%s16149_s28 + $0x128] sm:$0xff] }
 0x375   : > { %11390 = vmatmul.mubr.msk.f32.vlgmr.msra.gmra.mrb[56].mxu0 %vm2731_vm3, %v11327_v27  ;;  %v9993_v27 = vld [vmem:[%s16149_s28 + $0x120] sm:$0xff] }
 0x376   : > { %12365 = vmatpush3.bf16.msra.mxu0 %v12362_v4  ;;  %v11330_v13 = vpop.f32.mrb[94].mxu1  ;;  %v12410_v4 = vpack.c.bf16 %v9990_v17, %v9989_v36  ;;  %v12418_v34 = vpack.c.bf16 %v9994_v26, %v9993_v27  ;;  %v10041_v17 = vld [vmem:[%s16149_s28 + $0x220] sm:$0xff] }
 0x377   : > { %v2565_v21 = vpop.f32.mrb[95].mxu1  ;;  %12367 = vmatprep.subr.bf16.mxu0 %v12366_v31 }
 0x378   : > { %11392 = vmatprep.mubr.msk.f32.mxu0 %vm2731_vm3, %v2565_v21  ;;  %v9996_v21 = vld [vmem:[%s16149_s28 + $0x138] sm:$0xff] }
 0x379   : > { %11393 = vmatmul.mubr.msk.f32.gmra.mrb[58].mxu0 %vm2731_vm3, %v11330_v13  ;;  %v9995_v13 = vld [vmem:[%s16149_s28 + $0x130] sm:$0xff] }
 0x37a   : > { %12369 = vmatpush3.bf16.msra.mxu0 %v12366_v31  ;;  %11411 = vmatprep.mubr.msk.f32.mxu0 %vm2731_vm3, %v2535_v25  ;;  %v11333_v22 = vpop.f32.mrb[96].mxu1  ;;  %v9991_v25 = vld [vmem:[%s16149_s28 + $0x110] sm:$0xff]  ;;  %v12422_v56 = vpack.c.bf16 %v9996_v21, %v9995_v13 }
 0x37b   : > { %12371 = vmatprep.subr.bf16.mxu0 %v12370_v47  ;;  %v2575_v35 = vpop.f32.mrb[97].mxu1 }
 0x37e   : > { %12373 = vmatpush3.bf16.msra.mxu0 %v12370_v47  ;;  %v11336_v32 = vpop.f32.mrb[98].mxu1 }
 0x37f   : > { %12375 = vmatprep.subr.bf16.mxu0 %v12374_v53  ;;  %v2585_v40 = vpop.f32.mrb[99].mxu1 }
 0x382   : > { %12377 = vmatpush3.bf16.msra.mxu0 %v12374_v53  ;;  %v14505_v8 = vpop.f32.mrb[100].mxu1  ;;  %v10002_v53 = vld [vmem:[%s16149_s28 + $0x148] sm:$0xff] }
 0x383   : > { %12379 = vmatprep.subr.bf16.mxu0 %v12378_v1  ;;  %v2595_v44 = vpop.f32.mrb[101].mxu1 }
 0x385   : > { %11412 = vmatmul.mubr.msk.f32.vlgmr.msra.gmra.mrb[56].mxu0 %vm2731_vm3, %v11321_v24 }
 0x386   : > { %11414 = vmatprep.mubr.msk.f32.mxu0 %vm2731_vm3, %v2545_v55  ;;  %12381 = vmatpush3.bf16.msra.mxu0 %v12378_v1  ;;  %v14515_v58 = vpop.f32.mrb[102].mxu1  ;;  %v10004_v1 = vld [vmem:[%s16149_s28 + $0x158] sm:$0xff] }
 0x387   : > { %12383 = vmatprep.subr.bf16.mxu0 %v12382_v50  ;;  %v2605_v9 = vpop.f32.mrb[103].mxu1 }
 0x389   : > { %11415 = vmatmul.mubr.msk.f32.gmra.mrb[58].mxu0 %vm2731_vm3, %v11324_v30  ;;  %v9992_v30 = vld [vmem:[%s16149_s28 + $0x118] sm:$0xff] }
 0x38a   : > { %12385 = vmatpush3.bf16.msra.mxu0 %v12382_v50  ;;  %11433 = vmatprep.mubr.msk.f32.mxu0 %vm2731_vm3, %v2575_v35  ;;  %v14525_v57 = vpop.f32.mrb[104].mxu1  ;;  %v12414_v42 = vpack.c.bf16 %v9992_v30, %v9991_v25  ;;  %v10007_v50 = vld [vmem:[%s16149_s28 + $0x170] sm:$0xff]  ;;  %v10044_v25 = vld [vmem:[%s16149_s28 + $0x238] sm:$0xff] }
 0x38b   : > { %12387 = vmatprep.subr.bf16.mxu0 %v12386_v48  ;;  %v2615_v2 = vpop.f32.mrb[105].mxu1 }
 0x38e   : > { %12389 = vmatpush3.bf16.msra.mxu0 %v12386_v48  ;;  %v14533_v18 = vpop.f32.mrb[106].mxu1 }
 0x38f   : > { %12391 = vmatprep.subr.bf16.mxu0 %v12390_v59  ;;  %v14535_v37 = vpop.f32.mrb[107].mxu1 }
 0x392   : > { %12393 = vmatpush3.bf16.msra.mxu0 %v12390_v59  ;;  %v14543_v28 = vpop.f32.mrb[108].mxu1  ;;  %v10018_v59 = vld [vmem:[%s16149_s28 + $0x1a8] sm:$0xff] }
 0x393   : > { %12395 = vmatprep.subr.bf16.mxu0 %v12394_v7  ;;  %v14545_v39 = vpop.f32.mrb[109].mxu1 }
 0x395   : > { %11434 = vmatmul.mubr.msk.f32.vlgmr.msra.gmra.mrb[56].mxu0 %vm2731_vm3, %v11333_v22  ;;  %v10001_v22 = vld [vmem:[%s16149_s28 + $0x140] sm:$0xff] }
 0x396   : > { %12397 = vmatpush3.bf16.msra.mxu0 %v12394_v7  ;;  %11436 = vmatprep.mubr.msk.f32.mxu0 %vm2731_vm3, %v2585_v40  ;;  %v14555_v45 = vpop.f32.mrb[110].mxu1  ;;  %v12426_v60 = vpack.c.bf16 %v10002_v53, %v10001_v22  ;;  %v10025_v7 = vld [vmem:[%s16149_s28 + $0x1c0] sm:$0xff] }
 0x397   : > { %12399 = vmatprep.subr.bf16.mxu0 %v12398_v23  ;;  %v14557_v14 = vpop.f32.mrb[111].mxu1 }
 0x399   : > { %11437 = vmatmul.mubr.msk.f32.gmra.mrb[58].mxu0 %vm2731_vm3, %v11336_v32  ;;  %v10003_v32 = vld [vmem:[%s16149_s28 + $0x150] sm:$0xff] }
 0x39a   : > { %12401 = vmatpush3.bf16.msra.mxu0 %v12398_v23  ;;  %11455 = vmatprep.mubr.msk.f32.mxu0 %vm2731_vm3, %v2595_v44  ;;  %v14567_v20 = vpop.f32.mrb[112].mxu1  ;;  %v12430_v40 = vpack.c.bf16 %v10004_v1, %v10003_v32  ;;  %v10008_v44 = vld [vmem:[%s16149_s28 + $0x178] sm:$0xff]  ;;  %v3725_v1 = vld [vmem:[%s16150_s27 + $0x8] sm:$0xff] }
 0x39b   : > { %12403 = vmatprep.subr.bf16.mxu0 %v12402_v11  ;;  %v14569_v62 = vpop.f32.mrb[113].mxu1  ;;  %v12438_v10 = vpack.c.bf16 %v10008_v44, %v10007_v50  ;;  %v3730_v50 = vld [vmem:[%s16150_s27 + $0x30] sm:$0xff]  ;;  %v3731_v44 = vld [vmem:[%s16150_s27 + $0x38] sm:$0xff] }
 0x39e   : > { %12405 = vmatpush3.bf16.msra.mxu0 %v12402_v11  ;;  %v14577_v5 = vpop.f32.mrb[114].mxu1  ;;  %v10032_v11 = vld [vmem:[%s16149_s28 + $0x1f8] sm:$0xff] }
 0x39f   : > { %12407 = vmatprep.subr.bf16.mxu0 %v12406_v33  ;;  %v14579_v24 = vpop.f32.mrb[115].mxu1 }
 0x3a2   : > { %12409 = vmatpush3.bf16.msra.mxu0 %v12406_v33  ;;  %v14587_v55 = vpop.f32.mrb[116].mxu1  ;;  %v10039_v33 = vld [vmem:[%s16149_s28 + $0x210] sm:$0xff] }
 0x3a3   : > { %12411 = vmatprep.subr.bf16.mxu0 %v12410_v4  ;;  %v14589_v61 = vpop.f32.mrb[117].mxu1 }
 0x3a5   : > { %11456 = vmatmul.mubr.msk.f32.vlgmr.msra.gmra.mrb[56].mxu0 %vm2731_vm3, %v14505_v8  ;;  %v12434_v8 = vpack.c.bf16 %v10006_v49, %v10005_v43  ;;  %v3727_v43 = vld [vmem:[%s16150_s27 + $0x18] sm:$0xff]  ;;  %v3728_v49 = vld [vmem:[%s16150_s27 + $0x20] sm:$0xff] }
 0x3a6   : > { %12413 = vmatpush3.bf16.msra.mxu0 %v12410_v4  ;;  %11458 = vmatprep.mubr.msk.f32.mxu0 %vm2731_vm3, %v2605_v9  ;;  %v14600_v31 = vpop.f32.mrb[118].mxu1  ;;  %v10015_v9 = vld [vmem:[%s16149_s28 + $0x190] sm:$0xff] }
 0x3a7   : > { %12415 = vmatprep.subr.bf16.mxu0 %v12414_v42  ;;  %v14602_v51 = vpop.f32.mrb[119].mxu1  ;;  %v12446_v54 = vpack.c.bf16 %v10016_v52, %v10015_v9  ;;  %v3736_v9 = vld [vmem:[%s16150_s27 + $0x60] sm:$0xff]  ;;  %v3737_v52 = vld [vmem:[%s16150_s27 + $0x68] sm:$0xff] }
 0x3a9   : > { %11459 = vmatmul.mubr.msk.f32.gmra.mrb[58].mxu0 %vm2731_vm3, %v14515_v58  ;;  %v10014_v58 = vld [vmem:[%s16149_s28 + $0x188] sm:$0xff] }
 0x3aa   : > { %12417 = vmatpush3.bf16.msra.mxu0 %v12414_v42  ;;  %11477 = vmatprep.mubr.msk.f32.mxu0 %vm2731_vm3, %v2615_v2  ;;  %v14613_v47 = vpop.f32.mrb[120].mxu1  ;;  %v12442_v48 = vpack.c.bf16 %v10014_v58, %v10013_v12  ;;  %v3704_v42 = vpop.permute.xlu1 %3703  ;;  %v3733_v12 = vld [vmem:[%s16150_s27 + $0x48] sm:$0xff]  ;;  %v3734_v58 = vld [vmem:[%s16150_s27 + $0x50] sm:$0xff] }
 0x3ab   : > { %12419 = vmatprep.subr.bf16.mxu0 %v12418_v34  ;;  %v14615_v46 = vpop.f32.mrb[121].mxu1 }
 0x3ae   : > { %12421 = vmatpush3.bf16.msra.mxu0 %v12418_v34  ;;  %v14623_v35 = vpop.f32.mrb[122].mxu1  ;;  %v3714_v13 = vpop.permute.xlu1 %3713 }
 0x3af   : > { %12423 = vmatprep.subr.bf16.mxu0 %v12422_v56  ;;  %v14625_v38 = vpop.f32.mrb[123].mxu1 }
 0x3b2   : > { %12425 = vmatpush3.bf16.msra.mxu0 %v12422_v56 }
 0x3b3   : > { %12427 = vmatprep.subr.bf16.mxu0 %v12426_v60 }
 0x3b5   : > { %11478 = vmatmul.mubr.msk.f32.vlgmr.msra.gmra.mrb[56].mxu0 %vm2731_vm3, %v14525_v57  ;;  %v10017_v57 = vld [vmem:[%s16149_s28 + $0x1a0] sm:$0xff] }
 0x3b6   : > { %12429 = vmatpush3.bf16.msra.mxu0 %v12426_v60  ;;  %11480 = vmatprep.mubr.msk.f32.mxu0 %vm2731_vm3, %v14535_v37  ;;  %v12450_v2 = vpack.c.bf16 %v10018_v59, %v10017_v57  ;;  %v10026_v37 = vld [vmem:[%s16149_s28 + $0x1c8] sm:$0xff]  ;;  %v3739_v57 = vld [vmem:[%s16150_s27 + $0x78] sm:$0xff]  ;;  %v3740_v59 = vld [vmem:[%s16150_s27 + $0x80] sm:$0xff] }
 0x3b7   : > { %12431 = vmatprep.subr.bf16.mxu0 %v12430_v40  ;;  %v12458_v6 = vpack.c.bf16 %v10026_v37, %v10025_v7  ;;  %v3953_v7 = vld [vmem:[%s16151_s1] sm:$0xff]  ;;  %v3954_v37 = vld [vmem:[%s16151_s1 + $0x8] sm:$0xff] }
 0x3b9   : > { %11481 = vmatmul.mubr.msk.f32.gmra.mrb[58].mxu0 %vm2731_vm3, %v14533_v18  ;;  %v12454_v18 = vpack.c.bf16 %v10020_v3, %v10019_v19  ;;  %v10067_v19 = vld [vmem:[%s16151_s1 + $0x10] sm:$0xff]  ;;  %v10068_v3 = vld [vmem:[%s16151_s1 + $0x18] sm:$0xff] }
 0x3ba   : > { %12433 = vmatpush3.bf16.msra.mxu0 %v12430_v40  ;;  %11499 = vmatprep.mubr.msk.f32.mxu0 %vm2731_vm3, %v14545_v39  ;;  %v10029_v39 = vld [vmem:[%s16149_s28 + $0x1e0] sm:$0xff]  ;;  %v3726_v40 = vld [vmem:[%s16150_s27 + $0x10] sm:$0xff] }
 0x3bb   : > { %12435 = vmatprep.subr.bf16.mxu0 %v12434_v8  ;;  %v12466_v41 = vpack.c.bf16 %v10030_v29, %v10029_v39  ;;  %v10074_v39 = vld [vmem:[%s16151_s1 + $0x28] sm:$0xff] }
 0x3be   : > { %12437 = vmatpush3.bf16.msra.mxu0 %v12434_v8  ;;  %v3729_v8 = vld [vmem:[%s16150_s27 + $0x28] sm:$0xff] }
 0x3bf   : > { %12439 = vmatprep.subr.bf16.mxu0 %v12438_v10 }
 0x3c2   : > { %12441 = vmatpush3.bf16.msra.mxu0 %v12438_v10  ;;  %v3732_v10 = vld [vmem:[%s16150_s27 + $0x40] sm:$0xff] }
 0x3c3   : > { %12443 = vmatprep.subr.bf16.mxu0 %v12442_v48 }
 0x3c5   : > { %11500 = vmatmul.mubr.msk.f32.vlgmr.msra.gmra.mrb[56].mxu0 %vm2731_vm3, %v14543_v28  ;;  %v10028_v28 = vld [vmem:[%s16149_s28 + $0x1d8] sm:$0xff] }
 0x3c6   : > { %12445 = vmatpush3.bf16.msra.mxu0 %v12442_v48  ;;  %11502 = vmatprep.mubr.msk.f32.mxu0 %vm2731_vm3, %v14557_v14  ;;  %v12462_v23 = vpack.c.bf16 %v10028_v28, %v10027_v63  ;;  %v3735_v48 = vld [vmem:[%s16150_s27 + $0x58] sm:$0xff] }
 0x3c7   : > { %12447 = vmatprep.subr.bf16.mxu0 %v12446_v54 }
 0x3c9   : > { %11503 = vmatmul.mubr.msk.f32.gmra.mrb[58].mxu0 %vm2731_vm3, %v14555_v45  ;;  %v10031_v45 = vld [vmem:[%s16149_s28 + $0x1f0] sm:$0xff] }
 0x3ca   : > { %12449 = vmatpush3.bf16.msra.mxu0 %v12446_v54  ;;  %11521 = vmatprep.mubr.msk.f32.mxu0 %vm2731_vm3, %v14569_v62  ;;  %v12470_v14 = vpack.c.bf16 %v10032_v11, %v10031_v45  ;;  %v10040_v62 = vld [vmem:[%s16149_s28 + $0x218] sm:$0xff]  ;;  %v3738_v54 = vld [vmem:[%s16150_s27 + $0x70] sm:$0xff] }
 0x3cb   : > { %12451 = vmatprep.subr.bf16.mxu0 %v12450_v2  ;;  %v12478_v36 = vpack.c.bf16 %v10040_v62, %v10039_v33 }
 0x3ce   : > { %12453 = vmatpush3.bf16.msra.mxu0 %v12450_v2  ;;  %v3741_v2 = vld [vmem:[%s16150_s27 + $0x88] sm:$0xff] }
 0x3cf   : > { %12455 = vmatprep.subr.bf16.mxu0 %v12454_v18 }
 0x3d2   : > { %12457 = vmatpush3.bf16.msra.mxu0 %v12454_v18  ;;  %v12498_v18 = vpack.c.bf16 %v10068_v3, %v10067_v19  ;;  %v4745_v19 = vld [vmem:[%s16152_s10 + $0x40] sm:$0xff] }
 0x3d3   : > { %12459 = vmatprep.subr.bf16.mxu0 %v12458_v6  ;;  %v10110_v3 = vld [vmem:[%s16100_s11] ss:$0 sm:$0xff] }
 0x3d5   : > { %11522 = vmatmul.mubr.msk.f32.vlgmr.msra.gmra.mrb[56].mxu0 %vm2731_vm3, %v14567_v20  ;;  %v12474_v20 = vpack.c.bf16 %v10038_v16, %v10037_v15  ;;  %v10077_v15 = vld [vmem:[%s16151_s1 + $0x30] sm:$0xff]  ;;  %v10078_v16 = vld [vmem:[%s16151_s1 + $0x38] sm:$0xff] }
 0x3d6   : > { %12461 = vmatpush3.bf16.msra.mxu0 %v12458_v6  ;;  %11524 = vmatprep.mubr.msk.f32.mxu0 %vm2731_vm3, %v14579_v24  ;;  %v10043_v24 = vld [vmem:[%s16149_s28 + $0x230] sm:$0xff]  ;;  %v12502_v6 = vpack.c.bf16 %v3954_v37, %v3953_v7  ;;  %v12510_v33 = vpack.c.bf16 %v10078_v16, %v10077_v15  ;;  %v10116_v15 = vld [vmem:[%s16100_s11 + $0x3] ss:$0 sm:$0xff] }
 0x3d7   : > { %12463 = vmatprep.subr.bf16.mxu0 %v12462_v23  ;;  %v12486_v30 = vpack.c.bf16 %v10044_v25, %v10043_v24 }
 0x3d9   : > { %11525 = vmatmul.mubr.msk.f32.gmra.mrb[58].mxu0 %vm2731_vm3, %v14577_v5  ;;  %v10042_v5 = vld [vmem:[%s16149_s28 + $0x228] sm:$0xff] }
 0x3da   : > { %12465 = vmatpush3.bf16.msra.mxu0 %v12462_v23  ;;  %11543 = vmatprep.mubr.msk.f32.mxu0 %vm2731_vm3, %v14589_v61  ;;  %v12482_v4 = vpack.c.bf16 %v10042_v5, %v10041_v17  ;;  %v3699_v61 = vpop.permute.xlu0 %3698  ;;  %v10073_v23 = vld [vmem:[%s16151_s1 + $0x20] sm:$0xff] }
 0x3db   : > { %12467 = vmatprep.subr.bf16.mxu0 %v12466_v41  ;;  %v12506_v45 = vpack.c.bf16 %v10074_v39, %v10073_v23  ;;  %v10081_v5 = vld [vmem:[%s16151_s1 + $0x40] sm:$0xff] }
 0x3de   : > { %12469 = vmatpush3.bf16.msra.mxu0 %v12466_v41  ;;  %v3709_v56 = vpop.permute.xlu0 %3708 }
 0x3df   : > { %12471 = vmatprep.subr.bf16.mxu0 %v12470_v14 }
 0x3e2   : > { %12473 = vmatpush3.bf16.msra.mxu0 %v12470_v14 }
 0x3e3   : > { %12475 = vmatprep.subr.bf16.mxu0 %v12474_v20 }
 0x3e5   : > { %11544 = vmatmul.mubr.msk.f32.vlgmr.msra.gmra.mrb[56].mxu0 %vm2731_vm3, %v14587_v55  ;;  %v3724_v55 = vld [vmem:[%s16150_s27] sm:$0xff] }
 0x3e6   : > { %12477 = vmatpush3.bf16.msra.mxu0 %v12474_v20  ;;  %11546 = vmatprep.mubr.msk.f32.mxu0 %vm2731_vm3, %v14602_v51 }
 0x3e7   : > { %12479 = vmatprep.subr.bf16.mxu0 %v12478_v36  ;;  %11579 = vmatprep.mubr.msk.f32.mxu1 %vm2360_vm2, %v3724_v55 }
 0x3e9   : > { %11547 = vmatmul.mubr.msk.f32.gmra.mrb[58].mxu0 %vm2731_vm3, %v14600_v31 }
 0x3ea   : > { %12481 = vmatpush3.bf16.msra.mxu0 %v12478_v36  ;;  %11565 = vmatprep.mubr.msk.f32.mxu0 %vm2731_vm3, %v14615_v46 }
 0x3eb   : > { %12483 = vmatprep.subr.bf16.mxu0 %v12482_v4 }
 0x3ee   : > { %12485 = vmatpush3.bf16.msra.mxu0 %v12482_v4  ;;  %v10082_v4 = vld [vmem:[%s16151_s1 + $0x48] sm:$0xff] }
 0x3ef   : > { %12487 = vmatprep.subr.bf16.mxu0 %v12486_v30  ;;  %v12514_v25 = vpack.c.bf16 %v10082_v4, %v10081_v5 }
 0x3f2   : > { %12489 = vmatpush3.bf16.msra.mxu0 %v12486_v30 }
 0x3f5   : > { %11566 = vmatmul.mubr.msk.f32.vlgmr.msra.gmra.mrb[56].mxu0 %vm2731_vm3, %v14613_v47 }
 0x3f6   : > { %11568 = vmatprep.mubr.msk.f32.mxu0 %vm2731_vm3, %v14625_v38 }
 0x3f9   : > { %11569 = vmatmul.mubr.msk.f32.gmra.mrb[58].mxu0 %vm2731_vm3, %v14623_v35 }
 0x4c8   : > { %v11567_v27 = vpop.f32.mrb[56].mxu0 }
 0x4c9   : > { %v3717_v26 = vadd.f32 %v11567_v27, %v3704_v42  ;;  %v3673_v31 = vpop.f32.mrb[57].mxu0  ;;  %v10086_v27 = vld [vmem:[%s16151_s1 + $0x58] sm:$0xff] }
 0x4ca   : > { %v3716_v34 = vadd.f32 %v3699_v61, %v3673_v31  ;;  %v10085_v61 = vld [vmem:[%s16151_s1 + $0x50] sm:$0xff] }
 0x4cb   : > { %v3721_v51 = vmax.f32 %v3717_v26, 0.0  ;;  %v12518_v31 = vpack.c.bf16 %v10086_v27, %v10085_v61  ;;  %v10122_v27 = vld [vmem:[%s16100_s11 + $0x6] ss:$0 sm:$0xff] }
 0x4cc   : > { %v3720_v21 = vmax.f32 %v3716_v34, 0.0  ;;  %v11570_v47 = vpop.f32.mrb[58].mxu0 }
 0x4cd   : > { %v3719_v46 = vadd.f32 %v11570_v47, %v3714_v13  ;;  %v3683_v22 = vpop.f32.mrb[59].mxu0  ;;  %v10090_v47 = vld [vmem:[%s16151_s1 + $0x68] sm:$0xff] }
 0x4ce   : > { %v12490_v53 = vpack.c.bf16 %v3721_v51, %v3720_v21  ;;  %v3718_v35 = vadd.f32 %v3709_v56, %v3683_v22  ;;  %v10089_v21 = vld [vmem:[%s16151_s1 + $0x60] sm:$0xff]  ;;  %v10094_v22 = vld [vmem:[%s16151_s1 + $0x78] sm:$0xff] }
 0x4cf   : > { %v3723_v60 = vmax.f32 %v3719_v46, 0.0  ;;  %v12522_v56 = vpack.c.bf16 %v10090_v47, %v10089_v21  ;;  %v10093_v46 = vld [vmem:[%s16151_s1 + $0x70] sm:$0xff] }
 0x4d0   : > { %v3722_v38 = vmax.f32 %v3718_v35, 0.0  ;;  %12491 = vmatprep.subr.bf16.mxu1 %v12490_v53  ;;  %v10097_v35 = vld [vmem:[%s16151_s1 + $0x80] sm:$0xff] }
 0x4d1   : > { %12493 = vmatpush3.bf16.msra.mxu1 %v12490_v53  ;;  %v12526_v53 = vpack.c.bf16 %v10094_v22, %v10093_v46  ;;  %v10126_v22 = vld [vmem:[%s16100_s11 + $0x8] ss:$0 sm:$0xff] }
 0x4d2   : > { %v12494_v32 = vpack.c.bf16 %v3723_v60, %v3722_v38  ;;  %v10098_v60 = vld [vmem:[%s16151_s1 + $0x88] sm:$0xff] }
 0x4d3   : > { %v12530_v38 = vpack.c.bf16 %v10098_v60, %v10097_v35 }
 0x4d4   : > { %12495 = vmatprep.subr.bf16.mxu1 %v12494_v32 }
 0x4d5   : > { %12497 = vmatpush3.bf16.msra.mxu1 %v12494_v32  ;;  %v12914_v32 = vmov 0.0|0.0  }
 0x4d6   : > { %12499 = vmatprep.subr.bf16.mxu1 %v12498_v18 }
 0x4d8   : > { %11580 = vmatmul.mubr.msk.f32.vlgmr.msra.gmra.mrb[124].mxu1 %vm2360_vm2, %v3725_v1  ;;  %v4731_v1 = vpop.permute.xlu1 %4730 }
 0x4d9   : > { %11582 = vmatprep.mubr.msk.f32.mxu1 %vm2360_vm2, %v3726_v40  ;;  %12501 = vmatpush3.bf16.msra.mxu1 %v12498_v18 }
 0x4da   : > { %12503 = vmatprep.subr.bf16.mxu1 %v12502_v6 }
 0x4dc   : > { %11583 = vmatmul.mubr.msk.f32.gmra.mrb[126].mxu1 %vm2360_vm2, %v3727_v43  ;;  %v4726_v43 = vpop.permute.xlu0 %4725 }
 0x4dd   : > { %11585 = vmatprep.mubr.msk.f32.mxu1 %vm2360_vm2, %v3728_v49 }
 0x4e0   : > { %11586 = vmatmul.mubr.msk.f32.gmra.mrb[128].mxu1 %vm2360_vm2, %v3729_v8 }
 0x4e1   : > { %11588 = vmatprep.mubr.msk.f32.mxu1 %vm2360_vm2, %v3730_v50 }
 0x4e4   : > { %11589 = vmatmul.mubr.msk.f32.gmra.mrb[130].mxu1 %vm2360_vm2, %v3731_v44 }
 0x4e5   : > { %11591 = vmatprep.mubr.msk.f32.mxu1 %vm2360_vm2, %v3732_v10 }
 0x4e8   : > { %11592 = vmatmul.mubr.msk.f32.gmra.mrb[132].mxu1 %vm2360_vm2, %v3733_v12 }
 0x4e9   : > { %11594 = vmatprep.mubr.msk.f32.mxu1 %vm2360_vm2, %v3734_v58  ;;  %v4737_v58 = vld [vmem:[%s16152_s10] sm:$0xff] }
 0x4ec   : > { %11595 = vmatmul.mubr.msk.f32.gmra.mrb[134].mxu1 %vm2360_vm2, %v3735_v48  ;;  %v4738_v48 = vld [vmem:[%s16152_s10 + $0x8] sm:$0xff] }
 0x4ed   : > { %11597 = vmatprep.mubr.msk.f32.mxu1 %vm2360_vm2, %v3736_v9  ;;  %v4739_v9 = vld [vmem:[%s16152_s10 + $0x10] sm:$0xff] }
 0x4f0   : > { %11598 = vmatmul.mubr.msk.f32.gmra.mrb[136].mxu1 %vm2360_vm2, %v3737_v52  ;;  %v4740_v52 = vld [vmem:[%s16152_s10 + $0x18] sm:$0xff] }
 0x4f1   : > { %11600 = vmatprep.mubr.msk.f32.mxu1 %vm2360_vm2, %v3738_v54  ;;  %v4741_v54 = vld [vmem:[%s16152_s10 + $0x20] sm:$0xff] }
 0x4f4   : > { %11601 = vmatmul.mubr.msk.f32.gmra.mrb[138].mxu1 %vm2360_vm2, %v3739_v57  ;;  %v4742_v57 = vld [vmem:[%s16152_s10 + $0x28] sm:$0xff] }
 0x4f5   : > { %11603 = vmatprep.mubr.msk.f32.mxu1 %vm2360_vm2, %v3740_v59  ;;  %v4743_v59 = vld [vmem:[%s16152_s10 + $0x30] sm:$0xff] }
 0x4f8   : > { %11604 = vmatmul.mubr.msk.f32.gmra.mrb[140].mxu1 %vm2360_vm2, %v3741_v2  ;;  %v4744_v2 = vld [vmem:[%s16152_s10 + $0x38] sm:$0xff] }
 0x5ab   : > { %v11581_v63 = vpop.f32.mrb[124].mxu1 }
 0x5ac   : > { %v3864_v28 = vpop.f32.mrb[125].mxu1 }
 0x5af   : > { %v11584_v29 = vpop.f32.mrb[126].mxu1 }
 0x5b0   : > { %v3874_v41 = vpop.f32.mrb[127].mxu1 }
 0x5b1   : > { %11610 = vmatprep.mubr.msk.f32.mxu1 %vm3958_vm4, %v3874_v41 }
 0x5b2   : > { %11611 = vmatmul.mubr.msk.f32.vlgmr.msra.gmra.mrb[142].mxu1 %vm3958_vm4, %v11584_v29  ;;  %v10114_v29 = vld [vmem:[%s16100_s11 + $0x2] ss:$0 sm:$0xff] }
 0x5b3   : > { %11617 = vmatprep.mubr.msk.f32.mxu1 %vm3958_vm4, %v3864_v28  ;;  %12505 = vmatpush3.bf16.msra.mxu1 %v12502_v6  ;;  %v11587_v11 = vpop.f32.mrb[128].mxu1  ;;  %v10112_v6 = vld [vmem:[%s16100_s11 + $0x1] ss:$0 sm:$0xff] }
 0x5b4   : > { %12507 = vmatprep.subr.bf16.mxu1 %v12506_v45  ;;  %v3884_v14 = vpop.f32.mrb[129].mxu1 }
 0x5b7   : > { %v11590_v20 = vpop.f32.mrb[130].mxu1 }
 0x5b8   : > { %v3894_v62 = vpop.f32.mrb[131].mxu1 }
 0x5ba   : > { %11618 = vmatmul.mubr.msk.f32.vlgmr.msra.gmra.mrb[142].mxu1 %vm3958_vm4, %v11581_v63 }
 0x5bb   : > { %12509 = vmatpush3.bf16.msra.mxu1 %v12506_v45  ;;  %11624 = vmatprep.mubr.msk.f32.mxu1 %vm3958_vm4, %v3884_v14  ;;  %v11593_v36 = vpop.f32.mrb[132].mxu1 }
 0x5bc   : > { %12511 = vmatprep.subr.bf16.mxu1 %v12510_v33  ;;  %v3904_v17 = vpop.f32.mrb[133].mxu1 }
 0x5bf   : > { %v11596_v24 = vpop.f32.mrb[134].mxu1 }
 0x5c0   : > { %v3914_v30 = vpop.f32.mrb[135].mxu1 }
 0x5c2   : > { %11625 = vmatmul.mubr.msk.f32.vlgmr.msra.gmra.mrb[142].mxu1 %vm3958_vm4, %v11587_v11 }
 0x5c3   : > { %12513 = vmatpush3.bf16.msra.mxu1 %v12510_v33  ;;  %11631 = vmatprep.mubr.msk.f32.mxu1 %vm3958_vm4, %v3894_v62  ;;  %v11599_v55 = vpop.f32.mrb[136].mxu1 }
 0x5c4   : > { %12515 = vmatprep.subr.bf16.mxu1 %v12514_v25  ;;  %v3924_v42 = vpop.f32.mrb[137].mxu1 }
 0x5c7   : > { %v11602_v26 = vpop.f32.mrb[138].mxu1 }
 0x5c8   : > { %v3934_v34 = vpop.f32.mrb[139].mxu1 }
 0x5ca   : > { %11632 = vmatmul.mubr.msk.f32.vlgmr.msra.gmra.mrb[142].mxu1 %vm3958_vm4, %v11590_v20 }
 0x5cb   : > { %12517 = vmatpush3.bf16.msra.mxu1 %v12514_v25  ;;  %11638 = vmatprep.mubr.msk.f32.mxu1 %vm3958_vm4, %v3904_v17  ;;  %v11605_v51 = vpop.f32.mrb[140].mxu1  ;;  %v10120_v25 = vld [vmem:[%s16100_s11 + $0x5] ss:$0 sm:$0xff] }
 0x5cc   : > { %12519 = vmatprep.subr.bf16.mxu1 %v12518_v31  ;;  %v3944_v13 = vpop.f32.mrb[141].mxu1 }
 0x5d2   : > { %11639 = vmatmul.mubr.msk.f32.vlgmr.msra.gmra.mrb[142].mxu1 %vm3958_vm4, %v11593_v36  ;;  %v10118_v36 = vld [vmem:[%s16100_s11 + $0x4] ss:$0 sm:$0xff] }
 0x5d3   : > { %12521 = vmatpush3.bf16.msra.mxu1 %v12518_v31  ;;  %11645 = vmatprep.mubr.msk.f32.mxu1 %vm3958_vm4, %v3914_v30 }
 0x5d4   : > { %12523 = vmatprep.subr.bf16.mxu1 %v12522_v56 }
 0x5da   : > { %11646 = vmatmul.mubr.msk.f32.vlgmr.msra.gmra.mrb[142].mxu1 %vm3958_vm4, %v11596_v24 }
 0x5db   : > { %12525 = vmatpush3.bf16.msra.mxu1 %v12522_v56  ;;  %11652 = vmatprep.mubr.msk.f32.mxu1 %vm3958_vm4, %v3924_v42 }
 0x5dc   : > { %12527 = vmatprep.subr.bf16.mxu1 %v12526_v53 }
 0x5e2   : > { %11653 = vmatmul.mubr.msk.f32.vlgmr.msra.gmra.mrb[142].mxu1 %vm3958_vm4, %v11599_v55 }
 0x5e3   : > { %12529 = vmatpush3.bf16.msra.mxu1 %v12526_v53  ;;  %11659 = vmatprep.mubr.msk.f32.mxu1 %vm3958_vm4, %v3934_v34 }
 0x5e4   : > { %12531 = vmatprep.subr.bf16.mxu1 %v12530_v38 }
 0x5ea   : > { %11660 = vmatmul.mubr.msk.f32.vlgmr.msra.gmra.mrb[142].mxu1 %vm3958_vm4, %v11602_v26 }
 0x5eb   : > { %12533 = vmatpush3.bf16.msra.mxu1 %v12530_v38  ;;  %11666 = vmatprep.mubr.msk.f32.mxu1 %vm3958_vm4, %v3944_v13  ;;  %v10124_v13 = vld [vmem:[%s16100_s11 + $0x7] ss:$0 sm:$0xff] }
 0x5ec   : > { %12534 = vmatprep.subr.bf16.mxu1 %v12914_v32 }
 0x5f2   : > { %11667 = vmatmul.mubr.msk.f32.vlgmr.msra.gmra.mrb[142].mxu1 %vm3958_vm4, %v11605_v51 }
 0x5f3   : > { %11673 = vmatprep.mubr.msk.f32.mxu1 %vm12915_vm5, %v12912_v0 }
 0x6c5   : > { %v11668_v40 = vpop.f32.mrb[142].mxu1 }
 0x6c6   : > { %v4734_v49 = vadd.f32 %v11668_v40, %v4731_v1  ;;  %v4712_v8 = vpop.f32.mrb[143].mxu1  ;;  %v5021_v40 = vld [vmem:[%s16104_s15] sm:$0xff] }
 0x6c7   : > { %v4733_v50 = vadd.f32 %v4726_v43, %v4712_v8  ;;  %v5022_v43 = vld [vmem:[%s16104_s15 + $0x8] sm:$0xff]  ;;  %v5905_v8 = vld [vmem:[%s16107_s18 + $0x18] sm:$0xff] }
 0x6c8   : > { %v4736_v44 = vmax.f32 %v4734_v49, 0.0  ;;  %v5903_v49 = vld [vmem:[%s16107_s18 + $0x8] sm:$0xff] }
 0x6c9   : > { %v4735_v10 = vmax.f32 %v4733_v50, 0.0  ;;  %v7269_v50 = vld [vmem:[%s16110_s21 + $0x8] sm:$0xff] }
 0x6cb   : > { %v12535_v12 = vpack.c.bf16 %v4736_v44, %v4735_v10  ;;  %v7271_v44 = vld [vmem:[%s16110_s21 + $0x18] sm:$0xff] }
 0x6cd   : > { %12536 = vmatpush3.bf16.msra.mxu1 %v12535_v12 }
 0x6d0   : > { %11674 = vmatmul.mubr.msk.f32.vlgmr.msra.gmra.mrb[144].mxu1 %vm3958_vm4, %v4737_v58 }
 0x6d1   : > { %11676 = vmatprep.mubr.msk.f32.mxu1 %vm12915_vm5, %v12912_v0 }
 0x6d4   : > { %11677 = vmatmul.mubr.msk.f32.gmra.mrb[146].mxu1 %vm3958_vm4, %v4738_v48 }
 0x6d5   : > { %11679 = vmatprep.mubr.msk.f32.mxu1 %vm12915_vm5, %v12912_v0 }
 0x6d8   : > { %11680 = vmatmul.mubr.msk.f32.gmra.mrb[148].mxu1 %vm3958_vm4, %v4739_v9 }
 0x6d9   : > { %11682 = vmatprep.mubr.msk.f32.mxu1 %vm12915_vm5, %v12912_v0 }
 0x6dc   : > { %11683 = vmatmul.mubr.msk.f32.gmra.mrb[150].mxu1 %vm3958_vm4, %v4740_v52 }
 0x6dd   : > { %11685 = vmatprep.mubr.msk.f32.mxu1 %vm12915_vm5, %v12912_v0 }
 0x6e0   : > { %11686 = vmatmul.mubr.msk.f32.gmra.mrb[152].mxu1 %vm3958_vm4, %v4741_v54 }
 0x6e1   : > { %11688 = vmatprep.mubr.msk.f32.mxu1 %vm12915_vm5, %v12912_v0 }
 0x6e4   : > { %11689 = vmatmul.mubr.msk.f32.gmra.mrb[154].mxu1 %vm3958_vm4, %v4742_v57 }
 0x6e5   : > { %11691 = vmatprep.mubr.msk.f32.mxu1 %vm12915_vm5, %v12912_v0 }
 0x6e8   : > { %11692 = vmatmul.mubr.msk.f32.gmra.mrb[156].mxu1 %vm3958_vm4, %v4743_v59 }
 0x6e9   : > { %11694 = vmatprep.mubr.msk.f32.mxu1 %vm12915_vm5, %v12912_v0 }
 0x6ec   : > { %11695 = vmatmul.mubr.msk.f32.gmra.mrb[158].mxu1 %vm3958_vm4, %v4744_v2 }
 0x6ed   : > { %11697 = vmatprep.mubr.msk.f32.mxu1 %vm12915_vm5, %v12912_v0 }
 0x6f0   : > { %11698 = vmatmul.mubr.msk.f32.gmra.mrb[160].mxu1 %vm3958_vm4, %v4745_v19 }
 0x7a3   : > { %v4840_v18 = vpop.f32.mrb[144].mxu1 }
 0x7a4   : > { %v4891_v7 = vmul.f32 %v10110_v3, %v4840_v18  ;;  %v11675_v37 = vpop.f32.mrb[145].mxu1 }
 0x7a6   : > { %v4892_v63 = vsel %vm808_vm1, %v4891_v7, 0.0 }
 0x7a7   : > { %4893 = vadd.xlane.f32.xlu0 %v4892_v63  ;;  %v4845_v28 = vpop.f32.mrb[146].mxu1 }
 0x7a8   : > { %v4904_v23 = vmul.f32 %v10112_v6, %v4845_v28  ;;  %v11678_v39 = vpop.f32.mrb[147].mxu1  ;;  %v4746_v6 = vld [vmem:[%s16101_s12] sm:$0xff] }
 0x7aa   : > { %v4905_v41 = vsel %vm808_vm1, %v4904_v23, 0.0 }
 0x7ab   : > { %4906 = vadd.xlane.f32.xlu1 %v4905_v41  ;;  %v4850_v45 = vpop.f32.mrb[148].mxu1  ;;  %v5902_v41 = vld [vmem:[%s16107_s18] sm:$0xff] }
 0x7ac   : > { %v4917_v11 = vmul.f32 %v10114_v29, %v4850_v45  ;;  %v11681_v14 = vpop.f32.mrb[149].mxu1  ;;  %v5005_v45 = vld [vmem:[%s16102_s13 + $0x10] sm:$0xff] }
 0x7ad   : > { %11702 = vmatprep.mubr.msk.f32.mxu0 %vm5045_vm6, %v5005_v45  ;;  %v7268_v14 = vld [vmem:[%s16110_s21] sm:$0xff] }
 0x7ae   : > { %v4918_v16 = vsel %vm808_vm1, %v4917_v11, 0.0  ;;  %v5904_v11 = vld [vmem:[%s16107_s18 + $0x10] sm:$0xff]  ;;  %v5878_v45 = vld [vmem:[%s16105_s16 + $0x60] sm:$0xff] }
 0x7af   : > { %4919 = vadd.xlane.f32.xlu0 %v4918_v16  ;;  %v4855_v20 = vpop.f32.mrb[150].mxu1  ;;  %v8585_v16 = vld [vmem:[%s16113_s24] sm:$0xf] }
 0x7b0   : > { %v4930_v33 = vmul.f32 %v10116_v15, %v4855_v20  ;;  %v11684_v62 = vpop.f32.mrb[151].mxu1  ;;  %v7270_v15 = vld [vmem:[%s16110_s21 + $0x10] sm:$0xff]  ;;  %v10129_v20 = vld [vmem:[%s16103_s14 + $0x1] ss:$0 sm:$0xff] }
 0x7b1   : > { %v10127_v62 = vld [vmem:[%s16103_s14] ss:$0 sm:$0xff] }
 0x7b2   : > { %v4931_v17 = vsel %vm808_vm1, %v4930_v33, 0.0 }
 0x7b3   : > { %4932 = vadd.xlane.f32.xlu0 %v4931_v17  ;;  %v4860_v5 = vpop.f32.mrb[152].mxu1  ;;  %v5006_v17 = vld [vmem:[%s16102_s13 + $0x18] sm:$0xff] }
 0x7b4   : > { %v4943_v4 = vmul.f32 %v10118_v36, %v4860_v5  ;;  %v11687_v24 = vpop.f32.mrb[153].mxu1  ;;  %v10135_v5 = vld [vmem:[%s16103_s14 + $0x2] ss:$0 sm:$0xff] }
 0x7b5   : > { %v5003_v24 = vld [vmem:[%s16102_s13] sm:$0xff] }
 0x7b6   : > { %v4944_v30 = vsel %vm808_vm1, %v4943_v4, 0.0 }
 0x7b7   : > { %4945 = vadd.xlane.f32.xlu1 %v4944_v30  ;;  %v4865_v55 = vpop.f32.mrb[154].mxu1  ;;  %v5004_v30 = vld [vmem:[%s16102_s13 + $0x8] sm:$0xff] }
 0x7b8   : > { %v4956_v42 = vmul.f32 %v10120_v25, %v4865_v55  ;;  %v11690_v61 = vpop.f32.mrb[155].mxu1  ;;  %v10139_v55 = vld [vmem:[%s16103_s14 + $0x3] ss:$0 sm:$0xff] }
 0x7ba   : > { %v4957_v26 = vsel %vm808_vm1, %v4956_v42, 0.0  ;;  %v5007_v42 = vld [vmem:[%s16102_s13 + $0x20] sm:$0xff] }
 0x7bb   : > { %4958 = vadd.xlane.f32.xlu0 %v4957_v26  ;;  %v4870_v31 = vpop.f32.mrb[156].mxu1  ;;  %v10143_v26 = vld [vmem:[%s16103_s14 + $0x4] ss:$0 sm:$0xff] }
 0x7bc   : > { %v4969_v34 = vmul.f32 %v10122_v27, %v4870_v31  ;;  %v11693_v51 = vpop.f32.mrb[157].mxu1  ;;  %v5008_v27 = vld [vmem:[%s16102_s13 + $0x28] sm:$0xff]  ;;  %v5009_v31 = vld [vmem:[%s16102_s13 + $0x30] sm:$0xff] }
 0x7bd   : > { %v5010_v51 = vld [vmem:[%s16102_s13 + $0x38] sm:$0xff] }
 0x7be   : > { %v4970_v21 = vsel %vm808_vm1, %v4969_v34, 0.0 }
 0x7bf   : > { %4971 = vadd.xlane.f32.xlu1 %v4970_v21  ;;  %v4875_v47 = vpop.f32.mrb[158].mxu1  ;;  %v5011_v21 = vld [vmem:[%s16102_s13 + $0x40] sm:$0xff] }
 0x7c0   : > { %v4982_v56 = vmul.f32 %v10124_v13, %v4875_v47  ;;  %v11696_v46 = vpop.f32.mrb[159].mxu1  ;;  %v10147_v13 = vld [vmem:[%s16103_s14 + $0x5] ss:$0 sm:$0xff] }
 0x7c1   : > { %v10151_v46 = vld [vmem:[%s16103_s14 + $0x6] ss:$0 sm:$0xff] }
 0x7c2   : > { %v4983_v53 = vsel %vm808_vm1, %v4982_v56, 0.0  ;;  %v5012_v56 = vld [vmem:[%s16102_s13 + $0x48] sm:$0xff] }
 0x7c3   : > { %4984 = vadd.xlane.f32.xlu0 %v4983_v53  ;;  %v4880_v35 = vpop.f32.mrb[160].mxu1 }
 0x7c4   : > { %v4995_v60 = vmul.f32 %v10126_v22, %v4880_v35  ;;  %v11699_v38 = vpop.f32.mrb[161].mxu1  ;;  %v5013_v22 = vld [vmem:[%s16102_s13 + $0x50] sm:$0xff]  ;;  %v5014_v35 = vld [vmem:[%s16102_s13 + $0x58] sm:$0xff] }
 0x7c5   : > { %v5015_v38 = vld [vmem:[%s16102_s13 + $0x60] sm:$0xff] }
 0x7c6   : > { %v4996_v1 = vsel %vm808_vm1, %v4995_v60, 0.0  ;;  %v10155_v60 = vld [vmem:[%s16103_s14 + $0x7] ss:$0 sm:$0xff] }
 0x7c7   : > { %4997 = vadd.xlane.f32.xlu1 %v4996_v1 }
 0x7d8   : > { %5854 = vperm.xlu1 %12894, %v5021_v40   ;;  %v5016_v40 = vld [vmem:[%s16102_s13 + $0x68] sm:$0xff] }
 0x7dc   : > { %5859 = vperm.xlu1 %12894, %v5022_v43   ;;  %v10159_v43 = vld [vmem:[%s16103_s14 + $0x8] ss:$0 sm:$0xff] }
 0x7e0   : > { %7211 = vperm.xlu1 %12894, %v5903_v49   ;;  %v5017_v49 = vld [vmem:[%s16102_s13 + $0x70] sm:$0xff] }
 0x7e4   : > { %7221 = vperm.xlu1 %12894, %v5905_v8  }
 0x7e8   : > { %8559 = vperm.xlu1 %12894, %v7269_v50   ;;  %v5018_v50 = vld [vmem:[%s16102_s13 + $0x78] sm:$0xff] }
 0x7ec   : > { %8569 = vperm.xlu1 %12894, %v7271_v44   ;;  %v5019_v44 = vld [vmem:[%s16102_s13 + $0x80] sm:$0xff] }
 0x834   : > { %v4894_v10 = vpop.xlane.xlu0 %4893 }
 0x838   : > { %v4907_v58 = vpop.xlane.xlu1 %4906 }
 0x839   : > { %v4908_v48 = vadd.f32 %v4907_v58, %v4894_v10  ;;  %v5020_v10 = vld [vmem:[%s16102_s13 + $0x88] sm:$0xff] }
 0x83c   : > { %v4920_v12 = vpop.xlane.xlu0 %4919 }
 0x83d   : > { %v4921_v52 = vadd.f32 %v4920_v12, %v4908_v48  ;;  %v5866_v12 = vld [vmem:[%s16105_s16] sm:$0xff] }
 0x83e   : > { %11749 = vmatprep.mubr.msk.f32.mxu1 %vm3958_vm4, %v5866_v12 }
 0x840   : > { %v4933_v9 = vpop.xlane.xlu0 %4932 }
 0x841   : > { %v4934_v57 = vadd.f32 %v4933_v9, %v4921_v52 }
 0x844   : > { %v4946_v54 = vpop.xlane.xlu1 %4945 }
 0x845   : > { %v4947_v2 = vadd.f32 %v4946_v54, %v4934_v57 }
 0x848   : > { %v4959_v59 = vpop.xlane.xlu0 %4958 }
 0x849   : > { %v4960_v3 = vadd.f32 %v4959_v59, %v4947_v2 }
 0x84c   : > { %v4972_v19 = vpop.xlane.xlu1 %4971 }
 0x84d   : > { %v4973_v7 = vadd.f32 %v4972_v19, %v4960_v3  ;;  %v5867_v3 = vld [vmem:[%s16105_s16 + $0x8] sm:$0xff] }
 0x850   : > { %v4985_v18 = vpop.xlane.xlu0 %4984 }
 0x851   : > { %v4986_v37 = vadd.f32 %v4985_v18, %v4973_v7  ;;  %v5868_v18 = vld [vmem:[%s16105_s16 + $0x10] sm:$0xff]  ;;  %v5869_v7 = vld [vmem:[%s16105_s16 + $0x18] sm:$0xff] }
 0x854   : > { %v4998_v63 = vpop.xlane.xlu1 %4997 }
 0x855   : > { %v4999_v28 = vadd.f32 %v4998_v63, %v4986_v37  ;;  %v5870_v37 = vld [vmem:[%s16105_s16 + $0x20] sm:$0xff]  ;;  %v5872_v63 = vld [vmem:[%s16105_s16 + $0x30] sm:$0xff] }
 0x857   : > { %v5000_v23 = vadd.f32 %v4999_v28, %v4746_v6  ;;  %v5871_v6 = vld [vmem:[%s16105_s16 + $0x28] sm:$0xff]  ;;  %v5873_v28 = vld [vmem:[%s16105_s16 + $0x38] sm:$0xff] }
 0x858   : > { %v5855_v58 = vpop.permute.xlu1 %5854 }
 0x859   : > { %v5001_v39 = vmax.f32 %v5000_v23, 0.0  ;;  %v5874_v23 = vld [vmem:[%s16105_s16 + $0x40] sm:$0xff] }
 0x85b   : > { %v5002_v29 = vmin.f32 %v5001_v39, 6.0  ;;  %v5875_v39 = vld [vmem:[%s16105_s16 + $0x48] sm:$0xff] }
 0x85c   : > { %v5860_v48 = vpop.permute.xlu1 %5859 }
 0x85d   : > { %5026 = vperm.xlu0 %12893, %v5002_v29   ;;  %v5876_v29 = vld [vmem:[%s16105_s16 + $0x50] sm:$0xff] }
 0x861   : > { %7206 = vperm.xlu0 %12893, %v5902_v41   ;;  %v5877_v41 = vld [vmem:[%s16105_s16 + $0x58] sm:$0xff] }
 0x865   : > { %7216 = vperm.xlu0 %12893, %v5904_v11   ;;  %v5879_v11 = vld [vmem:[%s16105_s16 + $0x68] sm:$0xff] }
 0x869   : > { %8554 = vperm.xlu0 %12893, %v7268_v14   ;;  %v5880_v14 = vld [vmem:[%s16105_s16 + $0x70] sm:$0xff] }
 0x86d   : > { %8564 = vperm.xlu0 %12893, %v7270_v15   ;;  %v5881_v15 = vld [vmem:[%s16105_s16 + $0x78] sm:$0xff] }
 0x871   : > { %9525 = vperm.xlu0 %12893, %v8585_v16   ;;  %v5882_v16 = vld [vmem:[%s16105_s16 + $0x80] sm:$0xff] }
 0x8dc   : > { %v5027_v33 = vpop.permute.xlu0 %5026 }
 0x8dd   : > { %v5044_v36 = vmul.f32 %v10129_v20, %v5027_v33  ;;  %v5035_v4 = vmul.f32 %v10127_v62, %v5027_v33  ;;  %v5216_v25 = vmul.f32 %v10135_v5, %v5027_v33  ;;  %v5308_v61 = vmul.f32 %v10139_v55, %v5027_v33  ;;  %v5883_v20 = vld [vmem:[%s16105_s16 + $0x88] sm:$0xff]  ;;  %v5885_v62 = vld [vmem:[%s16105_s16 + $0x98] sm:$0xff]  ;;  %v5888_v5 = vld [vmem:[%s16105_s16 + $0xb0] sm:$0xff] }
 0x8de   : > { %v5400_v34 = vmul.f32 %v10143_v26, %v5027_v33  ;;  %v5492_v47 = vmul.f32 %v10147_v13, %v5027_v33  ;;  %v5584_v53 = vmul.f32 %v10151_v46, %v5027_v33  ;;  %v5676_v1 = vmul.f32 %v10155_v60, %v5027_v33  ;;  %v5893_v55 = vld [vmem:[%s16105_s16 + $0xd8] sm:$0xff] }
 0x8df   : > { %11700 = vmatprep.subr.mxu0 %v5044_v36  ;;  %v5768_v8 = vmul.f32 %v10159_v43, %v5027_v33  ;;  %v5884_v33 = vld [vmem:[%s16105_s16 + $0x90] sm:$0xff]  ;;  %v5897_v26 = vld [vmem:[%s16105_s16 + $0xf8] sm:$0xff] }
 0x8e0   : > { %11701 = vmatpush3.msra.mxu0 %v5044_v36  ;;  %v5886_v36 = vld [vmem:[%s16105_s16 + $0xa0] sm:$0xff]  ;;  %v5901_v13 = vld [vmem:[%s16105_s16 + $0x118] sm:$0xff] }
 0x8e1   : > { %11703 = vmatmul.mubr.msk.f32.vlgmr.msra.gmra.mrb[60].mxu0 %vm5045_vm6, %v5006_v17  ;;  %11705 = vmatprep.subr.mxu0 %v5035_v4  ;;  %v5887_v17 = vld [vmem:[%s16105_s16 + $0xa8] sm:$0xff] }
 0x8e2   : > { %11706 = vmatpush3.msra.mxu0 %v5035_v4  ;;  %11707 = vmatprep.mubr.msk.f32.mxu0 %vm5045_vm6, %v5003_v24  ;;  %v5889_v4 = vld [vmem:[%s16105_s16 + $0xb8] sm:$0xff]  ;;  %v5890_v24 = vld [vmem:[%s16105_s16 + $0xc0] sm:$0xff] }
 0x8e3   : > { %11710 = vmatprep.subr.mxu0 %v5216_v25 }
 0x8e9   : > { %11708 = vmatmul.mubr.msk.f32.vlgmr.msra.gmra.mrb[60].mxu0 %vm5045_vm6, %v5004_v30  ;;  %v5892_v30 = vld [vmem:[%s16105_s16 + $0xd0] sm:$0xff] }
 0x8ea   : > { %11711 = vmatpush3.msra.mxu0 %v5216_v25  ;;  %11712 = vmatprep.mubr.msk.f32.mxu0 %vm5045_vm6, %v5007_v42  ;;  %v5891_v25 = vld [vmem:[%s16105_s16 + $0xc8] sm:$0xff]  ;;  %v5894_v42 = vld [vmem:[%s16105_s16 + $0xe0] sm:$0xff] }
 0x8eb   : > { %11715 = vmatprep.subr.mxu0 %v5308_v61 }
 0x8f1   : > { %11713 = vmatmul.mubr.msk.f32.vlgmr.msra.gmra.mrb[60].mxu0 %vm5045_vm6, %v5008_v27  ;;  %v5896_v27 = vld [vmem:[%s16105_s16 + $0xf0] sm:$0xff] }
 0x8f2   : > { %11716 = vmatpush3.msra.mxu0 %v5308_v61  ;;  %11717 = vmatprep.mubr.msk.f32.mxu0 %vm5045_vm6, %v5009_v31  ;;  %v5895_v61 = vld [vmem:[%s16105_s16 + $0xe8] sm:$0xff]  ;;  %v5898_v31 = vld [vmem:[%s16105_s16 + $0x100] sm:$0xff] }
 0x8f3   : > { %11720 = vmatprep.subr.mxu0 %v5400_v34 }
 0x8f9   : > { %11718 = vmatmul.mubr.msk.f32.vlgmr.msra.gmra.mrb[60].mxu0 %vm5045_vm6, %v5010_v51  ;;  %v5900_v51 = vld [vmem:[%s16105_s16 + $0x110] sm:$0xff] }
 0x8fa   : > { %11721 = vmatpush3.msra.mxu0 %v5400_v34  ;;  %11722 = vmatprep.mubr.msk.f32.mxu0 %vm5045_vm6, %v5011_v21  ;;  %v5899_v34 = vld [vmem:[%s16105_s16 + $0x108] sm:$0xff]  ;;  %v10198_v21 = vld [vmem:[%s16106_s17 + $0x4] sm:$0xf] }
 0x8fb   : > { %11725 = vmatprep.subr.mxu0 %v5492_v47 }
 0x901   : > { %11723 = vmatmul.mubr.msk.f32.vlgmr.msra.gmra.mrb[60].mxu0 %vm5045_vm6, %v5012_v56 }
 0x902   : > { %11726 = vmatpush3.msra.mxu0 %v5492_v47  ;;  %11727 = vmatprep.mubr.msk.f32.mxu0 %vm5045_vm6, %v5013_v22  ;;  %v6259_v47 = vld [vmem:[%s16106_s17] sm:$0xf] }
 0x903   : > { %11730 = vmatprep.subr.mxu0 %v5584_v53 }
 0x909   : > { %11728 = vmatmul.mubr.msk.f32.vlgmr.msra.gmra.mrb[60].mxu0 %vm5045_vm6, %v5014_v35 }
 0x90a   : > { %11731 = vmatpush3.msra.mxu0 %v5584_v53  ;;  %11732 = vmatprep.mubr.msk.f32.mxu0 %vm5045_vm6, %v5015_v38  ;;  %v10209_v38 = vld [vmem:[%s16106_s17 + $0x8] sm:$0xf] }
 0x90b   : > { %11735 = vmatprep.subr.mxu0 %v5676_v1 }
 0x911   : > { %11733 = vmatmul.mubr.msk.f32.vlgmr.msra.gmra.mrb[60].mxu0 %vm5045_vm6, %v5016_v40 }
 0x912   : > { %11736 = vmatpush3.msra.mxu0 %v5676_v1  ;;  %11737 = vmatprep.mubr.msk.f32.mxu0 %vm5045_vm6, %v5017_v49 }
 0x913   : > { %11740 = vmatprep.subr.mxu0 %v5768_v8 }
 0x919   : > { %11738 = vmatmul.mubr.msk.f32.vlgmr.msra.gmra.mrb[60].mxu0 %vm5045_vm6, %v5018_v50 }
 0x91a   : > { %11741 = vmatpush3.msra.mxu0 %v5768_v8  ;;  %11742 = vmatprep.mubr.msk.f32.mxu0 %vm5045_vm6, %v5019_v44  ;;  %v10215_v8 = vld [vmem:[%s16106_s17 + $0xc] sm:$0xf] }
 0x91b   : > { %11803 = vmatprep.subr.msk.mxu0 %vm917_vm0, %v10198_v21 }
 0x921   : > { %11743 = vmatmul.mubr.msk.f32.vlgmr.msra.gmra.mrb[60].mxu0 %vm5045_vm6, %v5020_v10 }
 0x922   : > { %11804 = vmatpush3.msk.msra.mxu0 %vm917_vm0, %v10198_v21 }
 0x923   : > { %11811 = vmatprep.subr.msk.mxu0 %vm917_vm0, %v6259_v47 }
 0x9f4   : > { %v11744_v9 = vpop.f32.mrb[60].mxu0 }
 0x9f5   : > { %v5863_v52 = vadd.f32 %v11744_v9, %v5860_v48  ;;  %v5841_v54 = vpop.f32.mrb[61].mxu0 }
 0x9f6   : > { %v5862_v57 = vadd.f32 %v5855_v58, %v5841_v54  ;;  %v10221_v58 = vld [vmem:[%s16106_s17 + $0x10] sm:$0xf] }
 0x9f7   : > { %v5865_v59 = vmax.f32 %v5863_v52, 0.0 }
 0x9f8   : > { %v5864_v2 = vmax.f32 %v5862_v57, 0.0  ;;  %v10227_v57 = vld [vmem:[%s16106_s17 + $0x14] sm:$0xf] }
 0x9fa   : > { %v12537_v19 = vpack.c.bf16 %v5865_v59, %v5864_v2 }
 0x9fc   : > { %12538 = vmatprep.subr.bf16.mxu1 %v12537_v19 }
 0x9fd   : > { %12540 = vmatpush3.bf16.msra.mxu1 %v12537_v19 }
 0xa00   : > { %11750 = vmatmul.mubr.msk.f32.vlgmr.msra.gmra.mrb[162].mxu1 %vm3958_vm4, %v5867_v3 }
 0xa01   : > { %11752 = vmatprep.mubr.msk.f32.mxu1 %vm3958_vm4, %v5868_v18  ;;  %v10233_v18 = vld [vmem:[%s16106_s17 + $0x18] sm:$0xf] }
 0xa04   : > { %11753 = vmatmul.mubr.msk.f32.gmra.mrb[164].mxu1 %vm3958_vm4, %v5869_v7 }
 0xa05   : > { %11755 = vmatprep.mubr.msk.f32.mxu1 %vm3958_vm4, %v5870_v37 }
 0xa08   : > { %11756 = vmatmul.mubr.msk.f32.gmra.mrb[166].mxu1 %vm3958_vm4, %v5871_v6 }
 0xa09   : > { %11758 = vmatprep.mubr.msk.f32.mxu1 %vm3958_vm4, %v5872_v63 }
 0xa0c   : > { %11759 = vmatmul.mubr.msk.f32.gmra.mrb[168].mxu1 %vm3958_vm4, %v5873_v28  ;;  %v10239_v28 = vld [vmem:[%s16106_s17 + $0x1c] sm:$0xf] }
 0xa0d   : > { %11761 = vmatprep.mubr.msk.f32.mxu1 %vm3958_vm4, %v5874_v23 }
 0xa10   : > { %11762 = vmatmul.mubr.msk.f32.gmra.mrb[170].mxu1 %vm3958_vm4, %v5875_v39 }
 0xa11   : > { %11764 = vmatprep.mubr.msk.f32.mxu1 %vm3958_vm4, %v5876_v29 }
 0xa14   : > { %11765 = vmatmul.mubr.msk.f32.gmra.mrb[172].mxu1 %vm3958_vm4, %v5877_v41 }
 0xa15   : > { %11767 = vmatprep.mubr.msk.f32.mxu1 %vm3958_vm4, %v5878_v45  ;;  %v10245_v45 = vld [vmem:[%s16106_s17 + $0x20] sm:$0xf] }
 0xa18   : > { %11768 = vmatmul.mubr.msk.f32.gmra.mrb[174].mxu1 %vm3958_vm4, %v5879_v11 }
 0xa19   : > { %11770 = vmatprep.mubr.msk.f32.mxu1 %vm3958_vm4, %v5880_v14 }
 0xa1c   : > { %11771 = vmatmul.mubr.msk.f32.gmra.mrb[176].mxu1 %vm3958_vm4, %v5881_v15 }
 0xa1d   : > { %11773 = vmatprep.mubr.msk.f32.mxu1 %vm3958_vm4, %v5882_v16 }
 0xa20   : > { %11774 = vmatmul.mubr.msk.f32.gmra.mrb[178].mxu1 %vm3958_vm4, %v5883_v20 }
 0xa21   : > { %11776 = vmatprep.mubr.msk.f32.mxu1 %vm3958_vm4, %v5884_v33 }
 0xa24   : > { %11777 = vmatmul.mubr.msk.f32.gmra.mrb[180].mxu1 %vm3958_vm4, %v5885_v62  ;;  %v7232_v62 = vld [vmem:[%s16108_s19] sm:$0xff] }
 0xa25   : > { %11779 = vmatprep.mubr.msk.f32.mxu1 %vm3958_vm4, %v5886_v36  ;;  %v7212_v36 = vpop.permute.xlu1 %7211 }
 0xa28   : > { %11780 = vmatmul.mubr.msk.f32.gmra.mrb[182].mxu1 %vm3958_vm4, %v5887_v17  ;;  %v7207_v17 = vpop.permute.xlu0 %7206 }
 0xa29   : > { %11782 = vmatprep.mubr.msk.f32.mxu1 %vm3958_vm4, %v5888_v5 }
 0xa2c   : > { %11783 = vmatmul.mubr.msk.f32.gmra.mrb[184].mxu1 %vm3958_vm4, %v5889_v4 }
 0xa2d   : > { %11785 = vmatprep.mubr.msk.f32.mxu1 %vm3958_vm4, %v5890_v24 }
 0xa30   : > { %11786 = vmatmul.mubr.msk.f32.gmra.mrb[186].mxu1 %vm3958_vm4, %v5891_v25 }
 0xa31   : > { %11788 = vmatprep.mubr.msk.f32.mxu1 %vm3958_vm4, %v5892_v30 }
 0xa34   : > { %11789 = vmatmul.mubr.msk.f32.gmra.mrb[188].mxu1 %vm3958_vm4, %v5893_v55  ;;  %v7222_v55 = vpop.permute.xlu1 %7221 }
 0xa35   : > { %11791 = vmatprep.mubr.msk.f32.mxu1 %vm3958_vm4, %v5894_v42 }
 0xa38   : > { %11792 = vmatmul.mubr.msk.f32.gmra.mrb[190].mxu1 %vm3958_vm4, %v5895_v61 }
 0xa39   : > { %11794 = vmatprep.mubr.msk.f32.mxu1 %vm3958_vm4, %v5896_v27  ;;  %v7217_v27 = vpop.permute.xlu0 %7216 }
 0xa3c   : > { %11795 = vmatmul.mubr.msk.f32.gmra.mrb[192].mxu1 %vm3958_vm4, %v5897_v26 }
 0xa3d   : > { %11797 = vmatprep.mubr.msk.f32.mxu1 %vm3958_vm4, %v5898_v31 }
 0xa40   : > { %11798 = vmatmul.mubr.msk.f32.gmra.mrb[194].mxu1 %vm3958_vm4, %v5899_v34 }
 0xa41   : > { %11800 = vmatprep.mubr.msk.f32.mxu1 %vm3958_vm4, %v5900_v51 }
 0xa44   : > { %11801 = vmatmul.mubr.msk.f32.gmra.mrb[196].mxu1 %vm3958_vm4, %v5901_v13 }
 0xa45   : > { %11883 = vmatprep.mubr.msk.f32.mxu1 %vm2360_vm2, %v7232_v62 }
 0xad3   : > { %v11751_v56 = vpop.f32.mrb[162].mxu1 }
 0xad4   : > { %v6080_v46 = vpop.f32.mrb[163].mxu1 }
 0xad7   : > { %v11754_v22 = vpop.f32.mrb[164].mxu1 }
 0xad8   : > { %v6090_v53 = vpop.f32.mrb[165].mxu1 }
 0xadb   : > { %v11757_v35 = vpop.f32.mrb[166].mxu1 }
 0xadc   : > { %v6100_v60 = vpop.f32.mrb[167].mxu1 }
 0xadd   : > { %11805 = vmatprep.mubr.msk.f32.mxu0 %vm808_vm1, %v6100_v60  ;;  %v7238_v60 = vld [vmem:[%s16108_s19 + $0x30] sm:$0xff] }
 0xade   : > { %11806 = vmatmul.mubr.msk.f32.vlgmr.msra.gmra.mrb[62].mxu0 %vm808_vm1, %v11757_v35  ;;  %v7237_v35 = vld [vmem:[%s16108_s19 + $0x28] sm:$0xff] }
 0xadf   : > { %v11760_v1 = vpop.f32.mrb[168].mxu1  ;;  %11812 = vmatpush3.msk.msra.mxu0 %vm917_vm0, %v6259_v47 }
 0xae0   : > { %v6110_v40 = vpop.f32.mrb[169].mxu1  ;;  %11819 = vmatprep.subr.msk.mxu0 %vm917_vm0, %v10209_v38 }
 0xae1   : > { %11808 = vmatprep.mubr.msk.f32.mxu0 %vm808_vm1, %v6110_v40  ;;  %v7241_v40 = vld [vmem:[%s16108_s19 + $0x48] sm:$0xff] }
 0xae2   : > { %11809 = vmatmul.mubr.msk.f32.gmra.mrb[64].mxu0 %vm808_vm1, %v11760_v1  ;;  %v7240_v1 = vld [vmem:[%s16108_s19 + $0x40] sm:$0xff] }
 0xae3   : > { %11813 = vmatprep.mubr.msk.f32.mxu0 %vm808_vm1, %v6080_v46  ;;  %v11763_v43 = vpop.f32.mrb[170].mxu1  ;;  %v7234_v46 = vld [vmem:[%s16108_s19 + $0x10] sm:$0xff] }
 0xae4   : > { %v6120_v49 = vpop.f32.mrb[171].mxu1 }
 0xae6   : > { %11814 = vmatmul.mubr.msk.f32.vlgmr.msra.gmra.mrb[62].mxu0 %vm808_vm1, %v11751_v56  ;;  %v7233_v56 = vld [vmem:[%s16108_s19 + $0x8] sm:$0xff] }
 0xae7   : > { %11816 = vmatprep.mubr.msk.f32.mxu0 %vm808_vm1, %v6090_v53  ;;  %11820 = vmatpush3.msk.msra.mxu0 %vm917_vm0, %v10209_v38  ;;  %v11766_v50 = vpop.f32.mrb[172].mxu1  ;;  %v7236_v53 = vld [vmem:[%s16108_s19 + $0x20] sm:$0xff]  ;;  %v7239_v38 = vld [vmem:[%s16108_s19 + $0x38] sm:$0xff] }
 0xae8   : > { %v6130_v44 = vpop.f32.mrb[173].mxu1  ;;  %11827 = vmatprep.subr.msk.mxu0 %vm917_vm0, %v10215_v8 }
 0xaea   : > { %11817 = vmatmul.mubr.msk.f32.gmra.mrb[64].mxu0 %vm808_vm1, %v11754_v22  ;;  %v7235_v22 = vld [vmem:[%s16108_s19 + $0x18] sm:$0xff] }
 0xaeb   : > { %11821 = vmatprep.mubr.msk.f32.mxu0 %vm808_vm1, %v6120_v49  ;;  %v11769_v10 = vpop.f32.mrb[174].mxu1  ;;  %v7243_v49 = vld [vmem:[%s16108_s19 + $0x58] sm:$0xff] }
 0xaec   : > { %v6140_v12 = vpop.f32.mrb[175].mxu1 }
 0xaee   : > { %11822 = vmatmul.mubr.msk.f32.vlgmr.msra.gmra.mrb[62].mxu0 %vm808_vm1, %v11763_v43  ;;  %v7242_v43 = vld [vmem:[%s16108_s19 + $0x50] sm:$0xff] }
 0xaef   : > { %11824 = vmatprep.mubr.msk.f32.mxu0 %vm808_vm1, %v6130_v44  ;;  %11828 = vmatpush3.msk.msra.mxu0 %vm917_vm0, %v10215_v8  ;;  %v11772_v48 = vpop.f32.mrb[176].mxu1  ;;  %v7244_v8 = vld [vmem:[%s16108_s19 + $0x60] sm:$0xff]  ;;  %v7246_v44 = vld [vmem:[%s16108_s19 + $0x70] sm:$0xff] }
 0xaf0   : > { %v6150_v9 = vpop.f32.mrb[177].mxu1  ;;  %11835 = vmatprep.subr.msk.mxu0 %vm917_vm0, %v10221_v58 }
 0xaf2   : > { %11825 = vmatmul.mubr.msk.f32.gmra.mrb[64].mxu0 %vm808_vm1, %v11766_v50  ;;  %v7245_v50 = vld [vmem:[%s16108_s19 + $0x68] sm:$0xff] }
 0xaf3   : > { %11829 = vmatprep.mubr.msk.f32.mxu0 %vm808_vm1, %v6140_v12  ;;  %v11775_v52 = vpop.f32.mrb[178].mxu1  ;;  %v7248_v12 = vld [vmem:[%s16108_s19 + $0x80] sm:$0xff] }
 0xaf4   : > { %v6160_v54 = vpop.f32.mrb[179].mxu1 }
 0xaf6   : > { %11830 = vmatmul.mubr.msk.f32.vlgmr.msra.gmra.mrb[62].mxu0 %vm808_vm1, %v11769_v10  ;;  %v7247_v10 = vld [vmem:[%s16108_s19 + $0x78] sm:$0xff] }
 0xaf7   : > { %11832 = vmatprep.mubr.msk.f32.mxu0 %vm808_vm1, %v6150_v9  ;;  %11836 = vmatpush3.msk.msra.mxu0 %vm917_vm0, %v10221_v58  ;;  %v11778_v59 = vpop.f32.mrb[180].mxu1  ;;  %v7249_v58 = vld [vmem:[%s16108_s19 + $0x88] sm:$0xff]  ;;  %v7251_v9 = vld [vmem:[%s16108_s19 + $0x98] sm:$0xff] }
 0xaf8   : > { %v6170_v2 = vpop.f32.mrb[181].mxu1  ;;  %11843 = vmatprep.subr.msk.mxu0 %vm917_vm0, %v10227_v57 }
 0xafa   : > { %11833 = vmatmul.mubr.msk.f32.gmra.mrb[64].mxu0 %vm808_vm1, %v11772_v48  ;;  %v7250_v48 = vld [vmem:[%s16108_s19 + $0x90] sm:$0xff] }
 0xafb   : > { %11837 = vmatprep.mubr.msk.f32.mxu0 %vm808_vm1, %v6160_v54  ;;  %v11781_v19 = vpop.f32.mrb[182].mxu1  ;;  %v7253_v54 = vld [vmem:[%s16108_s19 + $0xa8] sm:$0xff] }
 0xafc   : > { %v6180_v3 = vpop.f32.mrb[183].mxu1 }
 0xafe   : > { %11838 = vmatmul.mubr.msk.f32.vlgmr.msra.gmra.mrb[62].mxu0 %vm808_vm1, %v11775_v52  ;;  %v7252_v52 = vld [vmem:[%s16108_s19 + $0xa0] sm:$0xff] }
 0xaff   : > { %11840 = vmatprep.mubr.msk.f32.mxu0 %vm808_vm1, %v6170_v2  ;;  %11844 = vmatpush3.msk.msra.mxu0 %vm917_vm0, %v10227_v57  ;;  %v11784_v7 = vpop.f32.mrb[184].mxu1  ;;  %v7254_v57 = vld [vmem:[%s16108_s19 + $0xb0] sm:$0xff]  ;;  %v7256_v2 = vld [vmem:[%s16108_s19 + $0xc0] sm:$0xff] }
 0xb00   : > { %v6190_v37 = vpop.f32.mrb[185].mxu1  ;;  %11851 = vmatprep.subr.msk.mxu0 %vm917_vm0, %v10233_v18 }
 0xb02   : > { %11841 = vmatmul.mubr.msk.f32.gmra.mrb[64].mxu0 %vm808_vm1, %v11778_v59  ;;  %v7255_v59 = vld [vmem:[%s16108_s19 + $0xb8] sm:$0xff] }
 0xb03   : > { %11845 = vmatprep.mubr.msk.f32.mxu0 %vm808_vm1, %v6180_v3  ;;  %v11787_v6 = vpop.f32.mrb[186].mxu1  ;;  %v7258_v3 = vld [vmem:[%s16108_s19 + $0xd0] sm:$0xff] }
 0xb04   : > { %v6200_v63 = vpop.f32.mrb[187].mxu1 }
 0xb06   : > { %11846 = vmatmul.mubr.msk.f32.vlgmr.msra.gmra.mrb[62].mxu0 %vm808_vm1, %v11781_v19  ;;  %v7257_v19 = vld [vmem:[%s16108_s19 + $0xc8] sm:$0xff] }
 0xb07   : > { %11848 = vmatprep.mubr.msk.f32.mxu0 %vm808_vm1, %v6190_v37  ;;  %11852 = vmatpush3.msk.msra.mxu0 %vm917_vm0, %v10233_v18  ;;  %v11790_v23 = vpop.f32.mrb[188].mxu1  ;;  %v7259_v18 = vld [vmem:[%s16108_s19 + $0xd8] sm:$0xff]  ;;  %v7261_v37 = vld [vmem:[%s16108_s19 + $0xe8] sm:$0xff] }
 0xb08   : > { %v6210_v39 = vpop.f32.mrb[189].mxu1  ;;  %11859 = vmatprep.subr.msk.mxu0 %vm917_vm0, %v10239_v28 }
 0xb0a   : > { %11849 = vmatmul.mubr.msk.f32.gmra.mrb[64].mxu0 %vm808_vm1, %v11784_v7  ;;  %v7260_v7 = vld [vmem:[%s16108_s19 + $0xe0] sm:$0xff] }
 0xb0b   : > { %11853 = vmatprep.mubr.msk.f32.mxu0 %vm808_vm1, %v6200_v63  ;;  %v11793_v29 = vpop.f32.mrb[190].mxu1  ;;  %v7263_v63 = vld [vmem:[%s16108_s19 + $0xf8] sm:$0xff] }
 0xb0c   : > { %v6220_v41 = vpop.f32.mrb[191].mxu1 }
 0xb0e   : > { %11854 = vmatmul.mubr.msk.f32.vlgmr.msra.gmra.mrb[62].mxu0 %vm808_vm1, %v11787_v6  ;;  %v7262_v6 = vld [vmem:[%s16108_s19 + $0xf0] sm:$0xff] }
 0xb0f   : > { %11856 = vmatprep.mubr.msk.f32.mxu0 %vm808_vm1, %v6210_v39  ;;  %11860 = vmatpush3.msk.msra.mxu0 %vm917_vm0, %v10239_v28  ;;  %v11796_v11 = vpop.f32.mrb[192].mxu1  ;;  %v7264_v28 = vld [vmem:[%s16108_s19 + $0x100] sm:$0xff]  ;;  %v7266_v39 = vld [vmem:[%s16108_s19 + $0x110] sm:$0xff] }
 0xb10   : > { %v6230_v14 = vpop.f32.mrb[193].mxu1  ;;  %11867 = vmatprep.subr.msk.mxu0 %vm917_vm0, %v10245_v45 }
 0xb12   : > { %11857 = vmatmul.mubr.msk.f32.gmra.mrb[64].mxu0 %vm808_vm1, %v11790_v23  ;;  %v7265_v23 = vld [vmem:[%s16108_s19 + $0x108] sm:$0xff] }
 0xb13   : > { %11861 = vmatprep.mubr.msk.f32.mxu0 %vm808_vm1, %v6220_v41  ;;  %v11799_v15 = vpop.f32.mrb[194].mxu1  ;;  %v10287_v41 = vld [vmem:[%s16109_s20 + $0x10] sm:$0xff] }
 0xb14   : > { %v6240_v16 = vpop.f32.mrb[195].mxu1 }
 0xb16   : > { %11862 = vmatmul.mubr.msk.f32.vlgmr.msra.gmra.mrb[62].mxu0 %vm808_vm1, %v11793_v29  ;;  %v7267_v29 = vld [vmem:[%s16108_s19 + $0x118] sm:$0xff] }
 0xb17   : > { %11864 = vmatprep.mubr.msk.f32.mxu0 %vm808_vm1, %v6230_v14  ;;  %11868 = vmatpush3.msk.msra.mxu0 %vm917_vm0, %v10245_v45  ;;  %v11802_v20 = vpop.f32.mrb[196].mxu1  ;;  %v10288_v45 = vld [vmem:[%s16109_s20 + $0x18] sm:$0xff]  ;;  %v7625_v14 = vld [vmem:[%s16109_s20] sm:$0xff] }
 0xb18   : > { %v6250_v33 = vpop.f32.mrb[197].mxu1 }
 0xb1a   : > { %11865 = vmatmul.mubr.msk.f32.gmra.mrb[64].mxu0 %vm808_vm1, %v11796_v11  ;;  %v12549_v11 = vpack.c.bf16 %v10288_v45, %v10287_v41  ;;  %v10345_v45 = vld [vmem:[%s16112_s23 + $0x88] sm:$0xff] }
 0xb1b   : > { %11869 = vmatprep.mubr.msk.f32.mxu0 %vm808_vm1, %v6240_v16 }
 0xb1c   : > { %12550 = vmatprep.subr.bf16.mxu0 %v12549_v11 }
 0xb1e   : > { %11870 = vmatmul.mubr.msk.f32.vlgmr.msra.gmra.mrb[62].mxu0 %vm808_vm1, %v11799_v15  ;;  %v7626_v15 = vld [vmem:[%s16109_s20 + $0x8] sm:$0xff] }
 0xb1f   : > { %11872 = vmatprep.mubr.msk.f32.mxu0 %vm808_vm1, %v6250_v33  ;;  %12552 = vmatpush3.bf16.msra.mxu0 %v12549_v11  ;;  %v12553_v16 = vpack.c.bf16 %v7626_v15, %v7625_v14  ;;  %v10347_v11 = vld [vmem:[%s16112_s23 + $0x98] sm:$0xff]  ;;  %v10344_v14 = vld [vmem:[%s16112_s23 + $0x80] sm:$0xff] }
 0xb20   : > { %v12591_v15 = vpack.c.bf16 %v10347_v11, %v10345_v45 }
 0xb21   : > { %12554 = vmatprep.subr.bf16.mxu0 %v12553_v16 }
 0xb22   : > { %11873 = vmatmul.mubr.msk.f32.gmra.mrb[64].mxu0 %vm808_vm1, %v11802_v20 }
 0xbf1   : > { %v11871_v5 = vpop.f32.mrb[62].mxu0 }
 0xbf2   : > { %v7225_v4 = vadd.f32 %v11871_v5, %v7212_v36  ;;  %v7181_v24 = vpop.f32.mrb[63].mxu0  ;;  %v10298_v5 = vld [vmem:[%s16109_s20 + $0x28] sm:$0xff] }
 0xbf3   : > { %v7224_v25 = vadd.f32 %v7207_v17, %v7181_v24  ;;  %v10297_v17 = vld [vmem:[%s16109_s20 + $0x20] sm:$0xff] }
 0xbf4   : > { %v7229_v30 = vmax.f32 %v7225_v4, 0.0 }
 0xbf5   : > { %v7228_v42 = vmax.f32 %v7224_v25, 0.0  ;;  %v11874_v61 = vpop.f32.mrb[64].mxu0  ;;  %v12557_v25 = vpack.c.bf16 %v10298_v5, %v10297_v17  ;;  %v10348_v17 = vld [vmem:[%s16112_s23 + $0xa0] sm:$0xff]  ;;  %v10350_v5 = vld [vmem:[%s16112_s23 + $0xb0] sm:$0xff] }
 0xbf6   : > { %v7227_v26 = vadd.f32 %v11874_v61, %v7222_v55  ;;  %v7191_v31 = vpop.f32.mrb[65].mxu0  ;;  %v10304_v61 = vld [vmem:[%s16109_s20 + $0x38] sm:$0xff] }
 0xbf7   : > { %v12541_v34 = vpack.c.bf16 %v7229_v30, %v7228_v42  ;;  %v7226_v51 = vadd.f32 %v7217_v27, %v7191_v31  ;;  %v10303_v42 = vld [vmem:[%s16109_s20 + $0x30] sm:$0xff] }
 0xbf8   : > { %v7231_v13 = vmax.f32 %v7227_v26, 0.0  ;;  %v12561_v31 = vpack.c.bf16 %v10304_v61, %v10303_v42  ;;  %v10354_v42 = vld [vmem:[%s16112_s23 + $0xd0] sm:$0xff]  ;;  %v10357_v61 = vld [vmem:[%s16112_s23 + $0xe8] sm:$0xff] }
 0xbf9   : > { %v7230_v21 = vmax.f32 %v7226_v51, 0.0  ;;  %12542 = vmatprep.subr.bf16.mxu1 %v12541_v34 }
 0xbfa   : > { %12544 = vmatpush3.bf16.msra.mxu1 %v12541_v34 }
 0xbfb   : > { %v12545_v47 = vpack.c.bf16 %v7231_v13, %v7230_v21  ;;  %v10309_v13 = vld [vmem:[%s16109_s20 + $0x40] sm:$0xff]  ;;  %v10310_v21 = vld [vmem:[%s16109_s20 + $0x48] sm:$0xff] }
 0xbfd   : > { %12546 = vmatprep.subr.bf16.mxu1 %v12545_v47 }
 0xbfe   : > { %12548 = vmatpush3.bf16.msra.mxu1 %v12545_v47 }
 0xbff   : > { %12585 = vmatprep.subr.bf16.mxu1 %v12914_v32 }
 0xc01   : > { %11884 = vmatmul.mubr.msk.f32.vlgmr.msra.gmra.mrb[198].mxu1 %vm2360_vm2, %v7233_v56 }
 0xc02   : > { %11886 = vmatprep.mubr.msk.f32.mxu1 %vm2360_vm2, %v7234_v46  ;;  %v12565_v46 = vpack.c.bf16 %v10310_v21, %v10309_v13  ;;  %v8560_v21 = vpop.permute.xlu1 %8559 }
 0xc05   : > { %11887 = vmatmul.mubr.msk.f32.gmra.mrb[200].mxu1 %vm2360_vm2, %v7235_v22 }
 0xc06   : > { %11889 = vmatprep.mubr.msk.f32.mxu1 %vm2360_vm2, %v7236_v53 }
 0xc09   : > { %11890 = vmatmul.mubr.msk.f32.gmra.mrb[202].mxu1 %vm2360_vm2, %v7237_v35  ;;  %v10315_v35 = vld [vmem:[%s16109_s20 + $0x50] sm:$0xff] }
 0xc0a   : > { %11892 = vmatprep.mubr.msk.f32.mxu1 %vm2360_vm2, %v7238_v60  ;;  %v10316_v60 = vld [vmem:[%s16109_s20 + $0x58] sm:$0xff] }
 0xc0d   : > { %11893 = vmatmul.mubr.msk.f32.gmra.mrb[204].mxu1 %vm2360_vm2, %v7239_v38 }
 0xc0e   : > { %11895 = vmatprep.mubr.msk.f32.mxu1 %vm2360_vm2, %v7240_v1 }
 0xc11   : > { %11896 = vmatmul.mubr.msk.f32.gmra.mrb[206].mxu1 %vm2360_vm2, %v7241_v40  ;;  %v12569_v40 = vpack.c.bf16 %v10316_v60, %v10315_v35  ;;  %v8570_v60 = vpop.permute.xlu1 %8569 }
 0xc12   : > { %11898 = vmatprep.mubr.msk.f32.mxu1 %vm2360_vm2, %v7242_v43 }
 0xc15   : > { %11899 = vmatmul.mubr.msk.f32.gmra.mrb[208].mxu1 %vm2360_vm2, %v7243_v49 }
 0xc16   : > { %11901 = vmatprep.mubr.msk.f32.mxu1 %vm2360_vm2, %v7244_v8  ;;  %v10321_v8 = vld [vmem:[%s16109_s20 + $0x60] sm:$0xff] }
 0xc19   : > { %11902 = vmatmul.mubr.msk.f32.gmra.mrb[210].mxu1 %vm2360_vm2, %v7245_v50  ;;  %v10322_v50 = vld [vmem:[%s16109_s20 + $0x68] sm:$0xff] }
 0xc1a   : > { %11904 = vmatprep.mubr.msk.f32.mxu1 %vm2360_vm2, %v7246_v44 }
 0xc1d   : > { %11905 = vmatmul.mubr.msk.f32.gmra.mrb[212].mxu1 %vm2360_vm2, %v7247_v10 }
 0xc1e   : > { %11907 = vmatprep.mubr.msk.f32.mxu1 %vm2360_vm2, %v7248_v12  ;;  %v12573_v12 = vpack.c.bf16 %v10322_v50, %v10321_v8 }
 0xc21   : > { %11908 = vmatmul.mubr.msk.f32.gmra.mrb[214].mxu1 %vm2360_vm2, %v7249_v58 }
 0xc22   : > { %11910 = vmatprep.mubr.msk.f32.mxu1 %vm2360_vm2, %v7250_v48 }
 0xc25   : > { %11911 = vmatmul.mubr.msk.f32.gmra.mrb[216].mxu1 %vm2360_vm2, %v7251_v9  ;;  %v10327_v9 = vld [vmem:[%s16109_s20 + $0x70] sm:$0xff] }
 0xc26   : > { %11913 = vmatprep.mubr.msk.f32.mxu1 %vm2360_vm2, %v7252_v52  ;;  %v10328_v52 = vld [vmem:[%s16109_s20 + $0x78] sm:$0xff] }
 0xc29   : > { %11914 = vmatmul.mubr.msk.f32.gmra.mrb[218].mxu1 %vm2360_vm2, %v7253_v54 }
 0xc2a   : > { %11916 = vmatprep.mubr.msk.f32.mxu1 %vm2360_vm2, %v7254_v57 }
 0xc2d   : > { %11917 = vmatmul.mubr.msk.f32.gmra.mrb[220].mxu1 %vm2360_vm2, %v7255_v59  ;;  %v12577_v59 = vpack.c.bf16 %v10328_v52, %v10327_v9  ;;  %v8583_v9 = vld [vmem:[%s16111_s22 + $0x18] sm:$0xff]  ;;  %v8584_v52 = vld [vmem:[%s16111_s22 + $0x20] sm:$0xf] }
 0xc2e   : > { %11919 = vmatprep.mubr.msk.f32.mxu1 %vm2360_vm2, %v7256_v2 }
 0xc31   : > { %11920 = vmatmul.mubr.msk.f32.gmra.mrb[222].mxu1 %vm2360_vm2, %v7257_v19 }
 0xc32   : > { %11922 = vmatprep.mubr.msk.f32.mxu1 %vm2360_vm2, %v7258_v3  ;;  %v10333_v3 = vld [vmem:[%s16109_s20 + $0x80] sm:$0xff] }
 0xc35   : > { %11923 = vmatmul.mubr.msk.f32.gmra.mrb[224].mxu1 %vm2360_vm2, %v7259_v18  ;;  %v10334_v18 = vld [vmem:[%s16109_s20 + $0x88] sm:$0xff] }
 0xc36   : > { %11925 = vmatprep.mubr.msk.f32.mxu1 %vm2360_vm2, %v7260_v7 }
 0xc39   : > { %11926 = vmatmul.mubr.msk.f32.gmra.mrb[226].mxu1 %vm2360_vm2, %v7261_v37 }
 0xc3a   : > { %11928 = vmatprep.mubr.msk.f32.mxu1 %vm2360_vm2, %v7262_v6  ;;  %v12581_v6 = vpack.c.bf16 %v10334_v18, %v10333_v3  ;;  %v8696_v3 = vld [vmem:[%s16112_s23 + $0x28] sm:$0xff]  ;;  %v8698_v18 = vld [vmem:[%s16112_s23 + $0x38] sm:$0xff] }
 0xc3d   : > { %11929 = vmatmul.mubr.msk.f32.gmra.mrb[228].mxu1 %vm2360_vm2, %v7263_v63 }
 0xc3e   : > { %11931 = vmatprep.mubr.msk.f32.mxu1 %vm2360_vm2, %v7264_v28 }
 0xc41   : > { %11932 = vmatmul.mubr.msk.f32.gmra.mrb[230].mxu1 %vm2360_vm2, %v7265_v23 }
 0xc42   : > { %11934 = vmatprep.mubr.msk.f32.mxu1 %vm2360_vm2, %v7266_v39 }
 0xc45   : > { %11935 = vmatmul.mubr.msk.f32.gmra.mrb[232].mxu1 %vm2360_vm2, %v7267_v29 }
 0xc46   : > { %12035 = vmatprep.mubr.msk.f32.mxu1 %vm12915_vm5, %v12912_v0 }
 0xcd4   : > { %v11885_v20 = vpop.f32.mrb[198].mxu1 }
 0xcd5   : > { %v7446_v33 = vpop.f32.mrb[199].mxu1 }
 0xcd8   : > { %v11888_v62 = vpop.f32.mrb[200].mxu1 }
 0xcd9   : > { %v7456_v36 = vpop.f32.mrb[201].mxu1 }
 0xcdc   : > { %v11891_v4 = vpop.f32.mrb[202].mxu1 }
 0xcdd   : > { %v7466_v24 = vpop.f32.mrb[203].mxu1 }
 0xcde   : > { %11941 = vmatprep.mubr.msk.f32.mxu0 %vm3958_vm4, %v7466_v24  ;;  %v10355_v24 = vld [vmem:[%s16112_s23 + $0xd8] sm:$0xff] }
 0xcdf   : > { %11942 = vmatmul.mubr.msk.f32.vlgmr.msra.gmra.mrb[66].mxu0 %vm3958_vm4, %v11891_v4  ;;  %v10353_v4 = vld [vmem:[%s16112_s23 + $0xc8] sm:$0xff] }
 0xce0   : > { %v11894_v30 = vpop.f32.mrb[204].mxu1  ;;  %12556 = vmatpush3.bf16.msra.mxu0 %v12553_v16  ;;  %v10346_v16 = vld [vmem:[%s16112_s23 + $0x90] sm:$0xff] }
 0xce1   : > { %v7476_v55 = vpop.f32.mrb[205].mxu1  ;;  %12558 = vmatprep.subr.bf16.mxu0 %v12557_v25 }
 0xce2   : > { %11944 = vmatprep.mubr.msk.f32.mxu0 %vm3958_vm4, %v7476_v55  ;;  %v10352_v55 = vld [vmem:[%s16112_s23 + $0xc0] sm:$0xff] }
 0xce3   : > { %11945 = vmatmul.mubr.msk.f32.gmra.mrb[68].mxu0 %vm3958_vm4, %v11894_v30  ;;  %v12599_v30 = vpack.c.bf16 %v10355_v24, %v10353_v4  ;;  %v8703_v4 = vld [vmem:[%s16112_s23 + $0x60] sm:$0xff]  ;;  %v8705_v24 = vld [vmem:[%s16112_s23 + $0x70] sm:$0xff] }
 0xce4   : > { %11951 = vmatprep.mubr.msk.f32.mxu0 %vm3958_vm4, %v7446_v33  ;;  %v11897_v27 = vpop.f32.mrb[206].mxu1  ;;  %v10351_v33 = vld [vmem:[%s16112_s23 + $0xb8] sm:$0xff] }
 0xce5   : > { %v7486_v26 = vpop.f32.mrb[207].mxu1 }
 0xce7   : > { %11952 = vmatmul.mubr.msk.f32.vlgmr.msra.gmra.mrb[66].mxu0 %vm3958_vm4, %v11885_v20  ;;  %v10349_v20 = vld [vmem:[%s16112_s23 + $0xa8] sm:$0xff] }
 0xce8   : > { %11954 = vmatprep.mubr.msk.f32.mxu0 %vm3958_vm4, %v7456_v36  ;;  %12560 = vmatpush3.bf16.msra.mxu0 %v12557_v25  ;;  %v11900_v34 = vpop.f32.mrb[208].mxu1  ;;  %v12595_v36 = vpack.c.bf16 %v10351_v33, %v10349_v20  ;;  %v12597_v25 = vpack.c.bf16 %v10350_v5, %v10348_v17  ;;  %v8704_v33 = vld [vmem:[%s16112_s23 + $0x68] sm:$0xff] }
 0xce9   : > { %v7496_v51 = vpop.f32.mrb[209].mxu1  ;;  %12562 = vmatprep.subr.bf16.mxu0 %v12561_v31 }
 0xceb   : > { %11955 = vmatmul.mubr.msk.f32.gmra.mrb[68].mxu0 %vm3958_vm4, %v11888_v62  ;;  %v12593_v62 = vpack.c.bf16 %v10346_v16, %v10344_v14  ;;  %v8701_v16 = vld [vmem:[%s16112_s23 + $0x50] sm:$0xff] }
 0xcec   : > { %11961 = vmatprep.mubr.msk.f32.mxu0 %vm3958_vm4, %v7486_v26  ;;  %v11903_v47 = vpop.f32.mrb[210].mxu1  ;;  %v12601_v26 = vpack.c.bf16 %v10354_v42, %v10352_v55  ;;  %v10365_v55 = vld [vmem:[%s16112_s23 + $0x118] sm:$0xff]  ;;  %v12621_v42 = vpack.c.bf16 %v8705_v24, %v8703_v4  ;;  %v10401_v4 = vld [vmem:[%s16112_s23 + $0x228] sm:$0xff] }
 0xced   : > { %v7506_v56 = vpop.f32.mrb[211].mxu1  ;;  %v10403_v24 = vld [vmem:[%s16112_s23 + $0x238] sm:$0xff] }
 0xcef   : > { %11962 = vmatmul.mubr.msk.f32.vlgmr.msra.gmra.mrb[66].mxu0 %vm3958_vm4, %v11897_v27  ;;  %v10359_v27 = vld [vmem:[%s16112_s23 + $0xf8] sm:$0xff] }
 0xcf0   : > { %11964 = vmatprep.mubr.msk.f32.mxu0 %vm3958_vm4, %v7496_v51  ;;  %12564 = vmatpush3.bf16.msra.mxu0 %v12561_v31  ;;  %v11906_v22 = vpop.f32.mrb[212].mxu1  ;;  %v12603_v31 = vpack.c.bf16 %v10359_v27, %v10357_v61  ;;  %v10358_v51 = vld [vmem:[%s16112_s23 + $0xf0] sm:$0xff] }
 0xcf1   : > { %v7516_v53 = vpop.f32.mrb[213].mxu1  ;;  %12566 = vmatprep.subr.bf16.mxu0 %v12565_v46 }
 0xcf3   : > { %11965 = vmatmul.mubr.msk.f32.gmra.mrb[68].mxu0 %vm3958_vm4, %v11900_v34  ;;  %v10356_v34 = vld [vmem:[%s16112_s23 + $0xe0] sm:$0xff] }
 0xcf4   : > { %11971 = vmatprep.mubr.msk.f32.mxu0 %vm3958_vm4, %v7506_v56  ;;  %v11909_v38 = vpop.f32.mrb[214].mxu1  ;;  %v12605_v13 = vpack.c.bf16 %v10358_v51, %v10356_v34  ;;  %v10367_v51 = vld [vmem:[%s16112_s23 + $0x128] sm:$0xff] }
 0xcf5   : > { %v7526_v1 = vpop.f32.mrb[215].mxu1 }
 0xcf7   : > { %11972 = vmatmul.mubr.msk.f32.vlgmr.msra.gmra.mrb[66].mxu0 %vm3958_vm4, %v11903_v47  ;;  %v8555_v47 = vpop.permute.xlu0 %8554 }
 0xcf8   : > { %11974 = vmatprep.mubr.msk.f32.mxu0 %vm3958_vm4, %v7516_v53  ;;  %12568 = vmatpush3.bf16.msra.mxu0 %v12565_v46  ;;  %v11912_v43 = vpop.f32.mrb[216].mxu1 }
 0xcf9   : > { %v7536_v49 = vpop.f32.mrb[217].mxu1  ;;  %12570 = vmatprep.subr.bf16.mxu0 %v12569_v40 }
 0xcfb   : > { %11975 = vmatmul.mubr.msk.f32.gmra.mrb[68].mxu0 %vm3958_vm4, %v11906_v22 }
 0xcfc   : > { %11981 = vmatprep.mubr.msk.f32.mxu0 %vm3958_vm4, %v7526_v1  ;;  %v11915_v44 = vpop.f32.mrb[218].mxu1 }
 0xcfd   : > { %v7546_v10 = vpop.f32.mrb[219].mxu1 }
 0xcff   : > { %11982 = vmatmul.mubr.msk.f32.vlgmr.msra.gmra.mrb[66].mxu0 %vm3958_vm4, %v11909_v38 }
 0xd00   : > { %11984 = vmatprep.mubr.msk.f32.mxu0 %vm3958_vm4, %v7536_v49  ;;  %12572 = vmatpush3.bf16.msra.mxu0 %v12569_v40  ;;  %v11918_v58 = vpop.f32.mrb[220].mxu1  ;;  %v8565_v40 = vpop.permute.xlu0 %8564 }
 0xd01   : > { %v7556_v48 = vpop.f32.mrb[221].mxu1  ;;  %12574 = vmatprep.subr.bf16.mxu0 %v12573_v12 }
 0xd03   : > { %11985 = vmatmul.mubr.msk.f32.gmra.mrb[68].mxu0 %vm3958_vm4, %v11912_v43 }
 0xd04   : > { %11991 = vmatprep.mubr.msk.f32.mxu0 %vm3958_vm4, %v7546_v10  ;;  %v11921_v54 = vpop.f32.mrb[222].mxu1 }
 0xd05   : > { %v7566_v57 = vpop.f32.mrb[223].mxu1 }
 0xd07   : > { %11992 = vmatmul.mubr.msk.f32.vlgmr.msra.gmra.mrb[66].mxu0 %vm3958_vm4, %v11915_v44 }
 0xd08   : > { %11994 = vmatprep.mubr.msk.f32.mxu0 %vm3958_vm4, %v7556_v48  ;;  %12576 = vmatpush3.bf16.msra.mxu0 %v12573_v12  ;;  %v11924_v2 = vpop.f32.mrb[224].mxu1  ;;  %v8581_v48 = vld [vmem:[%s16111_s22 + $0x8] sm:$0xff] }
 0xd09   : > { %v7576_v19 = vpop.f32.mrb[225].mxu1  ;;  %12578 = vmatprep.subr.bf16.mxu0 %v12577_v59 }
 0xd0b   : > { %11995 = vmatmul.mubr.msk.f32.gmra.mrb[68].mxu0 %vm3958_vm4, %v11918_v58  ;;  %v8580_v58 = vld [vmem:[%s16111_s22] sm:$0xff] }
 0xd0c   : > { %12001 = vmatprep.mubr.msk.f32.mxu0 %vm3958_vm4, %v7566_v57  ;;  %v11927_v7 = vpop.f32.mrb[226].mxu1  ;;  %v8694_v57 = vld [vmem:[%s16112_s23 + $0x18] sm:$0xff] }
 0xd0d   : > { %v7586_v37 = vpop.f32.mrb[227].mxu1 }
 0xd0f   : > { %12002 = vmatmul.mubr.msk.f32.vlgmr.msra.gmra.mrb[66].mxu0 %vm3958_vm4, %v11921_v54  ;;  %v8692_v54 = vld [vmem:[%s16112_s23 + $0x8] sm:$0xff] }
 0xd10   : > { %12004 = vmatprep.mubr.msk.f32.mxu0 %vm3958_vm4, %v7576_v19  ;;  %12580 = vmatpush3.bf16.msra.mxu0 %v12577_v59  ;;  %v11930_v63 = vpop.f32.mrb[228].mxu1  ;;  %v12607_v59 = vpack.c.bf16 %v8694_v57, %v8692_v54  ;;  %v8693_v19 = vld [vmem:[%s16112_s23 + $0x10] sm:$0xff]  ;;  %v10384_v57 = vld [vmem:[%s16112_s23 + $0x1a8] sm:$0xff] }
 0xd11   : > { %v7596_v28 = vpop.f32.mrb[229].mxu1  ;;  %12582 = vmatprep.subr.bf16.mxu0 %v12581_v6  ;;  %v10381_v54 = vld [vmem:[%s16112_s23 + $0x190] sm:$0xff] }
 0xd13   : > { %12005 = vmatmul.mubr.msk.f32.gmra.mrb[68].mxu0 %vm3958_vm4, %v11924_v2  ;;  %v8691_v2 = vld [vmem:[%s16112_s23] sm:$0xff] }
 0xd14   : > { %12011 = vmatprep.mubr.msk.f32.mxu0 %vm3958_vm4, %v7586_v37  ;;  %v11933_v23 = vpop.f32.mrb[230].mxu1  ;;  %v12609_v37 = vpack.c.bf16 %v8693_v19, %v8691_v2 }
 0xd15   : > { %v7606_v39 = vpop.f32.mrb[231].mxu1 }
 0xd17   : > { %12012 = vmatmul.mubr.msk.f32.vlgmr.msra.gmra.mrb[66].mxu0 %vm3958_vm4, %v11927_v7 }
 0xd18   : > { %12014 = vmatprep.mubr.msk.f32.mxu0 %vm3958_vm4, %v7596_v28  ;;  %12584 = vmatpush3.bf16.msra.mxu0 %v12581_v6  ;;  %v11936_v29 = vpop.f32.mrb[232].mxu1  ;;  %v8695_v28 = vld [vmem:[%s16112_s23 + $0x20] sm:$0xff] }
 0xd19   : > { %v7616_v41 = vpop.f32.mrb[233].mxu1  ;;  %12592 = vmatprep.subr.bf16.mxu0 %v12591_v15  ;;  %v8699_v15 = vld [vmem:[%s16112_s23 + $0x40] sm:$0xff] }
 0xd1b   : > { %12015 = vmatmul.mubr.msk.f32.gmra.mrb[68].mxu0 %vm3958_vm4, %v11930_v63  ;;  %v12611_v63 = vpack.c.bf16 %v8698_v18, %v8696_v3  ;;  %v10383_v3 = vld [vmem:[%s16112_s23 + $0x1a0] sm:$0xff]  ;;  %v10385_v18 = vld [vmem:[%s16112_s23 + $0x1b0] sm:$0xff] }
 0xd1c   : > { %12021 = vmatprep.mubr.msk.f32.mxu0 %vm3958_vm4, %v7606_v39 }
 0xd1f   : > { %12022 = vmatmul.mubr.msk.f32.vlgmr.msra.gmra.mrb[66].mxu0 %vm3958_vm4, %v11933_v23  ;;  %v8697_v23 = vld [vmem:[%s16112_s23 + $0x30] sm:$0xff] }
 0xd20   : > { %12024 = vmatprep.mubr.msk.f32.mxu0 %vm3958_vm4, %v7616_v41  ;;  %12594 = vmatpush1.bf16.msra.mxu0 %v12593_v62  ;;  %v8702_v41 = vld [vmem:[%s16112_s23 + $0x58] sm:$0xff]  ;;  %v12613_v45 = vpack.c.bf16 %v8697_v23, %v8695_v28  ;;  %v10387_v28 = vld [vmem:[%s16112_s23 + $0x1c0] sm:$0xff]  ;;  %v10389_v23 = vld [vmem:[%s16112_s23 + $0x1d0] sm:$0xff] }
 0xd21   : > { %12596 = vmatprep.subr.bf16.mxu0 %v12595_v36  ;;  %v8706_v62 = vld [vmem:[%s16112_s23 + $0x78] sm:$0xff]  ;;  %v12617_v36 = vpack.c.bf16 %v8701_v16, %v8699_v15  ;;  %v10393_v15 = vld [vmem:[%s16112_s23 + $0x1f0] sm:$0xff]  ;;  %v10397_v16 = vld [vmem:[%s16112_s23 + $0x208] sm:$0xff] }
 0xd22   : > { %v12619_v5 = vpack.c.bf16 %v8706_v62, %v8704_v33 }
 0xd23   : > { %12025 = vmatmul.mubr.msk.f32.gmra.mrb[68].mxu0 %vm3958_vm4, %v11936_v29  ;;  %v8700_v29 = vld [vmem:[%s16112_s23 + $0x48] sm:$0xff] }
 0xd24   : > { %8792 = vmatprep.mubr.f32.mxu0 %v12912_v0  ;;  %12598 = vmatpush1.bf16.msra.mxu0 %v12597_v25  ;;  %v12615_v14 = vpack.c.bf16 %v8702_v41, %v8700_v29  ;;  %v10394_v29 = vld [vmem:[%s16112_s23 + $0x1f8] sm:$0xff]  ;;  %v12649_v41 = vpack.c.bf16 %v10389_v23, %v10387_v28  ;;  %v10430_v23 = vld [vmem:[%s16112_s23 + $0x300] sm:$0xff] }
 0xd25   : > { %12600 = vmatprep.subr.bf16.mxu0 %v12599_v30  ;;  %v10363_v30 = vld [vmem:[%s16112_s23 + $0x108] sm:$0xff] }
 0xd26   : > { %v12623_v27 = vpack.c.bf16 %v10365_v55, %v10363_v30  ;;  %v12659_v55 = vpack.c.bf16 %v10403_v24, %v10401_v4  ;;  %v10440_v4 = vld [vmem:[%s16112_s23 + $0x350] sm:$0xff]  ;;  %v10443_v24 = vld [vmem:[%s16112_s23 + $0x368] sm:$0xff] }
 0xd28   : > { %12602 = vmatpush1.bf16.msra.mxu0 %v12601_v26  ;;  %v10362_v26 = vld [vmem:[%s16112_s23 + $0x100] sm:$0xff] }
 0xd29   : > { %12604 = vmatprep.subr.bf16.mxu0 %v12603_v31  ;;  %v10364_v31 = vld [vmem:[%s16112_s23 + $0x110] sm:$0xff] }
 0xd2c   : > { %12606 = vmatpush1.bf16.msra.mxu0 %v12605_v13  ;;  %v10369_v13 = vld [vmem:[%s16112_s23 + $0x138] sm:$0xff] }
 0xd2d   : > { %12608 = vmatprep.subr.bf16.mxu0 %v12607_v59  ;;  %v10386_v59 = vld [vmem:[%s16112_s23 + $0x1b8] sm:$0xff] }
 0xd2e   : > { %v12643_v19 = vpack.c.bf16 %v10386_v59, %v10384_v57  ;;  %v10423_v57 = vld [vmem:[%s16112_s23 + $0x2d0] sm:$0xff]  ;;  %v10426_v59 = vld [vmem:[%s16112_s23 + $0x2e8] sm:$0xff] }
 0xdf2   : > { %v12023_v56 = vpop.f32.mrb[66].mxu0 }
 0xdf3   : > { %v8573_v46 = vadd.f32 %v12023_v56, %v8560_v21  ;;  %v8529_v22 = vpop.f32.mrb[67].mxu0  ;;  %v12625_v21 = vpack.c.bf16 %v10364_v31, %v10362_v26  ;;  %v12627_v56 = vpack.c.bf16 %v10369_v13, %v10367_v51  ;;  %v10405_v26 = vld [vmem:[%s16112_s23 + $0x248] sm:$0xff]  ;;  %v10407_v31 = vld [vmem:[%s16112_s23 + $0x258] sm:$0xff]  ;;  %v10404_v51 = vld [vmem:[%s16112_s23 + $0x240] sm:$0xff] }
 0xdf4   : > { %v8572_v53 = vadd.f32 %v8555_v47, %v8529_v22  ;;  %v10368_v22 = vld [vmem:[%s16112_s23 + $0x130] sm:$0xff] }
 0xdf5   : > { %v8577_v35 = vmax.f32 %v8573_v46, 0.0  ;;  %v10366_v46 = vld [vmem:[%s16112_s23 + $0x120] sm:$0xff]  ;;  %v10406_v13 = vld [vmem:[%s16112_s23 + $0x250] sm:$0xff] }
 0xdf6   : > { %v8576_v38 = vmax.f32 %v8572_v53, 0.0  ;;  %v12026_v1 = vpop.f32.mrb[68].mxu0 }
 0xdf7   : > { %v8575_v43 = vadd.f32 %v12026_v1, %v8570_v60  ;;  %v8539_v49 = vpop.f32.mrb[69].mxu0  ;;  %v10373_v60 = vld [vmem:[%s16112_s23 + $0x158] sm:$0xff] }
 0xdf8   : > { %v12586_v8 = vpack.c.bf16 %v8577_v35, %v8576_v38  ;;  %v8574_v50 = vadd.f32 %v8565_v40, %v8539_v49  ;;  %v10371_v35 = vld [vmem:[%s16112_s23 + $0x148] sm:$0xff]  ;;  %v12629_v38 = vpack.c.bf16 %v10368_v22, %v10366_v46  ;;  %v10370_v40 = vld [vmem:[%s16112_s23 + $0x140] sm:$0xff]  ;;  %v12665_v46 = vpack.c.bf16 %v10406_v13, %v10404_v51  ;;  %v10449_v13 = vld [vmem:[%s16112_s23 + $0x390] sm:$0xff] }
 0xdf9   : > { %v8579_v44 = vmax.f32 %v8575_v43, 0.0  ;;  %v12631_v1 = vpack.c.bf16 %v10373_v60, %v10371_v35  ;;  %v10372_v43 = vld [vmem:[%s16112_s23 + $0x150] sm:$0xff]  ;;  %v10375_v49 = vld [vmem:[%s16112_s23 + $0x168] sm:$0xff]  ;;  %v10447_v51 = vld [vmem:[%s16112_s23 + $0x380] sm:$0xff] }
 0xdfa   : > { %v8578_v10 = vmax.f32 %v8574_v50, 0.0  ;;  %12587 = vmatpush3.bf16.msra.mxu1 %v12586_v8  ;;  %v10377_v8 = vld [vmem:[%s16112_s23 + $0x178] sm:$0xff]  ;;  %v12633_v50 = vpack.c.bf16 %v10372_v43, %v10370_v40  ;;  %v10410_v35 = vld [vmem:[%s16112_s23 + $0x270] sm:$0xff]  ;;  %v10414_v60 = vld [vmem:[%s16112_s23 + $0x288] sm:$0xff] }
 0xdfb   : > { %12588 = vmatprep.subr.bf16.mxu1 %v12914_v32  ;;  %v8582_v32 = vld [vmem:[%s16111_s22 + $0x10] sm:$0xff]  ;;  %v10413_v43 = vld [vmem:[%s16112_s23 + $0x280] sm:$0xff] }
 0xdfc   : > { %v12589_v12 = vpack.c.bf16 %v8579_v44, %v8578_v10  ;;  %v12635_v44 = vpack.c.bf16 %v10377_v8, %v10375_v49  ;;  %v10374_v10 = vld [vmem:[%s16112_s23 + $0x160] sm:$0xff]  ;;  %v10415_v49 = vld [vmem:[%s16112_s23 + $0x290] sm:$0xff]  ;;  %v10418_v8 = vld [vmem:[%s16112_s23 + $0x2a8] sm:$0xff] }
 0xdfe   : > { %12590 = vmatpush3.bf16.msra.mxu1 %v12589_v12  ;;  %v10376_v12 = vld [vmem:[%s16112_s23 + $0x170] sm:$0xff] }
 0xe01   : > { %12036 = vmatmul.mubr.msk.f32.vlgmr.msra.gmra.mrb[234].mxu1 %vm2360_vm2, %v8580_v58  ;;  %v10380_v58 = vld [vmem:[%s16112_s23 + $0x188] sm:$0xff] }
 0xe02   : > { %12038 = vmatprep.mubr.msk.f32.mxu1 %vm12915_vm5, %v12912_v0 }
 0xe05   : > { %12039 = vmatmul.mubr.msk.f32.gmra.mrb[236].mxu1 %vm2360_vm2, %v8581_v48  ;;  %v10382_v48 = vld [vmem:[%s16112_s23 + $0x198] sm:$0xff] }
 0xe06   : > { %12041 = vmatprep.mubr.msk.f32.mxu1 %vm12915_vm5, %v12912_v0 }
 0xe09   : > { %12042 = vmatmul.mubr.msk.f32.gmra.mrb[238].mxu1 %vm2360_vm2, %v8582_v32  ;;  %v12637_v32 = vpack.c.bf16 %v10376_v12, %v10374_v10  ;;  %v10417_v12 = vld [vmem:[%s16112_s23 + $0x2a0] sm:$0xff] }
 0xe0a   : > { %12044 = vmatprep.mubr.msk.f32.mxu1 %vm12915_vm5, %v12912_v0 }
 0xe0d   : > { %12045 = vmatmul.mubr.msk.f32.gmra.mrb[240].mxu1 %vm2360_vm2, %v8583_v9  ;;  %v12639_v9 = vpack.c.bf16 %v10382_v48, %v10380_v58  ;;  %v10419_v58 = vld [vmem:[%s16112_s23 + $0x2b0] sm:$0xff]  ;;  %v10422_v48 = vld [vmem:[%s16112_s23 + $0x2c8] sm:$0xff] }
 0xe0e   : > { %12047 = vmatprep.mubr.msk.f32.mxu1 %vm12915_vm5, %v12912_v0 }
 0xe11   : > { %12048 = vmatmul.mubr.msk.f32.gmra.mrb[242].mxu1 %vm2360_vm2, %v8584_v52  ;;  %v10379_v52 = vld [vmem:[%s16112_s23 + $0x180] sm:$0xff] }
 0xe12   : > { %v12641_v2 = vpack.c.bf16 %v10381_v54, %v10379_v52  ;;  %v10421_v54 = vld [vmem:[%s16112_s23 + $0x2c0] sm:$0xff] }
 0xed4   : > { %v8667_v7 = vpop.f32.mrb[234].mxu1 }
 0xed5   : > { %v8725_v6 = vrot.slane %v8667_v7, 4  ;;  %v12037_v39 = vpop.f32.mrb[235].mxu1 }
 0xed6   : > { %v10392_v39 = vld [vmem:[%s16112_s23 + $0x1e8] sm:$0xff] }
 0xed7   : > { %10360 = vmatmul.mubr.msk.f32.vlgmr.msra.gmra.mrb[70].mxu0 %vm2731_vm3, %v8725_v6  ;;  %v12645_v6 = vpack.c.bf16 %v10385_v18, %v10383_v3  ;;  %v10425_v18 = vld [vmem:[%s16112_s23 + $0x2e0] sm:$0xff] }
 0xed8   : > { %12610 = vmatpush1.bf16.msra.mxu0 %v12609_v37  ;;  %8865 = vmatprep.mubr.f32.mxu0 %v12912_v0  ;;  %v15697_v11 = vpop.f32.mrb[236].mxu1  ;;  %v10390_v37 = vld [vmem:[%s16112_s23 + $0x1d8] sm:$0xff] }
 0xed9   : > { %12612 = vmatprep.subr.bf16.mxu0 %v12611_v63  ;;  %v12040_v20 = vpop.f32.mrb[237].mxu1  ;;  %v8982_v30 = vrot.slane %v15697_v11, 4 }
 0xeda   : > { %v10399_v20 = vld [vmem:[%s16112_s23 + $0x218] sm:$0xff] }
 0xedb   : > { %v12655_v62 = vpack.c.bf16 %v10399_v20, %v10397_v16  ;;  %v10434_v16 = vld [vmem:[%s16112_s23 + $0x320] sm:$0xff]  ;;  %v10436_v20 = vld [vmem:[%s16112_s23 + $0x330] sm:$0xff] }
 0xedc   : > { %12614 = vmatpush1.bf16.msra.mxu0 %v12613_v45  ;;  %v15711_v17 = vpop.f32.mrb[238].mxu1  ;;  %v12651_v45 = vpack.c.bf16 %v10394_v29, %v10392_v39  ;;  %v10432_v39 = vld [vmem:[%s16112_s23 + $0x310] sm:$0xff]  ;;  %v10435_v29 = vld [vmem:[%s16112_s23 + $0x328] sm:$0xff] }
 0xedd   : > { %12616 = vmatprep.subr.bf16.mxu0 %v12615_v14  ;;  %v12043_v25 = vpop.f32.mrb[239].mxu1  ;;  %v10391_v14 = vld [vmem:[%s16112_s23 + $0x1e0] sm:$0xff] }
 0xede   : > { %v12653_v33 = vpack.c.bf16 %v10393_v15, %v10391_v14  ;;  %v9168_v14 = vrot.slane %v15711_v17, 4 }
 0xee0   : > { %12618 = vmatpush1.bf16.msra.mxu0 %v12617_v36  ;;  %v15725_v61 = vpop.f32.mrb[240].mxu1  ;;  %v10396_v36 = vld [vmem:[%s16112_s23 + $0x200] sm:$0xff] }
 0xee1   : > { %12620 = vmatprep.subr.bf16.mxu0 %v12619_v5  ;;  %v12046_v34 = vpop.f32.mrb[241].mxu1  ;;  %v10398_v5 = vld [vmem:[%s16112_s23 + $0x210] sm:$0xff] }
 0xee2   : > { %v12657_v25 = vpack.c.bf16 %v10398_v5, %v10396_v36  ;;  %v12663_v34 = vpack.c.bf16 %v10407_v31, %v10405_v26  ;;  %v10438_v5 = vld [vmem:[%s16112_s23 + $0x340] sm:$0xff]  ;;  %v10448_v26 = vld [vmem:[%s16112_s23 + $0x388] sm:$0xff]  ;;  %v10450_v31 = vld [vmem:[%s16112_s23 + $0x398] sm:$0xff] }
 0xee4   : > { %12622 = vmatpush1.bf16.msra.mxu0 %v12621_v42  ;;  %v15739_v47 = vpop.f32.mrb[242].mxu1  ;;  %v10400_v42 = vld [vmem:[%s16112_s23 + $0x220] sm:$0xff] }
 0xee5   : > { %12624 = vmatprep.subr.bf16.mxu0 %v12623_v27  ;;  %v12049_v53 = vpop.f32.mrb[243].mxu1  ;;  %v10402_v27 = vld [vmem:[%s16112_s23 + $0x230] sm:$0xff] }
 0xee6   : > { %v10408_v53 = vld [vmem:[%s16112_s23 + $0x260] sm:$0xff] }
 0xee7   : > { %10361 = vmatmul.mubr.msk.f32.vlgmr.msra.gmra.mrb[70].mxu0 %vm2731_vm3, %v8667_v7  ;;  %v10388_v7 = vld [vmem:[%s16112_s23 + $0x1c8] sm:$0xff] }
 0xee8   : > { %12626 = vmatpush1.bf16.msra.mxu0 %v12625_v21  ;;  %8956 = vmatprep.mubr.f32.mxu0 %v12912_v0  ;;  %v12647_v63 = vpack.c.bf16 %v10390_v37, %v10388_v7  ;;  %v10409_v21 = vld [vmem:[%s16112_s23 + $0x268] sm:$0xff]  ;;  %v10427_v7 = vld [vmem:[%s16112_s23 + $0x2f0] sm:$0xff] }
 0xee9   : > { %12628 = vmatprep.subr.bf16.mxu0 %v12627_v56  ;;  %v10411_v56 = vld [vmem:[%s16112_s23 + $0x278] sm:$0xff]  ;;  %v10431_v37 = vld [vmem:[%s16112_s23 + $0x308] sm:$0xff] }
 0xeea   : > { %v12667_v22 = vpack.c.bf16 %v10411_v56, %v10409_v21  ;;  %v10452_v21 = vld [vmem:[%s16112_s23 + $0x3a8] sm:$0xff]  ;;  %v10454_v56 = vld [vmem:[%s16112_s23 + $0x3b8] sm:$0xff] }
 0xeec   : > { %12630 = vmatpush1.bf16.msra.mxu0 %v12629_v38  ;;  %v10416_v38 = vld [vmem:[%s16112_s23 + $0x298] sm:$0xff] }
 0xeed   : > { %12632 = vmatprep.subr.bf16.mxu0 %v12631_v1  ;;  %v12669_v1 = vpack.c.bf16 %v10410_v35, %v10408_v53  ;;  %v12671_v40 = vpack.c.bf16 %v10416_v38, %v10414_v60  ;;  %v10451_v53 = vld [vmem:[%s16112_s23 + $0x3a0] sm:$0xff]  ;;  %v10453_v35 = vld [vmem:[%s16112_s23 + $0x3b0] sm:$0xff]  ;;  %v10456_v60 = vld [vmem:[%s16112_s23 + $0x3c8] sm:$0xff] }
 0xeee   : > { %v10458_v38 = vld [vmem:[%s16112_s23 + $0x3d8] sm:$0xff] }
 0xef0   : > { %12634 = vmatpush1.bf16.msra.mxu0 %v12633_v50  ;;  %v10420_v50 = vld [vmem:[%s16112_s23 + $0x2b8] sm:$0xff] }
 0xef1   : > { %12636 = vmatprep.subr.bf16.mxu0 %v12635_v44  ;;  %v12673_v44 = vpack.c.bf16 %v10415_v49, %v10413_v43  ;;  %v12675_v10 = vpack.c.bf16 %v10420_v50, %v10418_v8  ;;  %v10455_v43 = vld [vmem:[%s16112_s23 + $0x3c0] sm:$0xff]  ;;  %v10457_v49 = vld [vmem:[%s16112_s23 + $0x3d0] sm:$0xff]  ;;  %v10460_v8 = vld [vmem:[%s16112_s23 + $0x3e8] sm:$0xff] }
 0xef2   : > { %v10462_v50 = vld [vmem:[%s16112_s23 + $0x3f8] sm:$0xff] }
 0xef4   : > { %12638 = vmatpush1.bf16.msra.mxu0 %v12637_v32  ;;  %v10424_v32 = vld [vmem:[%s16112_s23 + $0x2d8] sm:$0xff] }
 0xef5   : > { %12640 = vmatprep.subr.bf16.mxu0 %v12639_v9  ;;  %v12677_v9 = vpack.c.bf16 %v10419_v58, %v10417_v12  ;;  %v12679_v52 = vpack.c.bf16 %v10424_v32, %v10422_v48  ;;  %v10459_v12 = vld [vmem:[%s16112_s23 + $0x3e0] sm:$0xff]  ;;  %v10461_v58 = vld [vmem:[%s16112_s23 + $0x3f0] sm:$0xff]  ;;  %v10465_v48 = vld [vmem:[%s16112_s23 + $0x408] sm:$0xff] }
 0xef6   : > { %v10467_v32 = vld [vmem:[%s16112_s23 + $0x418] sm:$0xff] }
 0xef7   : > { %10378 = vmatmul.mubr.msk.f32.vlgmr.msra.gmra.mrb[70].mxu0 %vm2731_vm3, %v15697_v11  ;;  %v12661_v11 = vpack.c.bf16 %v10402_v27, %v10400_v42  ;;  %v10442_v42 = vld [vmem:[%s16112_s23 + $0x360] sm:$0xff]  ;;  %v10444_v27 = vld [vmem:[%s16112_s23 + $0x370] sm:$0xff] }
 0xef8   : > { %12642 = vmatpush1.bf16.msra.mxu0 %v12641_v2  ;;  %9049 = vmatprep.mubr.f32.mxu0 %v12912_v0  ;;  %v10428_v2 = vld [vmem:[%s16112_s23 + $0x2f8] sm:$0xff] }
 0xef9   : > { %12644 = vmatprep.subr.bf16.mxu0 %v12643_v19  ;;  %v12681_v19 = vpack.c.bf16 %v10423_v57, %v10421_v54  ;;  %v12683_v3 = vpack.c.bf16 %v10428_v2, %v10426_v59  ;;  %v10464_v54 = vld [vmem:[%s16112_s23 + $0x400] sm:$0xff]  ;;  %v10466_v57 = vld [vmem:[%s16112_s23 + $0x410] sm:$0xff]  ;;  %v10469_v59 = vld [vmem:[%s16112_s23 + $0x428] sm:$0xff] }
 0xefa   : > { %v10471_v2 = vld [vmem:[%s16112_s23 + $0x438] sm:$0xff] }
 0xefc   : > { %12646 = vmatpush1.bf16.msra.mxu0 %v12645_v6  ;;  %v10433_v6 = vld [vmem:[%s16112_s23 + $0x318] sm:$0xff] }
 0xefd   : > { %12648 = vmatprep.subr.bf16.mxu0 %v12647_v63  ;;  %v12685_v63 = vpack.c.bf16 %v10427_v7, %v10425_v18  ;;  %v12687_v28 = vpack.c.bf16 %v10433_v6, %v10431_v37  ;;  %v12723_v18 = vpack.c.bf16 %v10471_v2, %v10469_v59  ;;  %v10468_v7 = vld [vmem:[%s16112_s23 + $0x420] sm:$0xff]  ;;  %v10470_v37 = vld [vmem:[%s16112_s23 + $0x430] sm:$0xff]  ;;  %v10473_v6 = vld [vmem:[%s16112_s23 + $0x448] sm:$0xff] }
 0xf00   : > { %12650 = vmatpush1.bf16.msra.mxu0 %v12649_v41  ;;  %v10437_v41 = vld [vmem:[%s16112_s23 + $0x338] sm:$0xff] }
 0xf01   : > { %12652 = vmatprep.subr.bf16.mxu0 %v12651_v45  ;;  %v12689_v45 = vpack.c.bf16 %v10432_v39, %v10430_v23  ;;  %v12691_v15 = vpack.c.bf16 %v10437_v41, %v10435_v29  ;;  %v10472_v23 = vld [vmem:[%s16112_s23 + $0x440] sm:$0xff]  ;;  %v10474_v39 = vld [vmem:[%s16112_s23 + $0x450] sm:$0xff]  ;;  %v10477_v29 = vld [vmem:[%s16112_s23 + $0x468] sm:$0xff] }
 0xf02   : > { %v10479_v41 = vld [vmem:[%s16112_s23 + $0x478] sm:$0xff] }
 0xf04   : > { %12654 = vmatpush1.bf16.msra.mxu0 %v12653_v33  ;;  %v10439_v33 = vld [vmem:[%s16112_s23 + $0x348] sm:$0xff] }
 0xf05   : > { %12656 = vmatprep.subr.bf16.mxu0 %v12655_v62  ;;  %v10441_v62 = vld [vmem:[%s16112_s23 + $0x358] sm:$0xff] }
 0xf06   : > { %v12695_v36 = vpack.c.bf16 %v10441_v62, %v10439_v33 }
 0xf07   : > { %10395 = vmatmul.mubr.msk.f32.vlgmr.msra.gmra.mrb[70].mxu0 %vm2731_vm3, %v8982_v30  ;;  %v12697_v30 = vpack.c.bf16 %v10440_v4, %v10438_v5 }
 0xf08   : > { %12658 = vmatpush1.bf16.msra.mxu0 %v12657_v25  ;;  %9142 = vmatprep.mubr.f32.mxu0 %v12912_v0  ;;  %v10445_v25 = vld [vmem:[%s16112_s23 + $0x378] sm:$0xff] }
 0xf09   : > { %12660 = vmatprep.subr.bf16.mxu0 %v12659_v55  ;;  %v12699_v55 = vpack.c.bf16 %v10445_v25, %v10443_v24 }
 0xf0c   : > { %12662 = vmatpush1.bf16.msra.mxu0 %v12661_v11  ;;  %v12701_v11 = vpack.c.bf16 %v10444_v27, %v10442_v42 }
 0xf0d   : > { %12664 = vmatprep.subr.bf16.mxu0 %v12663_v34  ;;  %v12703_v34 = vpack.c.bf16 %v10450_v31, %v10448_v26 }
 0xf10   : > { %12666 = vmatpush1.bf16.msra.mxu0 %v12665_v46  ;;  %v12705_v46 = vpack.c.bf16 %v10449_v13, %v10447_v51 }
 0xf11   : > { %12668 = vmatprep.subr.bf16.mxu0 %v12667_v22  ;;  %v12707_v22 = vpack.c.bf16 %v10454_v56, %v10452_v21 }
 0xf14   : > { %12670 = vmatpush1.bf16.msra.mxu0 %v12669_v1  ;;  %v12709_v1 = vpack.c.bf16 %v10453_v35, %v10451_v53 }
 0xf15   : > { %12672 = vmatprep.subr.bf16.mxu0 %v12671_v40  ;;  %v12711_v40 = vpack.c.bf16 %v10458_v38, %v10456_v60 }
 0xf17   : > { %10412 = vmatmul.mubr.msk.f32.vlgmr.msra.gmra.mrb[70].mxu0 %vm2731_vm3, %v15711_v17  ;;  %v12693_v17 = vpack.c.bf16 %v10436_v20, %v10434_v16  ;;  %v9526_v20 = vpop.permute.xlu0 %9525 }
 0xf18   : > { %12674 = vmatpush1.bf16.msra.mxu0 %v12673_v44  ;;  %9235 = vmatprep.mubr.f32.mxu0 %v12912_v0  ;;  %v12713_v44 = vpack.c.bf16 %v10457_v49, %v10455_v43 }
 0xf19   : > { %12676 = vmatprep.subr.bf16.mxu0 %v12675_v10  ;;  %v12715_v10 = vpack.c.bf16 %v10462_v50, %v10460_v8 }
 0xf1c   : > { %12678 = vmatpush1.bf16.msra.mxu0 %v12677_v9  ;;  %v12717_v9 = vpack.c.bf16 %v10461_v58, %v10459_v12 }
 0xf1d   : > { %12680 = vmatprep.subr.bf16.mxu0 %v12679_v52  ;;  %v12719_v52 = vpack.c.bf16 %v10467_v32, %v10465_v48 }
 0xf20   : > { %12682 = vmatpush1.bf16.msra.mxu0 %v12681_v19  ;;  %v12721_v19 = vpack.c.bf16 %v10466_v57, %v10464_v54 }
 0xf21   : > { %12684 = vmatprep.subr.bf16.mxu0 %v12683_v3  ;;  %v9354_v3 = vrot.slane %v15725_v61, 4 }
 0xf24   : > { %12686 = vmatpush1.bf16.msra.mxu0 %v12685_v63  ;;  %v10475_v63 = vld [vmem:[%s16112_s23 + $0x458] sm:$0xff] }
 0xf25   : > { %12688 = vmatprep.subr.bf16.mxu0 %v12687_v28  ;;  %v12727_v28 = vpack.c.bf16 %v10475_v63, %v10473_v6 }
 0xf27   : > { %10429 = vmatmul.mubr.msk.f32.vlgmr.msra.gmra.mrb[70].mxu0 %vm2731_vm3, %v9168_v14  ;;  %v10476_v14 = vld [vmem:[%s16112_s23 + $0x460] sm:$0xff] }
 0xf28   : > { %12690 = vmatpush1.bf16.msra.mxu0 %v12689_v45  ;;  %9328 = vmatprep.mubr.f32.mxu0 %v12912_v0  ;;  %v12731_v45 = vpack.c.bf16 %v10479_v41, %v10477_v29 }
 0xf29   : > { %12692 = vmatprep.subr.bf16.mxu0 %v12691_v15  ;;  %v10478_v15 = vld [vmem:[%s16112_s23 + $0x470] sm:$0xff] }
 0xf2a   : > { %v12733_v16 = vpack.c.bf16 %v10478_v15, %v10476_v14 }
 0xf2c   : > { %12694 = vmatpush1.bf16.msra.mxu0 %v12693_v17 }
 0xf2d   : > { %12696 = vmatprep.subr.bf16.mxu0 %v12695_v36 }
 0xf30   : > { %12698 = vmatpush1.bf16.msra.mxu0 %v12697_v30 }
 0xf31   : > { %12700 = vmatprep.subr.bf16.mxu0 %v12699_v55 }
 0xf34   : > { %12702 = vmatpush1.bf16.msra.mxu0 %v12701_v11 }
 0xf35   : > { %12704 = vmatprep.subr.bf16.mxu0 %v12703_v34 }
 0xf37   : > { %10446 = vmatmul.mubr.msk.f32.vlgmr.msra.gmra.mrb[70].mxu0 %vm2731_vm3, %v15725_v61  ;;  %v12725_v61 = vpack.c.bf16 %v10470_v37, %v10468_v7 }
 0xf38   : > { %12706 = vmatpush1.bf16.msra.mxu0 %v12705_v46  ;;  %9421 = vmatprep.mubr.f32.mxu0 %v12912_v0 }
 0xf39   : > { %12708 = vmatprep.subr.bf16.mxu0 %v12707_v22 }
 0xf3c   : > { %12710 = vmatpush1.bf16.msra.mxu0 %v12709_v1 }
 0xf3d   : > { %12712 = vmatprep.subr.bf16.mxu0 %v12711_v40 }
 0xf40   : > { %12714 = vmatpush1.bf16.msra.mxu0 %v12713_v44 }
 0xf41   : > { %12716 = vmatprep.subr.bf16.mxu0 %v12715_v10 }
 0xf44   : > { %12718 = vmatpush1.bf16.msra.mxu0 %v12717_v9 }
 0xf45   : > { %12720 = vmatprep.subr.bf16.mxu0 %v12719_v52 }
 0xf47   : > { %10463 = vmatmul.mubr.msk.f32.vlgmr.msra.gmra.mrb[70].mxu0 %vm2731_vm3, %v9354_v3 }
 0xf48   : > { %12722 = vmatpush1.bf16.msra.mxu0 %v12721_v19  ;;  %9514 = vmatprep.mubr.f32.mxu0 %v12912_v0  ;;  %v12729_v0 = vpack.c.bf16 %v10474_v39, %v10472_v23 }
 0xf49   : > { %12724 = vmatprep.subr.bf16.mxu0 %v12723_v18 }
 0xf4c   : > { %12726 = vmatpush1.bf16.msra.mxu0 %v12725_v61 }
 0xf4d   : > { %12728 = vmatprep.subr.bf16.mxu0 %v12727_v28 }
 0xf50   : > { %12730 = vmatpush1.bf16.msra.mxu0 %v12729_v0 }
 0xf51   : > { %12732 = vmatprep.subr.bf16.mxu0 %v12731_v45 }
 0xf54   : > { %12734 = vmatpush1.bf16.msra.mxu0 %v12733_v16 }
 0xf57   : > { %10480 = vmatmul.mubr.msk.f32.vlgmr.msra.gmra.mrb[70].mxu0 %vm2731_vm3, %v15739_v47 }
0x102a   : > { %v9516_v33 = vpop.f32.mrb[70].mxu0 }
0x102b   : > { %v9528_v62 = vadd.f32 %v9526_v20, %v9516_v33  ;;  %v9518_v17 = vpop.f32.mrb[71].mxu0 }
0x102c   : > { %v9529_v36 = vadd.f32 %v9526_v20, %v9518_v17 }
0x102d   : > { %v9530_v5 = vand.u32 2147483647, %v9528_v62  ;;  %vm9544_vm7 = vcmp.ge.f32.partialorder %v9528_v62, 0.0 }
0x102e   : > { %v9531_v4 = vand.u32 2147483647, %v9529_v36  ;;  %vm9545_vm8 = vcmp.ge.f32.partialorder %v9529_v36, 0.0 }
0x102f   : > { %v9532_v24 = vsub.f32 0.0, %v9530_v5 }
0x1030   : > { %v9533_v25 = vsub.f32 0.0, %v9531_v4 }
0x1031   : > { %v9534_v30 = vmul.f32 1.442695, %v9532_v24 }
0x1032   : > { %v9536_v55 = vmul.f32 1.442695, %v9533_v25 }
0x1033   : > { %12896 = vpow2.f32 %v9534_v30 }
0x1034   : > { %12898 = vpow2.f32 %v9536_v55 }
0x103d   : > { %v12897_v42 = vpop.eup %12896 }
0x103e   : > { %v12899_v27 = vpop.eup %12898  ;;  %v9538_v26 = vadd.f32 1.0, %v12897_v42 }
0x103f   : > { %v9539_v31 = vadd.f32 1.0, %v12899_v27 }
0x1040   : > { %12900 = vrcp.f32 %v9538_v26 }
0x1041   : > { %12902 = vrcp.f32 %v9539_v31 }
0x104a   : > { %v12901_v47 = vpop.eup %12900 }
0x104b   : > { %v12903_v11 = vpop.eup %12902  ;;  %v9541_v34 = vmul.f32 %v12901_v47, %v12897_v42 }
0x104c   : > { %v9543_v51 = vmul.f32 %v12903_v11, %v12899_v27 }
0x104d   : > { %v9546_v13 = vsub.f32 1.0, %v9541_v34 }
0x104e   : > { %v9547_v21 = vsub.f32 1.0, %v9543_v51 }
0x104f   : > { %v9548_v56 = vsel %vm9544_vm7, %v9546_v13, %v9541_v34 }
0x1050   : > { %v9549_v46 = vsel %vm9545_vm8, %v9547_v21, %v9543_v51 }
0x1051   : > { %v9552_v22 = vcombine.low %v9548_v56, %v9549_v46 }
0x1053   : > { %9554 = vst [vmem:[%s764_s9] sm:$0xff] %v9552_v22 }
0x1054 PF: > { %s35_s29 = sadd.s32 1, %s12910_s29  }
0x1055   : > { %p32_p4 = scmp.ge.s32.totalorder %s35_s29, 4  }
0x1057   :  { %34 = sbr.rel (!%p32_p4) target bundleno = 12 (0xc), region = 214 }

</bundles_post_ra>
